<compile_context>
chip_gen: v5e
topology: v5e:2x2
jax: 0.10.0
libtpu: 0.0.40
codegen_flags: <defaults>
</compile_context>

<pallas_src>
import functools
import math

import jax
import jax.numpy as jnp
from jax.experimental import pallas as pl
from jax.experimental.pallas import tpu as pltpu

NUM_HEAD = 4
_INV_SQRT2 = 0.7071067811865476


# ----------------------------------------------------------------------------
# small helpers
# ----------------------------------------------------------------------------

def _pick(dim, target):
    """Largest tile <= target that evenly divides dim (whole dim as fallback)."""
    if dim <= target:
        return dim
    t = target
    while t >= 8 and dim % t:
        t //= 2
    return t if (t >= 8 and dim % t == 0) else dim


@functools.lru_cache(maxsize=None)
def _vmem_limit_bytes():
    """Generation-aware scoped-VMEM budget (~50% of physical VMEM)."""
    phys = 128 * 1024 * 1024
    try:
        info = pltpu.get_tpu_info()
        phys = int(getattr(info, "vmem_capacity_bytes", phys) or phys)
    except Exception:
        pass
    return int(min(max(phys // 2, 32 * 1024 * 1024), 100 * 1024 * 1024))


def _const_spec(shape, index_map):
    """Grid-invariant input: request single buffering to halve its VMEM footprint."""
    try:
        return pl.BlockSpec(shape, index_map, pipeline_mode=pl.Buffered(1))
    except Exception:
        return pl.BlockSpec(shape, index_map)


def _erf_approx(x):
    # Abramowitz & Stegun 7.1.26 (f32-accurate), matches F.gelu's exact-erf form.
    a1, a2, a3, a4, a5 = 0.254829592, -0.284496736, 1.421413741, -1.453152027, 1.061405429
    p = 0.3275911
    s = jnp.where(x >= 0.0, 1.0, -1.0)
    ax = jnp.abs(x)
    t = 1.0 / (1.0 + p * ax)
    poly = ((((a5 * t + a4) * t + a3) * t + a2) * t + a1) * t
    return s * (1.0 - poly * jnp.exp(-ax * ax))


# ----------------------------------------------------------------------------
# 1) Tiled LayerNorm (ln0 on layer 0, and ln2 feeding the FFN as bf16)
# ----------------------------------------------------------------------------

def _ln_kernel(x_ref, g_ref, b_ref, o_ref, *, eps):
    x = x_ref[...].astype(jnp.float32)
    mu = jnp.mean(x, axis=-1, keepdims=True)
    var = jnp.mean((x - mu) ** 2, axis=-1, keepdims=True)
    o_ref[...] = ((x - mu) * jax.lax.rsqrt(var + eps) * g_ref[...]
                  + b_ref[...]).astype(o_ref.dtype)


def layernorm(x2d, g, b, eps=1e-5, row_tile=256, out_dtype=None):
    M, C = x2d.shape
    out_dtype = x2d.dtype if out_dtype is None else out_dtype
    tm = _pick(M, row_tile)
    return pl.pallas_call(
        functools.partial(_ln_kernel, eps=eps),
        out_shape=jax.ShapeDtypeStruct((M, C), out_dtype),
        grid=(M // tm,),
        in_specs=[pl.BlockSpec((tm, C), lambda i: (i, 0)),
                  _const_spec((1, C), lambda i: (0, 0)),
                  _const_spec((1, C), lambda i: (0, 0))],
        out_specs=pl.BlockSpec((tm, C), lambda i: (i, 0)),
        compiler_params=pltpu.CompilerParams(
            dimension_semantics=("parallel",),
            vmem_limit_bytes=_vmem_limit_bytes()),
    )(x2d, g.reshape(1, C), b.reshape(1, C))


# ----------------------------------------------------------------------------
# 2) Fused ln1 + time-shift + folded-mix q/k/v/g projection + epilogues
#    time-mix is folded into the weights: y = ln1(x) @ Wa + shift(ln1(x)) @ Wb
# ----------------------------------------------------------------------------

def _qkvg_kernel(x_ref, xb_ref, lng_ref, lnb_ref, wa_ref, wb_ref, scale_ref,
                 o_ref, *, eps_ln, eps_rms):
    tc_idx = pl.program_id(1)
    x = x_ref[0].astype(jnp.float32)              # (tT, C)
    xb = xb_ref[0, 0]                             # (1, C) raw previous-chunk row
    g = lng_ref[...]
    b = lnb_ref[...]
    C = x.shape[-1]

    def ln(v):
        mu = jnp.mean(v, axis=-1, keepdims=True)
        var = jnp.mean((v - mu) ** 2, axis=-1, keepdims=True)
        return (v - mu) * jax.lax.rsqrt(var + eps_ln) * g + b

    xn = ln(x)
    # time_shift (ZeroPad2d((0,0,1,-1))): xx[t] = xn[t-1], xx[0] = 0 (per sequence).
    xbn = ln(xb) * (tc_idx > 0).astype(jnp.float32)              # (1, C)
    rolled = pltpu.roll(xn, shift=1, axis=0)                     # rolled[i] = xn[i-1]
    row = jax.lax.broadcasted_iota(jnp.int32, (xn.shape[0], 1), 0)
    xx = jnp.where(row == 0, xbn, rolled)                        # (tT, C)

    # two wide bf16 MXU matmuls produce all four projections at once: (tT, 4C)
    y = jnp.dot(xn.astype(jnp.bfloat16), wa_ref[...],
                preferred_element_type=jnp.float32)
    y = y + jnp.dot(xx.astype(jnp.bfloat16), wb_ref[...],
                    preferred_element_type=jnp.float32)

    scale = scale_ref[...]                                       # (1, C)
    inv_sqrt_c = 1.0 / math.sqrt(float(C))

    def exp_rms(v):                      # exp(RMSNorm(v)); eps placement matches torch
        norm = jnp.sqrt(jnp.sum(v * v, axis=-1, keepdims=True)) * inv_sqrt_c
        return jnp.exp(scale * (v / (norm + eps_rms)))

    q = exp_rms(y[:, 0 * C:1 * C])
    k = exp_rms(y[:, 1 * C:2 * C])
    v = y[:, 2 * C:3 * C]
    gg = jax.nn.sigmoid(y[:, 3 * C:4 * C])
    # one lane-dense (tT, 4C) store
    o_ref[0, :, :] = jnp.concatenate([q, k, v, gg], axis=-1).astype(o_ref.dtype)


def fused_qkvg(x3, xb, ln_g, ln_b, w_mix_a, w_mix_b, rms_scale, *, tT):
    B, T, C = x3.shape
    nTc = T // tT
    return pl.pallas_call(
        functools.partial(_qkvg_kernel, eps_ln=1e-5, eps_rms=1e-8),
        out_shape=jax.ShapeDtypeStruct((B, T, 4 * C), jnp.bfloat16),
        grid=(B, nTc),
        in_specs=[
            pl.BlockSpec((1, tT, C), lambda bi, ti: (bi, ti, 0)),
            pl.BlockSpec((1, 1, 1, C), lambda bi, ti: (bi, ti, 0, 0)),
            _const_spec((1, C), lambda bi, ti: (0, 0)),
            _const_spec((1, C), lambda bi, ti: (0, 0)),
            _const_spec((C, 4 * C), lambda bi, ti: (0, 0)),
            _const_spec((C, 4 * C), lambda bi, ti: (0, 0)),
            _const_spec((1, C), lambda bi, ti: (0, 0)),
        ],
        out_specs=pl.BlockSpec((1, tT, 4 * C), lambda bi, ti: (bi, ti, 0)),
        compiler_params=pltpu.CompilerParams(
            dimension_semantics=("parallel", "parallel"),
            vmem_limit_bytes=_vmem_limit_bytes()),
    )(x3, xb, ln_g.reshape(1, C), ln_b.reshape(1, C), w_mix_a, w_mix_b,
      rms_scale.reshape(1, C))


# ----------------------------------------------------------------------------
# 3) Chunked LNSSM scan (+ fused gate / normalize): att = g * (q^T M) / (q . z)
#    State (H,D,D)+(H,1,D) carried in VMEM scratch across the "arbitrary" chunk
#    axis; inside each chunk the scan runs in SUB-sized steps so all heavy math
#    is bf16 MXU matmuls.  Decay tables are tiny (H,SUB,*) -- no (H,Tc,Tc,D).
# ----------------------------------------------------------------------------

def _lnssm_kernel(qkvg_ref, wq_ref, wk_ref, wm_ref, wz_ref, wdd_ref, att_ref,
                  m_st, z_st, *, H, D, SUB):
    C = H * D
    c_idx = pl.program_id(1)

    @pl.when(c_idx == 0)
    def _():                               # new batch element -> reset carried state
        m_st[...] = jnp.zeros_like(m_st)
        z_st[...] = jnp.zeros_like(z_st)

    Tc = qkvg_ref.shape[1]
    n_sub = Tc // SUB
    bf16 = jnp.bfloat16

    qkvg = qkvg_ref[0]                     # (Tc, 4C) bf16
    outs = []
    # TODO(synk): for v7x with B < 2, add a "parallel" head axis to the grid instead of
    # this static unroll so both TensorCores get work.
    for h in range(H):
        qh = qkvg[:, 0 * C + h * D: 0 * C + (h + 1) * D]          # (Tc, D) bf16
        kh = qkvg[:, 1 * C + h * D: 1 * C + (h + 1) * D]
        vh = qkvg[:, 2 * C + h * D: 2 * C + (h + 1) * D]
        gh = qkvg[:, 3 * C + h * D: 3 * C + (h + 1) * D]

        wq = wq_ref[h]                     # (SUB, D) f32 : w^{a+1}
        wk = wk_ref[h]                     # (SUB, D) f32 : w^{SUB-1-b}
        wm = wm_ref[h]                     # (D, 1)   f32 : w^{SUB}  (key-axis scale)
        wz = wz_ref[h]                     # (1, D)   f32 : w^{SUB}
        wdd = wdd_ref[h]                   # (SUB, SUB, D) f32 : w^{a-b} masked (a>=b)

        M = m_st[h]                        # (D, D) f32 carried state
        z = z_st[h]                        # (1, D) f32

        s_parts, z_parts = [], []
        for a in range(n_sub):             # static unroll; exponents all >= 0 (safe)
            rs = slice(a * SUB, (a + 1) * SUB)
            q_s, k_s, v_s = qh[rs], kh[rs], vh[rs]                # (SUB, D)
            qd = q_s * wq                                         # f32
            kd = k_s * wk                                         # f32

            # inter: decayed query against carried state (bf16 MXU, f32 acc)
            s_val = jnp.dot(qd.astype(bf16), M.astype(bf16),
                            preferred_element_type=jnp.float32)   # (SUB, D)
            zs = jnp.sum(qd * z, axis=-1, keepdims=True)          # (SUB, 1)

            # intra: small masked decay product (SUB x SUB x D stays tiny)
            p = jnp.sum(q_s[:, None, :] * wdd * k_s[None, :, :], axis=-1)  # (SUB,SUB)
            s_val = s_val + jnp.dot(p.astype(bf16), v_s,
                                    preferred_element_type=jnp.float32)
            zs = zs + jnp.sum(p, axis=-1, keepdims=True)

            # state update: M <- diag(w^SUB) M + k^T v   (bf16 MXU, f32 state)
            M = wm * M + jax.lax.dot_general(
                kd.astype(bf16), v_s, (((0,), (0,)), ((), ())),
                preferred_element_type=jnp.float32)
            z = wz * z + jnp.sum(kd, axis=0, keepdims=True)

            s_parts.append(s_val)
            z_parts.append(zs)

        m_st[h] = M
        z_st[h] = z
        s_all = s_parts[0] if n_sub == 1 else jnp.concatenate(s_parts, axis=0)
        zs_all = z_parts[0] if n_sub == 1 else jnp.concatenate(z_parts, axis=0)
        inv = pl.reciprocal(zs_all)                       # exact (denominator accuracy)
        outs.append(gh * s_all * inv)                     # fused gate, (Tc, D) f32

    # single lane-dense (Tc, C) store per chunk
    att_ref[0, :, :] = jnp.concatenate(outs, axis=-1).astype(att_ref.dtype)


def lnssm_attention(qkvg, wq, wk, wm, wz, wdd, *, H, D, Tc, SUB):
    B, T, C4 = qkvg.shape
    C = C4 // 4
    nC = T // Tc
    return pl.pallas_call(
        functools.partial(_lnssm_kernel, H=H, D=D, SUB=SUB),
        out_shape=jax.ShapeDtypeStruct((B, T, C), jnp.bfloat16),
        grid=(B, nC),
        in_specs=[
            pl.BlockSpec((1, Tc, 4 * C), lambda bi, ci: (bi, ci, 0)),
            _const_spec((H, SUB, D), lambda bi, ci: (0, 0, 0)),
            _const_spec((H, SUB, D), lambda bi, ci: (0, 0, 0)),
            _const_spec((H, D, 1), lambda bi, ci: (0, 0, 0)),
            _const_spec((H, 1, D), lambda bi, ci: (0, 0, 0)),
            _const_spec((H, SUB, SUB, D), lambda bi, ci: (0, 0, 0, 0)),
        ],
        out_specs=pl.BlockSpec((1, Tc, C), lambda bi, ci: (bi, ci, 0)),
        scratch_shapes=[pltpu.VMEM((H, D, D), jnp.float32),
                        pltpu.VMEM((H, 1, D), jnp.float32)],
        compiler_params=pltpu.CompilerParams(
            dimension_semantics=("parallel", "arbitrary"),
            vmem_limit_bytes=_vmem_limit_bytes()),
    )(qkvg, wq, wk, wm, wz, wdd)


# ----------------------------------------------------------------------------
# 4) General tiled matmul with optional GELU epilogue / residual add
# ----------------------------------------------------------------------------

def _mm_kernel(x_ref, w_ref, *rest, activation, add_residual):
    if add_residual:
        r_ref, o_ref, acc_ref = rest
    else:
        o_ref, acc_ref = rest

    @pl.when(pl.program_id(2) == 0)
    def _():
        acc_ref[...] = jnp.zeros_like(acc_ref)

    acc_ref[...] += jnp.dot(x_ref[...].astype(jnp.bfloat16),
                            w_ref[...].astype(jnp.bfloat16),
                            preferred_element_type=jnp.float32)

    @pl.when(pl.program_id(2) == pl.num_programs(2) - 1)
    def _():
        y = acc_ref[...]
        if activation == "gelu":
            y = 0.5 * y * (1.0 + _erf_approx(y * _INV_SQRT2))
        if add_residual:
            y = y + r_ref[...].astype(jnp.float32)
        o_ref[...] = y.astype(o_ref.dtype)


def matmul_fused(x, w, *, residual=None, activation=None,
                 out_dtype=jnp.float32, tm=256, tn=256, tk=256):
    M, K = x.shape
    Kw, N = w.shape
    assert K == Kw
    add_res = residual is not None
    tm, tn, tk = _pick(M, tm), _pick(N, tn), _pick(K, tk)
    grid = (M // tm, N // tn, K // tk)

    in_specs = [pl.BlockSpec((tm, tk), lambda i, j, k: (i, k)),
                pl.BlockSpec((tk, tn), lambda i, j, k: (k, j))]
    args = [x, w]
    if add_res:
        in_specs.append(pl.BlockSpec((tm, tn), lambda i, j, k: (i, j)))
        args.append(residual)

    return pl.pallas_call(
        functools.partial(_mm_kernel, activation=activation, add_residual=add_res),
        out_shape=jax.ShapeDtypeStruct((M, N), out_dtype),
        grid=grid,
        in_specs=in_specs,
        out_specs=pl.BlockSpec((tm, tn), lambda i, j, k: (i, j)),
        scratch_shapes=[pltpu.VMEM((tm, tn), jnp.float32)],
        compiler_params=pltpu.CompilerParams(
            dimension_semantics=("parallel", "parallel", "arbitrary"),
            vmem_limit_bytes=_vmem_limit_bytes()),
    )(*args)


# ----------------------------------------------------------------------------
# Block forward (glue: reshapes, decay tables, parameter handling)
# ----------------------------------------------------------------------------

@functools.partial(jax.jit, static_argnames=("layer_id", "n_head"))
def block_forward(x, params, *, layer_id, n_head):
    B, T, C = x.shape
    H = n_head
    D = C // H
    f32, bf16 = jnp.float32, jnp.bfloat16

    x2 = x.reshape(B * T, C).astype(f32)
    if layer_id == 0:
        x2 = layernorm(x2, params["ln0_g"], params["ln0_b"])
    x3 = x2.reshape(B, T, C)

    # ---------------- TimeMix branch: x = x + att(ln1(x)) -------------------
    tT = _pick(T, 256)
    nTc = T // tT
    # previous-row boundary per time chunk (replaces a full padded copy)
    xb = jnp.zeros((B, nTc, 1, C), f32)
    if nTc > 1:
        xb = xb.at[:, 1:, 0, :].set(x3[:, tT - 1:T - 1:tT, :])

    qkvg = fused_qkvg(x3, xb, params["ln1_g"], params["ln1_b"],
                      params["w_mix_a"], params["w_mix_b"],
                      params["rms_scale"], tT=tT)                 # (B, T, 4C) bf16

    # small decay tables for the SUB-step scan (all exponents >= 0 -> no overflow)
    Tc = _pick(T, 128)
    SUB = min(16, Tc)
    while Tc % SUB:
        SUB //= 2
    ea = -jnp.exp(params["time_decay"].astype(f32)).reshape(H, D)  # log(w) <= 0
    idx = jnp.arange(SUB, dtype=f32)
    wq = jnp.exp(ea[:, None, :] * (idx + 1.0)[None, :, None])          # (H,SUB,D)
    wk = jnp.exp(ea[:, None, :] * (SUB - 1.0 - idx)[None, :, None])    # (H,SUB,D)
    wm = jnp.exp(ea * SUB)[:, :, None]                                 # (H,D,1)
    wz = jnp.exp(ea * SUB)[:, None, :]                                 # (H,1,D)
    delta = jnp.maximum(idx[:, None] - idx[None, :], 0.0)              # (SUB,SUB)
    mask = (idx[:, None] >= idx[None, :]).astype(f32)
    wdd = jnp.exp(ea[:, None, None, :] * delta[None, :, :, None]) \
        * mask[None, :, :, None]                                       # (H,SUB,SUB,D)

    att = lnssm_attention(qkvg, wq, wk, wm, wz, wdd,
                          H=H, D=D, Tc=Tc, SUB=SUB)                    # (B,T,C) bf16

    x2 = matmul_fused(att.reshape(B * T, C), params["w_output"],
                      residual=x2, out_dtype=f32)

    # ---------------- ChannelMix branch: x = x + ffn(ln2(x)) ----------------
    xln2 = layernorm(x2, params["ln2_g"], params["ln2_b"], out_dtype=bf16)
    h = matmul_fused(xln2, params["w_ffn1"], activation="gelu", out_dtype=bf16)
    x2 = matmul_fused(h, params["w_ffn2"], residual=x2, out_dtype=f32)

    return x2.reshape(B, T, C)


def init_params(key, C, n_layer, layer_id):
    hidden = 4 * C
    ks = jax.random.split(key, 7)

    def lin(k, fan_in, fan_out, scale=0.05):
        # stored already transposed: y = x @ W   (nn.Linear is y = x @ W.T)
        return scale * jax.random.normal(k, (fan_in, fan_out), jnp.float32)

    ratio_0_to_1 = layer_id / (n_layer - 1)
    ratio_1_to_almost0 = 1.0 - layer_id / n_layer

    hpos = jnp.arange(C, dtype=jnp.float32)
    decay_speed = -5.0 + 8.0 * (hpos / (C - 1)) ** (0.7 + 1.3 * ratio_0_to_1)
    xinit = jnp.arange(C, dtype=jnp.float32) / C

    ones = jnp.ones((C,), jnp.float32)
    zeros = jnp.zeros((C,), jnp.float32)

    time_mix = jnp.stack([
        xinit ** ratio_1_to_almost0,                        # q
        xinit ** ratio_1_to_almost0,                        # k
        xinit ** ratio_1_to_almost0 + 0.3 * ratio_0_to_1,   # v
        xinit ** (0.5 * ratio_1_to_almost0),                # g
    ], axis=0)                                              # (4, C)

    w_qkvg = [lin(ks[i], C, C) for i in range(4)]           # q, k, v, g projections

    # fold the time-mix diagonals into the projection weights (host, once):
    #   y_p = xn @ (diag(m_p) W_p) + xx @ (diag(1-m_p) W_p)
    w_mix_a = jnp.concatenate(
        [time_mix[p][:, None] * w_qkvg[p] for p in range(4)], axis=1)      # (C, 4C)
    w_mix_b = jnp.concatenate(
        [(1.0 - time_mix[p])[:, None] * w_qkvg[p] for p in range(4)], axis=1)

    return dict(
        ln0_g=ones, ln0_b=zeros,
        ln1_g=ones, ln1_b=zeros,
        ln2_g=ones, ln2_b=zeros,
        rms_scale=ones,
        time_decay=decay_speed,
        # weights kept in bf16 in HBM (MXU-native); accumulation stays f32 in-kernel
        w_mix_a=w_mix_a.astype(jnp.bfloat16),
        w_mix_b=w_mix_b.astype(jnp.bfloat16),
        w_output=lin(ks[4], C, C).astype(jnp.bfloat16),
        w_ffn1=lin(ks[5], C, hidden).astype(jnp.bfloat16),
        w_ffn2=lin(ks[6], hidden, C).astype(jnp.bfloat16),
    )


if __name__ == "__main__":
    B, T, C = 2, 8, 32          # small demo shapes; C must be divisible by NUM_HEAD
    n_layer, layer_id = 4, 0    # layer 0 -> exercises ln0 too

    key = jax.random.PRNGKey(0)
    kx, kp = jax.random.split(key)
    x = jax.random.normal(kx, (B, T, C), jnp.float32)
    params = init_params(kp, C, n_layer, layer_id)

    y = block_forward(x, params, layer_id=layer_id, n_head=NUM_HEAD)
    y = jax.block_until_ready(y)

    assert y.shape == (B, T, C)
    assert bool(jnp.all(jnp.isfinite(y)))
    print("KERNEL_OK")
</pallas_src>

<mosaic_0001>
module attributes {stable_mosaic.version = 11 : i64} {
  func.func @_ln_kernel(%arg0: i32, %arg1: memref<16x32xf32, #tpu.memory_space<vmem>>, %arg2: memref<1x32xf32, #tpu.memory_space<vmem>>, %arg3: memref<1x32xf32, #tpu.memory_space<vmem>>, %arg4: memref<16x32xf32, #tpu.memory_space<vmem>>) attributes {dimension_semantics = [#tpu.dimension_semantics<parallel>], iteration_bounds = array<i64: 1>, scalar_prefetch = 0 : i64, scratch_operands = 0 : i64, tpu.core_type = #tpu.core_type<tc>, window_params = [{transform_indices = @transform_0, window_bounds = array<i64: 16, 32>}, {pipeline_mode = #tpu.pipeline_mode<synchronous>, transform_indices = @transform_1, window_bounds = array<i64: 1, 32>}, {pipeline_mode = #tpu.pipeline_mode<synchronous>, transform_indices = @transform_2, window_bounds = array<i64: 1, 32>}, {transform_indices = @transform_3, window_bounds = array<i64: 16, 32>}]} {
    %c0 = arith.constant 0 : index
    %c0_0 = arith.constant 0 : index
    %0 = vector.load %arg1[%c0, %c0_0] : memref<16x32xf32, #tpu.memory_space<vmem>>, vector<16x32xf32>
    %cst = arith.constant dense<0.000000e+00> : vector<16xf32>
    %1 = vector.multi_reduction <add>, %0, %cst [1] : vector<16x32xf32> to vector<16xf32>
    %2 = vector.shape_cast %1 : vector<16xf32> to vector<16x1xf32>
    %cst_1 = arith.constant 3.200000e+01 : f32
    %3 = vector.broadcast %cst_1 : f32 to vector<16x1xf32>
    %4 = arith.divf %2, %3 : vector<16x1xf32>
    %5 = vector.broadcast %4 : vector<16x1xf32> to vector<16x32xf32>
    %6 = arith.subf %0, %5 : vector<16x32xf32>
    %7 = arith.mulf %6, %6 : vector<16x32xf32>
    %cst_2 = arith.constant dense<0.000000e+00> : vector<16xf32>
    %8 = vector.multi_reduction <add>, %7, %cst_2 [1] : vector<16x32xf32> to vector<16xf32>
    %9 = vector.shape_cast %8 : vector<16xf32> to vector<16x1xf32>
    %cst_3 = arith.constant 3.200000e+01 : f32
    %10 = vector.broadcast %cst_3 : f32 to vector<16x1xf32>
    %11 = arith.divf %9, %10 : vector<16x1xf32>
    %12 = vector.broadcast %4 : vector<16x1xf32> to vector<16x32xf32>
    %13 = arith.subf %0, %12 : vector<16x32xf32>
    %cst_4 = arith.constant 9.99999974E-6 : f32
    %14 = vector.broadcast %cst_4 : f32 to vector<16x1xf32>
    %15 = arith.addf %11, %14 : vector<16x1xf32>
    %16 = math.rsqrt %15 : vector<16x1xf32>
    %17 = vector.broadcast %16 : vector<16x1xf32> to vector<16x32xf32>
    %18 = arith.mulf %13, %17 : vector<16x32xf32>
    %c0_5 = arith.constant 0 : index
    %c0_6 = arith.constant 0 : index
    %19 = vector.load %arg2[%c0_5, %c0_6] : memref<1x32xf32, #tpu.memory_space<vmem>>, vector<1x32xf32>
    %20 = vector.broadcast %19 : vector<1x32xf32> to vector<16x32xf32>
    %21 = arith.mulf %18, %20 : vector<16x32xf32>
    %c0_7 = arith.constant 0 : index
    %c0_8 = arith.constant 0 : index
    %22 = vector.load %arg3[%c0_7, %c0_8] : memref<1x32xf32, #tpu.memory_space<vmem>>, vector<1x32xf32>
    %23 = vector.broadcast %22 : vector<1x32xf32> to vector<16x32xf32>
    %24 = arith.addf %21, %23 : vector<16x32xf32>
    %c0_9 = arith.constant 0 : index
    %c0_10 = arith.constant 0 : index
    %25 = vector.load %arg4[%c0_9, %c0_10] : memref<16x32xf32, #tpu.memory_space<vmem>>, vector<16x32xf32>
    tpu.vector_store %arg4[%c0_9, %c0_10], %24 {strides = array<i32>} : memref<16x32xf32, #tpu.memory_space<vmem>>, vector<16x32xf32>,
    return
  }
  func.func @transform_0(%arg0: i32) -> (i32, i32) {
    %c0_i32 = arith.constant 0 : i32
    %c0_i32_0 = arith.constant 0 : i32
    return %arg0, %c0_i32 : i32, i32
  }
  func.func @transform_1(%arg0: i32) -> (i32, i32) {
    %c0_i32 = arith.constant 0 : i32
    %c0_i32_0 = arith.constant 0 : i32
    %c0_i32_1 = arith.constant 0 : i32
    return %c0_i32, %c0_i32_0 : i32, i32
  }
  func.func @transform_2(%arg0: i32) -> (i32, i32) {
    %c0_i32 = arith.constant 0 : i32
    %c0_i32_0 = arith.constant 0 : i32
    %c0_i32_1 = arith.constant 0 : i32
    return %c0_i32, %c0_i32_0 : i32, i32
  }
  func.func @transform_3(%arg0: i32) -> (i32, i32) {
    %c0_i32 = arith.constant 0 : i32
    %c0_i32_0 = arith.constant 0 : i32
    return %arg0, %c0_i32 : i32, i32
  }
}

module attributes {stable_mosaic.version = 11 : i64} {
  func.func @_qkvg_kernel(%arg0: i32, %arg1: i32, %arg2: memref<1x8x32xf32, #tpu.memory_space<vmem>>, %arg3: memref<1x1x1x32xf32, #tpu.memory_space<vmem>>, %arg4: memref<1x32xf32, #tpu.memory_space<vmem>>, %arg5: memref<1x32xf32, #tpu.memory_space<vmem>>, %arg6: memref<32x128xbf16, #tpu.memory_space<vmem>>, %arg7: memref<32x128xbf16, #tpu.memory_space<vmem>>, %arg8: memref<1x32xf32, #tpu.memory_space<vmem>>, %arg9: memref<1x8x128xbf16, #tpu.memory_space<vmem>>) attributes {dimension_semantics = [#tpu.dimension_semantics<parallel>, #tpu.dimension_semantics<parallel>], iteration_bounds = array<i64: 2, 1>, scalar_prefetch = 0 : i64, scratch_operands = 0 : i64, tpu.core_type = #tpu.core_type<tc>, window_params = [{transform_indices = @transform_0, window_bounds = array<i64: 1, 8, 32>}, {transform_indices = @transform_1, window_bounds = array<i64: 1, 1, 1, 32>}, {pipeline_mode = #tpu.pipeline_mode<synchronous>, transform_indices = @transform_2, window_bounds = array<i64: 1, 32>}, {pipeline_mode = #tpu.pipeline_mode<synchronous>, transform_indices = @transform_3, window_bounds = array<i64: 1, 32>}, {pipeline_mode = #tpu.pipeline_mode<synchronous>, transform_indices = @transform_4, window_bounds = array<i64: 32, 128>}, {pipeline_mode = #tpu.pipeline_mode<synchronous>, transform_indices = @transform_5, window_bounds = array<i64: 32, 128>}, {pipeline_mode = #tpu.pipeline_mode<synchronous>, transform_indices = @transform_6, window_bounds = array<i64: 1, 32>}, {transform_indices = @transform_7, window_bounds = array<i64: 1, 8, 128>}]} {
    %c0 = arith.constant 0 : index
    %c0_0 = arith.constant 0 : index
    %c0_1 = arith.constant 0 : index
    %0 = vector.load %arg2[%c0, %c0_0, %c0_1] : memref<1x8x32xf32, #tpu.memory_space<vmem>>, vector<1x8x32xf32>
    %1 = vector.shape_cast %0 : vector<1x8x32xf32> to vector<8x32xf32>
    %c0_2 = arith.constant 0 : index
    %c0_3 = arith.constant 0 : index
    %c0_4 = arith.constant 0 : index
    %c0_5 = arith.constant 0 : index
    %2 = vector.load %arg3[%c0_2, %c0_3, %c0_4, %c0_5] : memref<1x1x1x32xf32, #tpu.memory_space<vmem>>, vector<1x1x1x32xf32>
    %3 = vector.shape_cast %2 : vector<1x1x1x32xf32> to vector<1x32xf32>
    %c0_6 = arith.constant 0 : index
    %c0_7 = arith.constant 0 : index
    %4 = vector.load %arg4[%c0_6, %c0_7] : memref<1x32xf32, #tpu.memory_space<vmem>>, vector<1x32xf32>
    %c0_8 = arith.constant 0 : index
    %c0_9 = arith.constant 0 : index
    %5 = vector.load %arg5[%c0_8, %c0_9] : memref<1x32xf32, #tpu.memory_space<vmem>>, vector<1x32xf32>
    %cst = arith.constant dense<0.000000e+00> : vector<8xf32>
    %6 = vector.multi_reduction <add>, %1, %cst [1] : vector<8x32xf32> to vector<8xf32>
    %7 = vector.shape_cast %6 : vector<8xf32> to vector<8x1xf32>
    %cst_10 = arith.constant 3.200000e+01 : f32
    %8 = vector.broadcast %cst_10 : f32 to vector<8x1xf32>
    %9 = arith.divf %7, %8 : vector<8x1xf32>
    %10 = vector.broadcast %9 : vector<8x1xf32> to vector<8x32xf32>
    %11 = arith.subf %1, %10 : vector<8x32xf32>
    %12 = arith.mulf %11, %11 : vector<8x32xf32>
    %cst_11 = arith.constant dense<0.000000e+00> : vector<8xf32>
    %13 = vector.multi_reduction <add>, %12, %cst_11 [1] : vector<8x32xf32> to vector<8xf32>
    %14 = vector.shape_cast %13 : vector<8xf32> to vector<8x1xf32>
    %cst_12 = arith.constant 3.200000e+01 : f32
    %15 = vector.broadcast %cst_12 : f32 to vector<8x1xf32>
    %16 = arith.divf %14, %15 : vector<8x1xf32>
    %17 = vector.broadcast %9 : vector<8x1xf32> to vector<8x32xf32>
    %18 = arith.subf %1, %17 : vector<8x32xf32>
    %cst_13 = arith.constant 9.99999974E-6 : f32
    %19 = vector.broadcast %cst_13 : f32 to vector<8x1xf32>
    %20 = arith.addf %16, %19 : vector<8x1xf32>
    %21 = math.rsqrt %20 : vector<8x1xf32>
    %22 = vector.broadcast %21 : vector<8x1xf32> to vector<8x32xf32>
    %23 = arith.mulf %18, %22 : vector<8x32xf32>
    %24 = vector.broadcast %4 : vector<1x32xf32> to vector<8x32xf32>
    %25 = arith.mulf %23, %24 : vector<8x32xf32>
    %26 = vector.broadcast %5 : vector<1x32xf32> to vector<8x32xf32>
    %27 = arith.addf %25, %26 : vector<8x32xf32>
    %cst_14 = arith.constant dense<0.000000e+00> : vector<1xf32>
    %28 = vector.multi_reduction <add>, %3, %cst_14 [1] : vector<1x32xf32> to vector<1xf32>
    %29 = vector.shape_cast %28 : vector<1xf32> to vector<1x1xf32>
    %cst_15 = arith.constant 3.200000e+01 : f32
    %30 = vector.broadcast %cst_15 : f32 to vector<1x1xf32>
    %31 = arith.divf %29, %30 : vector<1x1xf32>
    %32 = vector.broadcast %31 : vector<1x1xf32> to vector<1x32xf32>
    %33 = arith.subf %3, %32 : vector<1x32xf32>
    %34 = arith.mulf %33, %33 : vector<1x32xf32>
    %cst_16 = arith.constant dense<0.000000e+00> : vector<1xf32>
    %35 = vector.multi_reduction <add>, %34, %cst_16 [1] : vector<1x32xf32> to vector<1xf32>
    %36 = vector.shape_cast %35 : vector<1xf32> to vector<1x1xf32>
    %cst_17 = arith.constant 3.200000e+01 : f32
    %37 = vector.broadcast %cst_17 : f32 to vector<1x1xf32>
    %38 = arith.divf %36, %37 : vector<1x1xf32>
    %39 = vector.broadcast %31 : vector<1x1xf32> to vector<1x32xf32>
    %40 = arith.subf %3, %39 : vector<1x32xf32>
    %cst_18 = arith.constant 9.99999974E-6 : f32
    %41 = vector.broadcast %cst_18 : f32 to vector<1x1xf32>
    %42 = arith.addf %38, %41 : vector<1x1xf32>
    %43 = math.rsqrt %42 : vector<1x1xf32>
    %44 = vector.broadcast %43 : vector<1x1xf32> to vector<1x32xf32>
    %45 = arith.mulf %40, %44 : vector<1x32xf32>
    %46 = arith.mulf %45, %4 : vector<1x32xf32>
    %47 = arith.addf %46, %5 : vector<1x32xf32>
    %c0_i32 = arith.constant 0 : i32
    %48 = arith.cmpi sgt, %arg1, %c0_i32 : i32
    %49 = arith.extui %48 : i1 to i32
    %50 = arith.sitofp %49 : i32 to f32
    %51 = vector.broadcast %50 : f32 to vector<1x32xf32>
    %52 = arith.mulf %47, %51 : vector<1x32xf32>
    %c1_i32 = arith.constant 1 : i32
    %53 = tpu.dynamic_rotate %27 by %c1_i32 dim 0 : vector<8x32xf32>, i32 -> vector<8x32xf32>
    %54 = tpu.iota {dimensions = array<i32: 0>} : vector<8x1xi32>
    %c0_i32_19 = arith.constant 0 : i32
    %55 = vector.broadcast %c0_i32_19 : i32 to vector<8x1xi32>
    %56 = arith.cmpi eq, %54, %55 : vector<8x1xi32>
    %57 = vector.shape_cast %56 : vector<8x1xi1> to vector<8x1xi1>
    %58 = vector.broadcast %57 : vector<8x1xi1> to vector<8x32xi1>
    %59 = vector.shape_cast %52 : vector<1x32xf32> to vector<1x32xf32>
    %60 = vector.broadcast %59 : vector<1x32xf32> to vector<8x32xf32>
    %61 = arith.select %58, %60, %53 : vector<8x32xi1>, vector<8x32xf32>
    %62 = arith.truncf %27 : vector<8x32xf32> to vector<8x32xbf16>
    %c0_20 = arith.constant 0 : index
    %c0_21 = arith.constant 0 : index
    %63 = vector.load %arg6[%c0_20, %c0_21] : memref<32x128xbf16, #tpu.memory_space<vmem>>, vector<32x128xbf16>
    %cst_22 = arith.constant dense<0.000000e+00> : vector<8x128xf32>
    %64 = tpu.matmul %62, %63, %cst_22 {dimension_numbers = #tpu.dot_dimension_numbers<[1], [0], [0], [1], [0, 0, 1, 1], [], []>} : vector<8x32xbf16>, vector<32x128xbf16>, vector<8x128xf32> -> vector<8x128xf32>
    %65 = arith.truncf %61 : vector<8x32xf32> to vector<8x32xbf16>
    %c0_23 = arith.constant 0 : index
    %c0_24 = arith.constant 0 : index
    %66 = vector.load %arg7[%c0_23, %c0_24] : memref<32x128xbf16, #tpu.memory_space<vmem>>, vector<32x128xbf16>
    %cst_25 = arith.constant dense<0.000000e+00> : vector<8x128xf32>
    %67 = tpu.matmul %65, %66, %cst_25 {dimension_numbers = #tpu.dot_dimension_numbers<[1], [0], [0], [1], [0, 0, 1, 1], [], []>} : vector<8x32xbf16>, vector<32x128xbf16>, vector<8x128xf32> -> vector<8x128xf32>
    %68 = arith.addf %64, %67 : vector<8x128xf32>
    %c0_26 = arith.constant 0 : index
    %c0_27 = arith.constant 0 : index
    %69 = vector.load %arg8[%c0_26, %c0_27] : memref<1x32xf32, #tpu.memory_space<vmem>>, vector<1x32xf32>
    %70 = vector.extract_strided_slice %68 {offsets = [0, 0], sizes = [8, 32], strides = [1, 1]} : vector<8x128xf32> to vector<8x32xf32>
    %71 = arith.mulf %70, %70 : vector<8x32xf32>
    %cst_28 = arith.constant dense<0.000000e+00> : vector<8xf32>
    %72 = vector.multi_reduction <add>, %71, %cst_28 [1] : vector<8x32xf32> to vector<8xf32>
    %73 = vector.shape_cast %72 : vector<8xf32> to vector<8x1xf32>
    %74 = math.sqrt %73 : vector<8x1xf32>
    %cst_29 = arith.constant 0.176776692 : f32
    %75 = vector.broadcast %cst_29 : f32 to vector<8x1xf32>
    %76 = arith.mulf %74, %75 : vector<8x1xf32>
    %cst_30 = arith.constant 9.99999993E-9 : f32
    %77 = vector.broadcast %cst_30 : f32 to vector<8x1xf32>
    %78 = arith.addf %76, %77 : vector<8x1xf32>
    %79 = vector.broadcast %78 : vector<8x1xf32> to vector<8x32xf32>
    %80 = arith.divf %70, %79 : vector<8x32xf32>
    %81 = vector.broadcast %69 : vector<1x32xf32> to vector<8x32xf32>
    %82 = arith.mulf %81, %80 : vector<8x32xf32>
    %83 = math.exp %82 : vector<8x32xf32>
    %84 = vector.extract_strided_slice %68 {offsets = [0, 32], sizes = [8, 32], strides = [1, 1]} : vector<8x128xf32> to vector<8x32xf32>
    %85 = arith.mulf %84, %84 : vector<8x32xf32>
    %cst_31 = arith.constant dense<0.000000e+00> : vector<8xf32>
    %86 = vector.multi_reduction <add>, %85, %cst_31 [1] : vector<8x32xf32> to vector<8xf32>
    %87 = vector.shape_cast %86 : vector<8xf32> to vector<8x1xf32>
    %88 = math.sqrt %87 : vector<8x1xf32>
    %cst_32 = arith.constant 0.176776692 : f32
    %89 = vector.broadcast %cst_32 : f32 to vector<8x1xf32>
    %90 = arith.mulf %88, %89 : vector<8x1xf32>
    %cst_33 = arith.constant 9.99999993E-9 : f32
    %91 = vector.broadcast %cst_33 : f32 to vector<8x1xf32>
    %92 = arith.addf %90, %91 : vector<8x1xf32>
    %93 = vector.broadcast %92 : vector<8x1xf32> to vector<8x32xf32>
    %94 = arith.divf %84, %93 : vector<8x32xf32>
    %95 = vector.broadcast %69 : vector<1x32xf32> to vector<8x32xf32>
    %96 = arith.mulf %95, %94 : vector<8x32xf32>
    %97 = math.exp %96 : vector<8x32xf32>
    %98 = vector.extract_strided_slice %68 {offsets = [0, 64], sizes = [8, 32], strides = [1, 1]} : vector<8x128xf32> to vector<8x32xf32>
    %99 = vector.extract_strided_slice %68 {offsets = [0, 96], sizes = [8, 32], strides = [1, 1]} : vector<8x128xf32> to vector<8x32xf32>
    %100 = arith.negf %99 : vector<8x32xf32>
    %101 = math.exp %100 : vector<8x32xf32>
    %cst_34 = arith.constant 1.000000e+00 : f32
    %102 = vector.broadcast %cst_34 : f32 to vector<8x32xf32>
    %103 = arith.addf %102, %101 : vector<8x32xf32>
    %104 = arith.divf %102, %103 : vector<8x32xf32>
    %105 = tpu.concatenate %83, %97, %98, %104 in 1 : vector<8x32xf32>, vector<8x32xf32>, vector<8x32xf32>, vector<8x32xf32> -> vector<8x128xf32>
    %106 = arith.truncf %105 : vector<8x128xf32> to vector<8x128xbf16>
    %c0_35 = arith.constant 0 : index
    %c0_36 = arith.constant 0 : index
    %c0_37 = arith.constant 0 : index
    %107 = vector.load %arg9[%c0_35, %c0_36, %c0_37] : memref<1x8x128xbf16, #tpu.memory_space<vmem>>, vector<1x8x128xbf16>
    %108 = vector.shape_cast %107 : vector<1x8x128xbf16> to vector<8x128xbf16>
    %109 = vector.shape_cast %106 : vector<8x128xbf16> to vector<1x8x128xbf16>
    tpu.vector_store %arg9[%c0_35, %c0_36, %c0_37], %109 {strides = array<i32>} : memref<1x8x128xbf16, #tpu.memory_space<vmem>>, vector<1x8x128xbf16>,
    return
  }
  func.func @transform_0(%arg0: i32, %arg1: i32) -> (i32, i32, i32) {
    %c0_i32 = arith.constant 0 : i32
    %c0_i32_0 = arith.constant 0 : i32
    return %arg0, %arg1, %c0_i32 : i32, i32, i32
  }
  func.func @transform_1(%arg0: i32, %arg1: i32) -> (i32, i32, i32, i32) {
    %c0_i32 = arith.constant 0 : i32
    %c0_i32_0 = arith.constant 0 : i32
    %c0_i32_1 = arith.constant 0 : i32
    return %arg0, %arg1, %c0_i32, %c0_i32_0 : i32, i32, i32, i32
  }
  func.func @transform_2(%arg0: i32, %arg1: i32) -> (i32, i32) {
    %c0_i32 = arith.constant 0 : i32
    %c0_i32_0 = arith.constant 0 : i32
    %c0_i32_1 = arith.constant 0 : i32
    return %c0_i32, %c0_i32_0 : i32, i32
  }
  func.func @transform_3(%arg0: i32, %arg1: i32) -> (i32, i32) {
    %c0_i32 = arith.constant 0 : i32
    %c0_i32_0 = arith.constant 0 : i32
    %c0_i32_1 = arith.constant 0 : i32
    return %c0_i32, %c0_i32_0 : i32, i32
  }
  func.func @transform_4(%arg0: i32, %arg1: i32) -> (i32, i32) {
    %c0_i32 = arith.constant 0 : i32
    %c0_i32_0 = arith.constant 0 : i32
    %c0_i32_1 = arith.constant 0 : i32
    return %c0_i32, %c0_i32_0 : i32, i32
  }
  func.func @transform_5(%arg0: i32, %arg1: i32) -> (i32, i32) {
    %c0_i32 = arith.constant 0 : i32
    %c0_i32_0 = arith.constant 0 : i32
    %c0_i32_1 = arith.constant 0 : i32
    return %c0_i32, %c0_i32_0 : i32, i32
  }
  func.func @transform_6(%arg0: i32, %arg1: i32) -> (i32, i32) {
    %c0_i32 = arith.constant 0 : i32
    %c0_i32_0 = arith.constant 0 : i32
    %c0_i32_1 = arith.constant 0 : i32
    return %c0_i32, %c0_i32_0 : i32, i32
  }
  func.func @transform_7(%arg0: i32, %arg1: i32) -> (i32, i32, i32) {
    %c0_i32 = arith.constant 0 : i32
    %c0_i32_0 = arith.constant 0 : i32
    return %arg0, %arg1, %c0_i32 : i32, i32, i32
  }
}

module attributes {stable_mosaic.version = 11 : i64} {
  func.func @_lnssm_kernel(%arg0: i32, %arg1: i32, %arg2: memref<1x8x128xbf16, #tpu.memory_space<vmem>>, %arg3: memref<4x8x8xf32, #tpu.memory_space<vmem>>, %arg4: memref<4x8x8xf32, #tpu.memory_space<vmem>>, %arg5: memref<4x8x1xf32, #tpu.memory_space<vmem>>, %arg6: memref<4x1x8xf32, #tpu.memory_space<vmem>>, %arg7: memref<4x8x8x8xf32, #tpu.memory_space<vmem>>, %arg8: memref<1x8x32xbf16, #tpu.memory_space<vmem>>, %arg9: memref<4x8x8xf32, #tpu.memory_space<vmem>>, %arg10: memref<4x1x8xf32, #tpu.memory_space<vmem>>) attributes {dimension_semantics = [#tpu.dimension_semantics<parallel>, #tpu.dimension_semantics<arbitrary>], iteration_bounds = array<i64: 2, 1>, scalar_prefetch = 0 : i64, scratch_operands = 2 : i64, tpu.core_type = #tpu.core_type<tc>, window_params = [{transform_indices = @transform_0, window_bounds = array<i64: 1, 8, 128>}, {pipeline_mode = #tpu.pipeline_mode<synchronous>, transform_indices = @transform_1, window_bounds = array<i64: 4, 8, 8>}, {pipeline_mode = #tpu.pipeline_mode<synchronous>, transform_indices = @transform_2, window_bounds = array<i64: 4, 8, 8>}, {pipeline_mode = #tpu.pipeline_mode<synchronous>, transform_indices = @transform_3, window_bounds = array<i64: 4, 8, 1>}, {pipeline_mode = #tpu.pipeline_mode<synchronous>, transform_indices = @transform_4, window_bounds = array<i64: 4, 1, 8>}, {pipeline_mode = #tpu.pipeline_mode<synchronous>, transform_indices = @transform_5, window_bounds = array<i64: 4, 8, 8, 8>}, {transform_indices = @transform_6, window_bounds = array<i64: 1, 8, 32>}]} {
    %c0_i32 = arith.constant 0 : i32
    %0 = arith.cmpi eq, %arg1, %c0_i32 : i32
    %1 = arith.extui %0 : i1 to i32
    %c0_i32_0 = arith.constant 0 : i32
    %2 = arith.cmpi ne, %1, %c0_i32_0 : i32
    scf.if %2 {
      %cst_142 = arith.constant 0.000000e+00 : f32
      %266 = vector.broadcast %cst_142 : f32 to vector<4x8x8xf32>
      %c0_143 = arith.constant 0 : index
      %c0_144 = arith.constant 0 : index
      %c0_145 = arith.constant 0 : index
      %267 = vector.load %arg9[%c0_143, %c0_144, %c0_145] : memref<4x8x8xf32, #tpu.memory_space<vmem>>, vector<4x8x8xf32>
      tpu.vector_store %arg9[%c0_143, %c0_144, %c0_145], %266 {strides = array<i32>} : memref<4x8x8xf32, #tpu.memory_space<vmem>>, vector<4x8x8xf32>,
      %cst_146 = arith.constant 0.000000e+00 : f32
      %268 = vector.broadcast %cst_146 : f32 to vector<4x1x8xf32>
      %c0_147 = arith.constant 0 : index
      %c0_148 = arith.constant 0 : index
      %c0_149 = arith.constant 0 : index
      %269 = vector.load %arg10[%c0_147, %c0_148, %c0_149] : memref<4x1x8xf32, #tpu.memory_space<vmem>>, vector<4x1x8xf32>
      tpu.vector_store %arg10[%c0_147, %c0_148, %c0_149], %268 {strides = array<i32>} : memref<4x1x8xf32, #tpu.memory_space<vmem>>, vector<4x1x8xf32>,
    } else {
    }
    %c0 = arith.constant 0 : index
    %c0_1 = arith.constant 0 : index
    %c0_2 = arith.constant 0 : index
    %3 = vector.load %arg2[%c0, %c0_1, %c0_2] : memref<1x8x128xbf16, #tpu.memory_space<vmem>>, vector<1x8x128xbf16>
    %4 = vector.shape_cast %3 : vector<1x8x128xbf16> to vector<8x128xbf16>
    %5 = vector.extract_strided_slice %4 {offsets = [0, 0], sizes = [8, 8], strides = [1, 1]} : vector<8x128xbf16> to vector<8x8xbf16>
    %6 = vector.extract_strided_slice %4 {offsets = [0, 32], sizes = [8, 8], strides = [1, 1]} : vector<8x128xbf16> to vector<8x8xbf16>
    %7 = vector.extract_strided_slice %4 {offsets = [0, 64], sizes = [8, 8], strides = [1, 1]} : vector<8x128xbf16> to vector<8x8xbf16>
    %8 = vector.extract_strided_slice %4 {offsets = [0, 96], sizes = [8, 8], strides = [1, 1]} : vector<8x128xbf16> to vector<8x8xbf16>
    %c0_3 = arith.constant 0 : index
    %c0_4 = arith.constant 0 : index
    %c0_5 = arith.constant 0 : index
    %9 = vector.load %arg3[%c0_3, %c0_4, %c0_5] : memref<4x8x8xf32, #tpu.memory_space<vmem>>, vector<1x8x8xf32>
    %10 = vector.shape_cast %9 : vector<1x8x8xf32> to vector<8x8xf32>
    %c0_6 = arith.constant 0 : index
    %c0_7 = arith.constant 0 : index
    %c0_8 = arith.constant 0 : index
    %11 = vector.load %arg4[%c0_6, %c0_7, %c0_8] : memref<4x8x8xf32, #tpu.memory_space<vmem>>, vector<1x8x8xf32>
    %12 = vector.shape_cast %11 : vector<1x8x8xf32> to vector<8x8xf32>
    %c0_9 = arith.constant 0 : index
    %c0_10 = arith.constant 0 : index
    %c0_11 = arith.constant 0 : index
    %13 = vector.load %arg5[%c0_9, %c0_10, %c0_11] : memref<4x8x1xf32, #tpu.memory_space<vmem>>, vector<1x8x1xf32>
    %14 = vector.shape_cast %13 : vector<1x8x1xf32> to vector<8x1xf32>
    %c0_12 = arith.constant 0 : index
    %c0_13 = arith.constant 0 : index
    %c0_14 = arith.constant 0 : index
    %15 = vector.load %arg6[%c0_12, %c0_13, %c0_14] : memref<4x1x8xf32, #tpu.memory_space<vmem>>, vector<1x1x8xf32>
    %16 = vector.shape_cast %15 : vector<1x1x8xf32> to vector<1x8xf32>
    %c0_15 = arith.constant 0 : index
    %c0_16 = arith.constant 0 : index
    %c0_17 = arith.constant 0 : index
    %c0_18 = arith.constant 0 : index
    %17 = vector.load %arg7[%c0_15, %c0_16, %c0_17, %c0_18] : memref<4x8x8x8xf32, #tpu.memory_space<vmem>>, vector<1x8x8x8xf32>
    %18 = vector.shape_cast %17 : vector<1x8x8x8xf32> to vector<8x8x8xf32>
    %c0_19 = arith.constant 0 : index
    %c0_20 = arith.constant 0 : index
    %c0_21 = arith.constant 0 : index
    %19 = vector.load %arg9[%c0_19, %c0_20, %c0_21] : memref<4x8x8xf32, #tpu.memory_space<vmem>>, vector<1x8x8xf32>
    %20 = vector.shape_cast %19 : vector<1x8x8xf32> to vector<8x8xf32>
    %c0_22 = arith.constant 0 : index
    %c0_23 = arith.constant 0 : index
    %c0_24 = arith.constant 0 : index
    %21 = vector.load %arg10[%c0_22, %c0_23, %c0_24] : memref<4x1x8xf32, #tpu.memory_space<vmem>>, vector<1x1x8xf32>
    %22 = vector.shape_cast %21 : vector<1x1x8xf32> to vector<1x8xf32>
    %23 = arith.extf %5 : vector<8x8xbf16> to vector<8x8xf32>
    %24 = arith.mulf %23, %10 : vector<8x8xf32>
    %25 = arith.extf %6 : vector<8x8xbf16> to vector<8x8xf32>
    %26 = arith.mulf %25, %12 : vector<8x8xf32>
    %27 = arith.truncf %24 : vector<8x8xf32> to vector<8x8xbf16>
    %28 = arith.truncf %20 : vector<8x8xf32> to vector<8x8xbf16>
    %cst = arith.constant dense<0.000000e+00> : vector<8x8xf32>
    %29 = tpu.matmul %27, %28, %cst {dimension_numbers = #tpu.dot_dimension_numbers<[1], [0], [0], [1], [0, 0, 1, 1], [], []>} : vector<8x8xbf16>, vector<8x8xbf16>, vector<8x8xf32> -> vector<8x8xf32>
    %30 = vector.broadcast %22 : vector<1x8xf32> to vector<8x8xf32>
    %31 = arith.mulf %24, %30 : vector<8x8xf32>
    %cst_25 = arith.constant dense<0.000000e+00> : vector<8xf32>
    %32 = vector.multi_reduction <add>, %31, %cst_25 [1] : vector<8x8xf32> to vector<8xf32>
    %33 = vector.shape_cast %32 : vector<8xf32> to vector<8x1xf32>
    %34 = vector.shape_cast %5 : vector<8x8xbf16> to vector<8x1x8xbf16>
    %35 = arith.extf %34 : vector<8x1x8xbf16> to vector<8x1x8xf32>
    %36 = vector.broadcast %35 : vector<8x1x8xf32> to vector<8x8x8xf32>
    %37 = arith.mulf %36, %18 : vector<8x8x8xf32>
    %38 = vector.shape_cast %6 : vector<8x8xbf16> to vector<1x8x8xbf16>
    %39 = arith.extf %38 : vector<1x8x8xbf16> to vector<1x8x8xf32>
    %40 = vector.broadcast %39 : vector<1x8x8xf32> to vector<8x8x8xf32>
    %41 = arith.mulf %37, %40 : vector<8x8x8xf32>
    %cst_26 = arith.constant dense<0.000000e+00> : vector<8x8xf32>
    %42 = vector.multi_reduction <add>, %41, %cst_26 [2] : vector<8x8x8xf32> to vector<8x8xf32>
    %43 = arith.truncf %42 : vector<8x8xf32> to vector<8x8xbf16>
    %cst_27 = arith.constant dense<0.000000e+00> : vector<8x8xf32>
    %44 = tpu.matmul %43, %7, %cst_27 {dimension_numbers = #tpu.dot_dimension_numbers<[1], [0], [0], [1], [0, 0, 1, 1], [], []>} : vector<8x8xbf16>, vector<8x8xbf16>, vector<8x8xf32> -> vector<8x8xf32>
    %45 = arith.addf %29, %44 : vector<8x8xf32>
    %cst_28 = arith.constant dense<0.000000e+00> : vector<8xf32>
    %46 = vector.multi_reduction <add>, %42, %cst_28 [1] : vector<8x8xf32> to vector<8xf32>
    %47 = vector.shape_cast %46 : vector<8xf32> to vector<8x1xf32>
    %48 = arith.addf %33, %47 : vector<8x1xf32>
    %49 = vector.broadcast %14 : vector<8x1xf32> to vector<8x8xf32>
    %50 = arith.mulf %49, %20 : vector<8x8xf32>
    %51 = arith.truncf %26 : vector<8x8xf32> to vector<8x8xbf16>
    %cst_29 = arith.constant dense<0.000000e+00> : vector<8x8xf32>
    %52 = tpu.matmul %51, %7, %cst_29 {dimension_numbers = #tpu.dot_dimension_numbers<[0], [0], [1], [1], [0, 1, 1, 1], [], []>} : vector<8x8xbf16>, vector<8x8xbf16>, vector<8x8xf32> -> vector<8x8xf32>
    %53 = arith.addf %50, %52 : vector<8x8xf32>
    %54 = arith.mulf %16, %22 : vector<1x8xf32>
    %cst_30 = arith.constant dense<0.000000e+00> : vector<8xf32>
    %55 = vector.multi_reduction <add>, %26, %cst_30 [0] : vector<8x8xf32> to vector<8xf32>
    %56 = vector.shape_cast %55 : vector<8xf32> to vector<1x8xf32>
    %57 = arith.addf %54, %56 : vector<1x8xf32>
    %c0_31 = arith.constant 0 : index
    %c0_32 = arith.constant 0 : index
    %c0_33 = arith.constant 0 : index
    %58 = vector.load %arg9[%c0_31, %c0_32, %c0_33] : memref<4x8x8xf32, #tpu.memory_space<vmem>>, vector<1x8x8xf32>
    %59 = vector.shape_cast %58 : vector<1x8x8xf32> to vector<8x8xf32>
    %60 = vector.shape_cast %53 : vector<8x8xf32> to vector<1x8x8xf32>
    tpu.vector_store %arg9[%c0_31, %c0_32, %c0_33], %60 {strides = array<i32>} : memref<4x8x8xf32, #tpu.memory_space<vmem>>, vector<1x8x8xf32>,
    %c0_34 = arith.constant 0 : index
    %c0_35 = arith.constant 0 : index
    %c0_36 = arith.constant 0 : index
    %61 = vector.load %arg10[%c0_34, %c0_35, %c0_36] : memref<4x1x8xf32, #tpu.memory_space<vmem>>, vector<1x1x8xf32>
    %62 = vector.shape_cast %61 : vector<1x1x8xf32> to vector<1x8xf32>
    %63 = vector.shape_cast %57 : vector<1x8xf32> to vector<1x1x8xf32>
    tpu.vector_store %arg10[%c0_34, %c0_35, %c0_36], %63 {strides = array<i32>} : memref<4x1x8xf32, #tpu.memory_space<vmem>>, vector<1x1x8xf32>,
    %64 = tpu.reciprocal %48 : vector<8x1xf32> -> vector<8x1xf32>
    %65 = arith.extf %8 : vector<8x8xbf16> to vector<8x8xf32>
    %66 = arith.mulf %65, %45 : vector<8x8xf32>
    %67 = vector.broadcast %64 : vector<8x1xf32> to vector<8x8xf32>
    %68 = arith.mulf %66, %67 : vector<8x8xf32>
    %69 = vector.extract_strided_slice %4 {offsets = [0, 8], sizes = [8, 8], strides = [1, 1]} : vector<8x128xbf16> to vector<8x8xbf16>
    %70 = vector.extract_strided_slice %4 {offsets = [0, 40], sizes = [8, 8], strides = [1, 1]} : vector<8x128xbf16> to vector<8x8xbf16>
    %71 = vector.extract_strided_slice %4 {offsets = [0, 72], sizes = [8, 8], strides = [1, 1]} : vector<8x128xbf16> to vector<8x8xbf16>
    %72 = vector.extract_strided_slice %4 {offsets = [0, 104], sizes = [8, 8], strides = [1, 1]} : vector<8x128xbf16> to vector<8x8xbf16>
    %c1 = arith.constant 1 : index
    %c0_37 = arith.constant 0 : index
    %c0_38 = arith.constant 0 : index
    %73 = vector.load %arg3[%c1, %c0_37, %c0_38] : memref<4x8x8xf32, #tpu.memory_space<vmem>>, vector<1x8x8xf32>
    %74 = vector.shape_cast %73 : vector<1x8x8xf32> to vector<8x8xf32>
    %c1_39 = arith.constant 1 : index
    %c0_40 = arith.constant 0 : index
    %c0_41 = arith.constant 0 : index
    %75 = vector.load %arg4[%c1_39, %c0_40, %c0_41] : memref<4x8x8xf32, #tpu.memory_space<vmem>>, vector<1x8x8xf32>
    %76 = vector.shape_cast %75 : vector<1x8x8xf32> to vector<8x8xf32>
    %c1_42 = arith.constant 1 : index
    %c0_43 = arith.constant 0 : index
    %c0_44 = arith.constant 0 : index
    %77 = vector.load %arg5[%c1_42, %c0_43, %c0_44] : memref<4x8x1xf32, #tpu.memory_space<vmem>>, vector<1x8x1xf32>
    %78 = vector.shape_cast %77 : vector<1x8x1xf32> to vector<8x1xf32>
    %c1_45 = arith.constant 1 : index
    %c0_46 = arith.constant 0 : index
    %c0_47 = arith.constant 0 : index
    %79 = vector.load %arg6[%c1_45, %c0_46, %c0_47] : memref<4x1x8xf32, #tpu.memory_space<vmem>>, vector<1x1x8xf32>
    %80 = vector.shape_cast %79 : vector<1x1x8xf32> to vector<1x8xf32>
    %c1_48 = arith.constant 1 : index
    %c0_49 = arith.constant 0 : index
    %c0_50 = arith.constant 0 : index
    %c0_51 = arith.constant 0 : index
    %81 = vector.load %arg7[%c1_48, %c0_49, %c0_50, %c0_51] : memref<4x8x8x8xf32, #tpu.memory_space<vmem>>, vector<1x8x8x8xf32>
    %82 = vector.shape_cast %81 : vector<1x8x8x8xf32> to vector<8x8x8xf32>
    %c1_52 = arith.constant 1 : index
    %c0_53 = arith.constant 0 : index
    %c0_54 = arith.constant 0 : index
    %83 = vector.load %arg9[%c1_52, %c0_53, %c0_54] : memref<4x8x8xf32, #tpu.memory_space<vmem>>, vector<1x8x8xf32>
    %84 = vector.shape_cast %83 : vector<1x8x8xf32> to vector<8x8xf32>
    %c1_55 = arith.constant 1 : index
    %c0_56 = arith.constant 0 : index
    %c0_57 = arith.constant 0 : index
    %85 = vector.load %arg10[%c1_55, %c0_56, %c0_57] : memref<4x1x8xf32, #tpu.memory_space<vmem>>, vector<1x1x8xf32>
    %86 = vector.shape_cast %85 : vector<1x1x8xf32> to vector<1x8xf32>
    %87 = arith.extf %69 : vector<8x8xbf16> to vector<8x8xf32>
    %88 = arith.mulf %87, %74 : vector<8x8xf32>
    %89 = arith.extf %70 : vector<8x8xbf16> to vector<8x8xf32>
    %90 = arith.mulf %89, %76 : vector<8x8xf32>
    %91 = arith.truncf %88 : vector<8x8xf32> to vector<8x8xbf16>
    %92 = arith.truncf %84 : vector<8x8xf32> to vector<8x8xbf16>
    %cst_58 = arith.constant dense<0.000000e+00> : vector<8x8xf32>
    %93 = tpu.matmul %91, %92, %cst_58 {dimension_numbers = #tpu.dot_dimension_numbers<[1], [0], [0], [1], [0, 0, 1, 1], [], []>} : vector<8x8xbf16>, vector<8x8xbf16>, vector<8x8xf32> -> vector<8x8xf32>
    %94 = vector.broadcast %86 : vector<1x8xf32> to vector<8x8xf32>
    %95 = arith.mulf %88, %94 : vector<8x8xf32>
    %cst_59 = arith.constant dense<0.000000e+00> : vector<8xf32>
    %96 = vector.multi_reduction <add>, %95, %cst_59 [1] : vector<8x8xf32> to vector<8xf32>
    %97 = vector.shape_cast %96 : vector<8xf32> to vector<8x1xf32>
    %98 = vector.shape_cast %69 : vector<8x8xbf16> to vector<8x1x8xbf16>
    %99 = arith.extf %98 : vector<8x1x8xbf16> to vector<8x1x8xf32>
    %100 = vector.broadcast %99 : vector<8x1x8xf32> to vector<8x8x8xf32>
    %101 = arith.mulf %100, %82 : vector<8x8x8xf32>
    %102 = vector.shape_cast %70 : vector<8x8xbf16> to vector<1x8x8xbf16>
    %103 = arith.extf %102 : vector<1x8x8xbf16> to vector<1x8x8xf32>
    %104 = vector.broadcast %103 : vector<1x8x8xf32> to vector<8x8x8xf32>
    %105 = arith.mulf %101, %104 : vector<8x8x8xf32>
    %cst_60 = arith.constant dense<0.000000e+00> : vector<8x8xf32>
    %106 = vector.multi_reduction <add>, %105, %cst_60 [2] : vector<8x8x8xf32> to vector<8x8xf32>
    %107 = arith.truncf %106 : vector<8x8xf32> to vector<8x8xbf16>
    %cst_61 = arith.constant dense<0.000000e+00> : vector<8x8xf32>
    %108 = tpu.matmul %107, %71, %cst_61 {dimension_numbers = #tpu.dot_dimension_numbers<[1], [0], [0], [1], [0, 0, 1, 1], [], []>} : vector<8x8xbf16>, vector<8x8xbf16>, vector<8x8xf32> -> vector<8x8xf32>
    %109 = arith.addf %93, %108 : vector<8x8xf32>
    %cst_62 = arith.constant dense<0.000000e+00> : vector<8xf32>
    %110 = vector.multi_reduction <add>, %106, %cst_62 [1] : vector<8x8xf32> to vector<8xf32>
    %111 = vector.shape_cast %110 : vector<8xf32> to vector<8x1xf32>
    %112 = arith.addf %97, %111 : vector<8x1xf32>
    %113 = vector.broadcast %78 : vector<8x1xf32> to vector<8x8xf32>
    %114 = arith.mulf %113, %84 : vector<8x8xf32>
    %115 = arith.truncf %90 : vector<8x8xf32> to vector<8x8xbf16>
    %cst_63 = arith.constant dense<0.000000e+00> : vector<8x8xf32>
    %116 = tpu.matmul %115, %71, %cst_63 {dimension_numbers = #tpu.dot_dimension_numbers<[0], [0], [1], [1], [0, 1, 1, 1], [], []>} : vector<8x8xbf16>, vector<8x8xbf16>, vector<8x8xf32> -> vector<8x8xf32>
    %117 = arith.addf %114, %116 : vector<8x8xf32>
    %118 = arith.mulf %80, %86 : vector<1x8xf32>
    %cst_64 = arith.constant dense<0.000000e+00> : vector<8xf32>
    %119 = vector.multi_reduction <add>, %90, %cst_64 [0] : vector<8x8xf32> to vector<8xf32>
    %120 = vector.shape_cast %119 : vector<8xf32> to vector<1x8xf32>
    %121 = arith.addf %118, %120 : vector<1x8xf32>
    %c1_65 = arith.constant 1 : index
    %c0_66 = arith.constant 0 : index
    %c0_67 = arith.constant 0 : index
    %122 = vector.load %arg9[%c1_65, %c0_66, %c0_67] : memref<4x8x8xf32, #tpu.memory_space<vmem>>, vector<1x8x8xf32>
    %123 = vector.shape_cast %122 : vector<1x8x8xf32> to vector<8x8xf32>
    %124 = vector.shape_cast %117 : vector<8x8xf32> to vector<1x8x8xf32>
    tpu.vector_store %arg9[%c1_65, %c0_66, %c0_67], %124 {strides = array<i32>} : memref<4x8x8xf32, #tpu.memory_space<vmem>>, vector<1x8x8xf32>,
    %c1_68 = arith.constant 1 : index
    %c0_69 = arith.constant 0 : index
    %c0_70 = arith.constant 0 : index
    %125 = vector.load %arg10[%c1_68, %c0_69, %c0_70] : memref<4x1x8xf32, #tpu.memory_space<vmem>>, vector<1x1x8xf32>
    %126 = vector.shape_cast %125 : vector<1x1x8xf32> to vector<1x8xf32>
    %127 = vector.shape_cast %121 : vector<1x8xf32> to vector<1x1x8xf32>
    tpu.vector_store %arg10[%c1_68, %c0_69, %c0_70], %127 {strides = array<i32>} : memref<4x1x8xf32, #tpu.memory_space<vmem>>, vector<1x1x8xf32>,
    %128 = tpu.reciprocal %112 : vector<8x1xf32> -> vector<8x1xf32>
    %129 = arith.extf %72 : vector<8x8xbf16> to vector<8x8xf32>
    %130 = arith.mulf %129, %109 : vector<8x8xf32>
    %131 = vector.broadcast %128 : vector<8x1xf32> to vector<8x8xf32>
    %132 = arith.mulf %130, %131 : vector<8x8xf32>
    %133 = vector.extract_strided_slice %4 {offsets = [0, 16], sizes = [8, 8], strides = [1, 1]} : vector<8x128xbf16> to vector<8x8xbf16>
    %134 = vector.extract_strided_slice %4 {offsets = [0, 48], sizes = [8, 8], strides = [1, 1]} : vector<8x128xbf16> to vector<8x8xbf16>
    %135 = vector.extract_strided_slice %4 {offsets = [0, 80], sizes = [8, 8], strides = [1, 1]} : vector<8x128xbf16> to vector<8x8xbf16>
    %136 = vector.extract_strided_slice %4 {offsets = [0, 112], sizes = [8, 8], strides = [1, 1]} : vector<8x128xbf16> to vector<8x8xbf16>
    %c2 = arith.constant 2 : index
    %c0_71 = arith.constant 0 : index
    %c0_72 = arith.constant 0 : index
    %137 = vector.load %arg3[%c2, %c0_71, %c0_72] : memref<4x8x8xf32, #tpu.memory_space<vmem>>, vector<1x8x8xf32>
    %138 = vector.shape_cast %137 : vector<1x8x8xf32> to vector<8x8xf32>
    %c2_73 = arith.constant 2 : index
    %c0_74 = arith.constant 0 : index
    %c0_75 = arith.constant 0 : index
    %139 = vector.load %arg4[%c2_73, %c0_74, %c0_75] : memref<4x8x8xf32, #tpu.memory_space<vmem>>, vector<1x8x8xf32>
    %140 = vector.shape_cast %139 : vector<1x8x8xf32> to vector<8x8xf32>
    %c2_76 = arith.constant 2 : index
    %c0_77 = arith.constant 0 : index
    %c0_78 = arith.constant 0 : index
    %141 = vector.load %arg5[%c2_76, %c0_77, %c0_78] : memref<4x8x1xf32, #tpu.memory_space<vmem>>, vector<1x8x1xf32>
    %142 = vector.shape_cast %141 : vector<1x8x1xf32> to vector<8x1xf32>
    %c2_79 = arith.constant 2 : index
    %c0_80 = arith.constant 0 : index
    %c0_81 = arith.constant 0 : index
    %143 = vector.load %arg6[%c2_79, %c0_80, %c0_81] : memref<4x1x8xf32, #tpu.memory_space<vmem>>, vector<1x1x8xf32>
    %144 = vector.shape_cast %143 : vector<1x1x8xf32> to vector<1x8xf32>
    %c2_82 = arith.constant 2 : index
    %c0_83 = arith.constant 0 : index
    %c0_84 = arith.constant 0 : index
    %c0_85 = arith.constant 0 : index
    %145 = vector.load %arg7[%c2_82, %c0_83, %c0_84, %c0_85] : memref<4x8x8x8xf32, #tpu.memory_space<vmem>>, vector<1x8x8x8xf32>
    %146 = vector.shape_cast %145 : vector<1x8x8x8xf32> to vector<8x8x8xf32>
    %c2_86 = arith.constant 2 : index
    %c0_87 = arith.constant 0 : index
    %c0_88 = arith.constant 0 : index
    %147 = vector.load %arg9[%c2_86, %c0_87, %c0_88] : memref<4x8x8xf32, #tpu.memory_space<vmem>>, vector<1x8x8xf32>
    %148 = vector.shape_cast %147 : vector<1x8x8xf32> to vector<8x8xf32>
    %c2_89 = arith.constant 2 : index
    %c0_90 = arith.constant 0 : index
    %c0_91 = arith.constant 0 : index
    %149 = vector.load %arg10[%c2_89, %c0_90, %c0_91] : memref<4x1x8xf32, #tpu.memory_space<vmem>>, vector<1x1x8xf32>
    %150 = vector.shape_cast %149 : vector<1x1x8xf32> to vector<1x8xf32>
    %151 = arith.extf %133 : vector<8x8xbf16> to vector<8x8xf32>
    %152 = arith.mulf %151, %138 : vector<8x8xf32>
    %153 = arith.extf %134 : vector<8x8xbf16> to vector<8x8xf32>
    %154 = arith.mulf %153, %140 : vector<8x8xf32>
    %155 = arith.truncf %152 : vector<8x8xf32> to vector<8x8xbf16>
    %156 = arith.truncf %148 : vector<8x8xf32> to vector<8x8xbf16>
    %cst_92 = arith.constant dense<0.000000e+00> : vector<8x8xf32>
    %157 = tpu.matmul %155, %156, %cst_92 {dimension_numbers = #tpu.dot_dimension_numbers<[1], [0], [0], [1], [0, 0, 1, 1], [], []>} : vector<8x8xbf16>, vector<8x8xbf16>, vector<8x8xf32> -> vector<8x8xf32>
    %158 = vector.broadcast %150 : vector<1x8xf32> to vector<8x8xf32>
    %159 = arith.mulf %152, %158 : vector<8x8xf32>
    %cst_93 = arith.constant dense<0.000000e+00> : vector<8xf32>
    %160 = vector.multi_reduction <add>, %159, %cst_93 [1] : vector<8x8xf32> to vector<8xf32>
    %161 = vector.shape_cast %160 : vector<8xf32> to vector<8x1xf32>
    %162 = vector.shape_cast %133 : vector<8x8xbf16> to vector<8x1x8xbf16>
    %163 = arith.extf %162 : vector<8x1x8xbf16> to vector<8x1x8xf32>
    %164 = vector.broadcast %163 : vector<8x1x8xf32> to vector<8x8x8xf32>
    %165 = arith.mulf %164, %146 : vector<8x8x8xf32>
    %166 = vector.shape_cast %134 : vector<8x8xbf16> to vector<1x8x8xbf16>
    %167 = arith.extf %166 : vector<1x8x8xbf16> to vector<1x8x8xf32>
    %168 = vector.broadcast %167 : vector<1x8x8xf32> to vector<8x8x8xf32>
    %169 = arith.mulf %165, %168 : vector<8x8x8xf32>
    %cst_94 = arith.constant dense<0.000000e+00> : vector<8x8xf32>
    %170 = vector.multi_reduction <add>, %169, %cst_94 [2] : vector<8x8x8xf32> to vector<8x8xf32>
    %171 = arith.truncf %170 : vector<8x8xf32> to vector<8x8xbf16>
    %cst_95 = arith.constant dense<0.000000e+00> : vector<8x8xf32>
    %172 = tpu.matmul %171, %135, %cst_95 {dimension_numbers = #tpu.dot_dimension_numbers<[1], [0], [0], [1], [0, 0, 1, 1], [], []>} : vector<8x8xbf16>, vector<8x8xbf16>, vector<8x8xf32> -> vector<8x8xf32>
    %173 = arith.addf %157, %172 : vector<8x8xf32>
    %cst_96 = arith.constant dense<0.000000e+00> : vector<8xf32>
    %174 = vector.multi_reduction <add>, %170, %cst_96 [1] : vector<8x8xf32> to vector<8xf32>
    %175 = vector.shape_cast %174 : vector<8xf32> to vector<8x1xf32>
    %176 = arith.addf %161, %175 : vector<8x1xf32>
    %177 = vector.broadcast %142 : vector<8x1xf32> to vector<8x8xf32>
    %178 = arith.mulf %177, %148 : vector<8x8xf32>
    %179 = arith.truncf %154 : vector<8x8xf32> to vector<8x8xbf16>
    %cst_97 = arith.constant dense<0.000000e+00> : vector<8x8xf32>
    %180 = tpu.matmul %179, %135, %cst_97 {dimension_numbers = #tpu.dot_dimension_numbers<[0], [0], [1], [1], [0, 1, 1, 1], [], []>} : vector<8x8xbf16>, vector<8x8xbf16>, vector<8x8xf32> -> vector<8x8xf32>
    %181 = arith.addf %178, %180 : vector<8x8xf32>
    %182 = arith.mulf %144, %150 : vector<1x8xf32>
    %cst_98 = arith.constant dense<0.000000e+00> : vector<8xf32>
    %183 = vector.multi_reduction <add>, %154, %cst_98 [0] : vector<8x8xf32> to vector<8xf32>
    %184 = vector.shape_cast %183 : vector<8xf32> to vector<1x8xf32>
    %185 = arith.addf %182, %184 : vector<1x8xf32>
    %c2_99 = arith.constant 2 : index
    %c0_100 = arith.constant 0 : index
    %c0_101 = arith.constant 0 : index
    %186 = vector.load %arg9[%c2_99, %c0_100, %c0_101] : memref<4x8x8xf32, #tpu.memory_space<vmem>>, vector<1x8x8xf32>
    %187 = vector.shape_cast %186 : vector<1x8x8xf32> to vector<8x8xf32>
    %188 = vector.shape_cast %181 : vector<8x8xf32> to vector<1x8x8xf32>
    tpu.vector_store %arg9[%c2_99, %c0_100, %c0_101], %188 {strides = array<i32>} : memref<4x8x8xf32, #tpu.memory_space<vmem>>, vector<1x8x8xf32>,
    %c2_102 = arith.constant 2 : index
    %c0_103 = arith.constant 0 : index
    %c0_104 = arith.constant 0 : index
    %189 = vector.load %arg10[%c2_102, %c0_103, %c0_104] : memref<4x1x8xf32, #tpu.memory_space<vmem>>, vector<1x1x8xf32>
    %190 = vector.shape_cast %189 : vector<1x1x8xf32> to vector<1x8xf32>
    %191 = vector.shape_cast %185 : vector<1x8xf32> to vector<1x1x8xf32>
    tpu.vector_store %arg10[%c2_102, %c0_103, %c0_104], %191 {strides = array<i32>} : memref<4x1x8xf32, #tpu.memory_space<vmem>>, vector<1x1x8xf32>,
    %192 = tpu.reciprocal %176 : vector<8x1xf32> -> vector<8x1xf32>
    %193 = arith.extf %136 : vector<8x8xbf16> to vector<8x8xf32>
    %194 = arith.mulf %193, %173 : vector<8x8xf32>
    %195 = vector.broadcast %192 : vector<8x1xf32> to vector<8x8xf32>
    %196 = arith.mulf %194, %195 : vector<8x8xf32>
    %197 = vector.extract_strided_slice %4 {offsets = [0, 24], sizes = [8, 8], strides = [1, 1]} : vector<8x128xbf16> to vector<8x8xbf16>
    %198 = vector.extract_strided_slice %4 {offsets = [0, 56], sizes = [8, 8], strides = [1, 1]} : vector<8x128xbf16> to vector<8x8xbf16>
    %199 = vector.extract_strided_slice %4 {offsets = [0, 88], sizes = [8, 8], strides = [1, 1]} : vector<8x128xbf16> to vector<8x8xbf16>
    %200 = vector.extract_strided_slice %4 {offsets = [0, 120], sizes = [8, 8], strides = [1, 1]} : vector<8x128xbf16> to vector<8x8xbf16>
    %c3 = arith.constant 3 : index
    %c0_105 = arith.constant 0 : index
    %c0_106 = arith.constant 0 : index
    %201 = vector.load %arg3[%c3, %c0_105, %c0_106] : memref<4x8x8xf32, #tpu.memory_space<vmem>>, vector<1x8x8xf32>
    %202 = vector.shape_cast %201 : vector<1x8x8xf32> to vector<8x8xf32>
    %c3_107 = arith.constant 3 : index
    %c0_108 = arith.constant 0 : index
    %c0_109 = arith.constant 0 : index
    %203 = vector.load %arg4[%c3_107, %c0_108, %c0_109] : memref<4x8x8xf32, #tpu.memory_space<vmem>>, vector<1x8x8xf32>
    %204 = vector.shape_cast %203 : vector<1x8x8xf32> to vector<8x8xf32>
    %c3_110 = arith.constant 3 : index
    %c0_111 = arith.constant 0 : index
    %c0_112 = arith.constant 0 : index
    %205 = vector.load %arg5[%c3_110, %c0_111, %c0_112] : memref<4x8x1xf32, #tpu.memory_space<vmem>>, vector<1x8x1xf32>
    %206 = vector.shape_cast %205 : vector<1x8x1xf32> to vector<8x1xf32>
    %c3_113 = arith.constant 3 : index
    %c0_114 = arith.constant 0 : index
    %c0_115 = arith.constant 0 : index
    %207 = vector.load %arg6[%c3_113, %c0_114, %c0_115] : memref<4x1x8xf32, #tpu.memory_space<vmem>>, vector<1x1x8xf32>
    %208 = vector.shape_cast %207 : vector<1x1x8xf32> to vector<1x8xf32>
    %c3_116 = arith.constant 3 : index
    %c0_117 = arith.constant 0 : index
    %c0_118 = arith.constant 0 : index
    %c0_119 = arith.constant 0 : index
    %209 = vector.load %arg7[%c3_116, %c0_117, %c0_118, %c0_119] : memref<4x8x8x8xf32, #tpu.memory_space<vmem>>, vector<1x8x8x8xf32>
    %210 = vector.shape_cast %209 : vector<1x8x8x8xf32> to vector<8x8x8xf32>
    %c3_120 = arith.constant 3 : index
    %c0_121 = arith.constant 0 : index
    %c0_122 = arith.constant 0 : index
    %211 = vector.load %arg9[%c3_120, %c0_121, %c0_122] : memref<4x8x8xf32, #tpu.memory_space<vmem>>, vector<1x8x8xf32>
    %212 = vector.shape_cast %211 : vector<1x8x8xf32> to vector<8x8xf32>
    %c3_123 = arith.constant 3 : index
    %c0_124 = arith.constant 0 : index
    %c0_125 = arith.constant 0 : index
    %213 = vector.load %arg10[%c3_123, %c0_124, %c0_125] : memref<4x1x8xf32, #tpu.memory_space<vmem>>, vector<1x1x8xf32>
    %214 = vector.shape_cast %213 : vector<1x1x8xf32> to vector<1x8xf32>
    %215 = arith.extf %197 : vector<8x8xbf16> to vector<8x8xf32>
    %216 = arith.mulf %215, %202 : vector<8x8xf32>
    %217 = arith.extf %198 : vector<8x8xbf16> to vector<8x8xf32>
    %218 = arith.mulf %217, %204 : vector<8x8xf32>
    %219 = arith.truncf %216 : vector<8x8xf32> to vector<8x8xbf16>
    %220 = arith.truncf %212 : vector<8x8xf32> to vector<8x8xbf16>
    %cst_126 = arith.constant dense<0.000000e+00> : vector<8x8xf32>
    %221 = tpu.matmul %219, %220, %cst_126 {dimension_numbers = #tpu.dot_dimension_numbers<[1], [0], [0], [1], [0, 0, 1, 1], [], []>} : vector<8x8xbf16>, vector<8x8xbf16>, vector<8x8xf32> -> vector<8x8xf32>
    %222 = vector.broadcast %214 : vector<1x8xf32> to vector<8x8xf32>
    %223 = arith.mulf %216, %222 : vector<8x8xf32>
    %cst_127 = arith.constant dense<0.000000e+00> : vector<8xf32>
    %224 = vector.multi_reduction <add>, %223, %cst_127 [1] : vector<8x8xf32> to vector<8xf32>
    %225 = vector.shape_cast %224 : vector<8xf32> to vector<8x1xf32>
    %226 = vector.shape_cast %197 : vector<8x8xbf16> to vector<8x1x8xbf16>
    %227 = arith.extf %226 : vector<8x1x8xbf16> to vector<8x1x8xf32>
    %228 = vector.broadcast %227 : vector<8x1x8xf32> to vector<8x8x8xf32>
    %229 = arith.mulf %228, %210 : vector<8x8x8xf32>
    %230 = vector.shape_cast %198 : vector<8x8xbf16> to vector<1x8x8xbf16>
    %231 = arith.extf %230 : vector<1x8x8xbf16> to vector<1x8x8xf32>
    %232 = vector.broadcast %231 : vector<1x8x8xf32> to vector<8x8x8xf32>
    %233 = arith.mulf %229, %232 : vector<8x8x8xf32>
    %cst_128 = arith.constant dense<0.000000e+00> : vector<8x8xf32>
    %234 = vector.multi_reduction <add>, %233, %cst_128 [2] : vector<8x8x8xf32> to vector<8x8xf32>
    %235 = arith.truncf %234 : vector<8x8xf32> to vector<8x8xbf16>
    %cst_129 = arith.constant dense<0.000000e+00> : vector<8x8xf32>
    %236 = tpu.matmul %235, %199, %cst_129 {dimension_numbers = #tpu.dot_dimension_numbers<[1], [0], [0], [1], [0, 0, 1, 1], [], []>} : vector<8x8xbf16>, vector<8x8xbf16>, vector<8x8xf32> -> vector<8x8xf32>
    %237 = arith.addf %221, %236 : vector<8x8xf32>
    %cst_130 = arith.constant dense<0.000000e+00> : vector<8xf32>
    %238 = vector.multi_reduction <add>, %234, %cst_130 [1] : vector<8x8xf32> to vector<8xf32>
    %239 = vector.shape_cast %238 : vector<8xf32> to vector<8x1xf32>
    %240 = arith.addf %225, %239 : vector<8x1xf32>
    %241 = vector.broadcast %206 : vector<8x1xf32> to vector<8x8xf32>
    %242 = arith.mulf %241, %212 : vector<8x8xf32>
    %243 = arith.truncf %218 : vector<8x8xf32> to vector<8x8xbf16>
    %cst_131 = arith.constant dense<0.000000e+00> : vector<8x8xf32>
    %244 = tpu.matmul %243, %199, %cst_131 {dimension_numbers = #tpu.dot_dimension_numbers<[0], [0], [1], [1], [0, 1, 1, 1], [], []>} : vector<8x8xbf16>, vector<8x8xbf16>, vector<8x8xf32> -> vector<8x8xf32>
    %245 = arith.addf %242, %244 : vector<8x8xf32>
    %246 = arith.mulf %208, %214 : vector<1x8xf32>
    %cst_132 = arith.constant dense<0.000000e+00> : vector<8xf32>
    %247 = vector.multi_reduction <add>, %218, %cst_132 [0] : vector<8x8xf32> to vector<8xf32>
    %248 = vector.shape_cast %247 : vector<8xf32> to vector<1x8xf32>
    %249 = arith.addf %246, %248 : vector<1x8xf32>
    %c3_133 = arith.constant 3 : index
    %c0_134 = arith.constant 0 : index
    %c0_135 = arith.constant 0 : index
    %250 = vector.load %arg9[%c3_133, %c0_134, %c0_135] : memref<4x8x8xf32, #tpu.memory_space<vmem>>, vector<1x8x8xf32>
    %251 = vector.shape_cast %250 : vector<1x8x8xf32> to vector<8x8xf32>
    %252 = vector.shape_cast %245 : vector<8x8xf32> to vector<1x8x8xf32>
    tpu.vector_store %arg9[%c3_133, %c0_134, %c0_135], %252 {strides = array<i32>} : memref<4x8x8xf32, #tpu.memory_space<vmem>>, vector<1x8x8xf32>,
    %c3_136 = arith.constant 3 : index
    %c0_137 = arith.constant 0 : index
    %c0_138 = arith.constant 0 : index
    %253 = vector.load %arg10[%c3_136, %c0_137, %c0_138] : memref<4x1x8xf32, #tpu.memory_space<vmem>>, vector<1x1x8xf32>
    %254 = vector.shape_cast %253 : vector<1x1x8xf32> to vector<1x8xf32>
    %255 = vector.shape_cast %249 : vector<1x8xf32> to vector<1x1x8xf32>
    tpu.vector_store %arg10[%c3_136, %c0_137, %c0_138], %255 {strides = array<i32>} : memref<4x1x8xf32, #tpu.memory_space<vmem>>, vector<1x1x8xf32>,
    %256 = tpu.reciprocal %240 : vector<8x1xf32> -> vector<8x1xf32>
    %257 = arith.extf %200 : vector<8x8xbf16> to vector<8x8xf32>
    %258 = arith.mulf %257, %237 : vector<8x8xf32>
    %259 = vector.broadcast %256 : vector<8x1xf32> to vector<8x8xf32>
    %260 = arith.mulf %258, %259 : vector<8x8xf32>
    %261 = tpu.concatenate %68, %132, %196, %260 in 1 : vector<8x8xf32>, vector<8x8xf32>, vector<8x8xf32>, vector<8x8xf32> -> vector<8x32xf32>
    %262 = arith.truncf %261 : vector<8x32xf32> to vector<8x32xbf16>
    %c0_139 = arith.constant 0 : index
    %c0_140 = arith.constant 0 : index
    %c0_141 = arith.constant 0 : index
    %263 = vector.load %arg8[%c0_139, %c0_140, %c0_141] : memref<1x8x32xbf16, #tpu.memory_space<vmem>>, vector<1x8x32xbf16>
    %264 = vector.shape_cast %263 : vector<1x8x32xbf16> to vector<8x32xbf16>
    %265 = vector.shape_cast %262 : vector<8x32xbf16> to vector<1x8x32xbf16>
    tpu.vector_store %arg8[%c0_139, %c0_140, %c0_141], %265 {strides = array<i32>} : memref<1x8x32xbf16, #tpu.memory_space<vmem>>, vector<1x8x32xbf16>,
    return
  }
  func.func @transform_0(%arg0: i32, %arg1: i32) -> (i32, i32, i32) {
    %c0_i32 = arith.constant 0 : i32
    %c0_i32_0 = arith.constant 0 : i32
    return %arg0, %arg1, %c0_i32 : i32, i32, i32
  }
  func.func @transform_1(%arg0: i32, %arg1: i32) -> (i32, i32, i32) {
    %c0_i32 = arith.constant 0 : i32
    %c0_i32_0 = arith.constant 0 : i32
    %c0_i32_1 = arith.constant 0 : i32
    %c0_i32_2 = arith.constant 0 : i32
    return %c0_i32, %c0_i32_0, %c0_i32_1 : i32, i32, i32
  }
  func.func @transform_2(%arg0: i32, %arg1: i32) -> (i32, i32, i32) {
    %c0_i32 = arith.constant 0 : i32
    %c0_i32_0 = arith.constant 0 : i32
    %c0_i32_1 = arith.constant 0 : i32
    %c0_i32_2 = arith.constant 0 : i32
    return %c0_i32, %c0_i32_0, %c0_i32_1 : i32, i32, i32
  }
  func.func @transform_3(%arg0: i32, %arg1: i32) -> (i32, i32, i32) {
    %c0_i32 = arith.constant 0 : i32
    %c0_i32_0 = arith.constant 0 : i32
    %c0_i32_1 = arith.constant 0 : i32
    %c0_i32_2 = arith.constant 0 : i32
    return %c0_i32, %c0_i32_0, %c0_i32_1 : i32, i32, i32
  }
  func.func @transform_4(%arg0: i32, %arg1: i32) -> (i32, i32, i32) {
    %c0_i32 = arith.constant 0 : i32
    %c0_i32_0 = arith.constant 0 : i32
    %c0_i32_1 = arith.constant 0 : i32
    %c0_i32_2 = arith.constant 0 : i32
    return %c0_i32, %c0_i32_0, %c0_i32_1 : i32, i32, i32
  }
  func.func @transform_5(%arg0: i32, %arg1: i32) -> (i32, i32, i32, i32) {
    %c0_i32 = arith.constant 0 : i32
    %c0_i32_0 = arith.constant 0 : i32
    %c0_i32_1 = arith.constant 0 : i32
    %c0_i32_2 = arith.constant 0 : i32
    %c0_i32_3 = arith.constant 0 : i32
    return %c0_i32, %c0_i32_0, %c0_i32_1, %c0_i32_2 : i32, i32, i32, i32
  }
  func.func @transform_6(%arg0: i32, %arg1: i32) -> (i32, i32, i32) {
    %c0_i32 = arith.constant 0 : i32
    %c0_i32_0 = arith.constant 0 : i32
    return %arg0, %arg1, %c0_i32 : i32, i32, i32
  }
}

module attributes {stable_mosaic.version = 11 : i64} {
  func.func @_mm_kernel(%arg0: i32, %arg1: i32, %arg2: i32, %arg3: memref<16x32xbf16, #tpu.memory_space<vmem>>, %arg4: memref<32x32xbf16, #tpu.memory_space<vmem>>, %arg5: memref<16x32xf32, #tpu.memory_space<vmem>>, %arg6: memref<16x32xf32, #tpu.memory_space<vmem>>, %arg7: memref<16x32xf32, #tpu.memory_space<vmem>>) attributes {dimension_semantics = [#tpu.dimension_semantics<parallel>, #tpu.dimension_semantics<parallel>, #tpu.dimension_semantics<arbitrary>], iteration_bounds = array<i64: 1, 1, 1>, scalar_prefetch = 0 : i64, scratch_operands = 1 : i64, tpu.core_type = #tpu.core_type<tc>, window_params = [{transform_indices = @transform_0, window_bounds = array<i64: 16, 32>}, {transform_indices = @transform_1, window_bounds = array<i64: 32, 32>}, {transform_indices = @transform_2, window_bounds = array<i64: 16, 32>}, {transform_indices = @transform_3, window_bounds = array<i64: 16, 32>}]} {
    %c0_i32 = arith.constant 0 : i32
    %0 = arith.cmpi eq, %arg2, %c0_i32 : i32
    %1 = arith.extui %0 : i1 to i32
    %c0_i32_0 = arith.constant 0 : i32
    %2 = arith.cmpi ne, %1, %c0_i32_0 : i32
    scf.if %2 {
      %cst_10 = arith.constant 0.000000e+00 : f32
      %12 = vector.broadcast %cst_10 : f32 to vector<16x32xf32>
      %c0_11 = arith.constant 0 : index
      %c0_12 = arith.constant 0 : index
      %13 = vector.load %arg7[%c0_11, %c0_12] : memref<16x32xf32, #tpu.memory_space<vmem>>, vector<16x32xf32>
      tpu.vector_store %arg7[%c0_11, %c0_12], %12 {strides = array<i32>} : memref<16x32xf32, #tpu.memory_space<vmem>>, vector<16x32xf32>,
    } else {
    }
    %c0 = arith.constant 0 : index
    %c0_1 = arith.constant 0 : index
    %3 = vector.load %arg7[%c0, %c0_1] : memref<16x32xf32, #tpu.memory_space<vmem>>, vector<16x32xf32>
    %c0_2 = arith.constant 0 : index
    %c0_3 = arith.constant 0 : index
    %4 = vector.load %arg3[%c0_2, %c0_3] : memref<16x32xbf16, #tpu.memory_space<vmem>>, vector<16x32xbf16>
    %c0_4 = arith.constant 0 : index
    %c0_5 = arith.constant 0 : index
    %5 = vector.load %arg4[%c0_4, %c0_5] : memref<32x32xbf16, #tpu.memory_space<vmem>>, vector<32x32xbf16>
    %cst = arith.constant dense<0.000000e+00> : vector<16x32xf32>
    %6 = tpu.matmul %4, %5, %cst {dimension_numbers = #tpu.dot_dimension_numbers<[1], [0], [0], [1], [0, 0, 1, 1], [], []>} : vector<16x32xbf16>, vector<32x32xbf16>, vector<16x32xf32> -> vector<16x32xf32>
    %7 = arith.addf %3, %6 : vector<16x32xf32>
    %c0_6 = arith.constant 0 : index
    %c0_7 = arith.constant 0 : index
    %8 = vector.load %arg7[%c0_6, %c0_7] : memref<16x32xf32, #tpu.memory_space<vmem>>, vector<16x32xf32>
    tpu.vector_store %arg7[%c0_6, %c0_7], %7 {strides = array<i32>} : memref<16x32xf32, #tpu.memory_space<vmem>>, vector<16x32xf32>,
    %c0_i32_8 = arith.constant 0 : i32
    %9 = arith.cmpi eq, %arg2, %c0_i32_8 : i32
    %10 = arith.extui %9 : i1 to i32
    %c0_i32_9 = arith.constant 0 : i32
    %11 = arith.cmpi ne, %10, %c0_i32_9 : i32
    scf.if %11 {
      %c0_10 = arith.constant 0 : index
      %c0_11 = arith.constant 0 : index
      %12 = vector.load %arg7[%c0_10, %c0_11] : memref<16x32xf32, #tpu.memory_space<vmem>>, vector<16x32xf32>
      %c0_12 = arith.constant 0 : index
      %c0_13 = arith.constant 0 : index
      %13 = vector.load %arg5[%c0_12, %c0_13] : memref<16x32xf32, #tpu.memory_space<vmem>>, vector<16x32xf32>
      %14 = arith.addf %12, %13 : vector<16x32xf32>
      %c0_14 = arith.constant 0 : index
      %c0_15 = arith.constant 0 : index
      %15 = vector.load %arg6[%c0_14, %c0_15] : memref<16x32xf32, #tpu.memory_space<vmem>>, vector<16x32xf32>
      tpu.vector_store %arg6[%c0_14, %c0_15], %14 {strides = array<i32>} : memref<16x32xf32, #tpu.memory_space<vmem>>, vector<16x32xf32>,
    } else {
    }
    return
  }
  func.func @transform_0(%arg0: i32, %arg1: i32, %arg2: i32) -> (i32, i32) {
    %c0_i32 = arith.constant 0 : i32
    return %arg0, %arg2 : i32, i32
  }
  func.func @transform_1(%arg0: i32, %arg1: i32, %arg2: i32) -> (i32, i32) {
    %c0_i32 = arith.constant 0 : i32
    return %arg2, %arg1 : i32, i32
  }
  func.func @transform_2(%arg0: i32, %arg1: i32, %arg2: i32) -> (i32, i32) {
    %c0_i32 = arith.constant 0 : i32
    return %arg0, %arg1 : i32, i32
  }
  func.func @transform_3(%arg0: i32, %arg1: i32, %arg2: i32) -> (i32, i32) {
    %c0_i32 = arith.constant 0 : i32
    return %arg0, %arg1 : i32, i32
  }
}

module attributes {stable_mosaic.version = 11 : i64} {
  func.func @_ln_kernel(%arg0: i32, %arg1: memref<16x32xf32, #tpu.memory_space<vmem>>, %arg2: memref<1x32xf32, #tpu.memory_space<vmem>>, %arg3: memref<1x32xf32, #tpu.memory_space<vmem>>, %arg4: memref<16x32xbf16, #tpu.memory_space<vmem>>) attributes {dimension_semantics = [#tpu.dimension_semantics<parallel>], iteration_bounds = array<i64: 1>, scalar_prefetch = 0 : i64, scratch_operands = 0 : i64, tpu.core_type = #tpu.core_type<tc>, window_params = [{transform_indices = @transform_0, window_bounds = array<i64: 16, 32>}, {pipeline_mode = #tpu.pipeline_mode<synchronous>, transform_indices = @transform_1, window_bounds = array<i64: 1, 32>}, {pipeline_mode = #tpu.pipeline_mode<synchronous>, transform_indices = @transform_2, window_bounds = array<i64: 1, 32>}, {transform_indices = @transform_3, window_bounds = array<i64: 16, 32>}]} {
    %c0 = arith.constant 0 : index
    %c0_0 = arith.constant 0 : index
    %0 = vector.load %arg1[%c0, %c0_0] : memref<16x32xf32, #tpu.memory_space<vmem>>, vector<16x32xf32>
    %cst = arith.constant dense<0.000000e+00> : vector<16xf32>
    %1 = vector.multi_reduction <add>, %0, %cst [1] : vector<16x32xf32> to vector<16xf32>
    %2 = vector.shape_cast %1 : vector<16xf32> to vector<16x1xf32>
    %cst_1 = arith.constant 3.200000e+01 : f32
    %3 = vector.broadcast %cst_1 : f32 to vector<16x1xf32>
    %4 = arith.divf %2, %3 : vector<16x1xf32>
    %5 = vector.broadcast %4 : vector<16x1xf32> to vector<16x32xf32>
    %6 = arith.subf %0, %5 : vector<16x32xf32>
    %7 = arith.mulf %6, %6 : vector<16x32xf32>
    %cst_2 = arith.constant dense<0.000000e+00> : vector<16xf32>
    %8 = vector.multi_reduction <add>, %7, %cst_2 [1] : vector<16x32xf32> to vector<16xf32>
    %9 = vector.shape_cast %8 : vector<16xf32> to vector<16x1xf32>
    %cst_3 = arith.constant 3.200000e+01 : f32
    %10 = vector.broadcast %cst_3 : f32 to vector<16x1xf32>
    %11 = arith.divf %9, %10 : vector<16x1xf32>
    %12 = vector.broadcast %4 : vector<16x1xf32> to vector<16x32xf32>
    %13 = arith.subf %0, %12 : vector<16x32xf32>
    %cst_4 = arith.constant 9.99999974E-6 : f32
    %14 = vector.broadcast %cst_4 : f32 to vector<16x1xf32>
    %15 = arith.addf %11, %14 : vector<16x1xf32>
    %16 = math.rsqrt %15 : vector<16x1xf32>
    %17 = vector.broadcast %16 : vector<16x1xf32> to vector<16x32xf32>
    %18 = arith.mulf %13, %17 : vector<16x32xf32>
    %c0_5 = arith.constant 0 : index
    %c0_6 = arith.constant 0 : index
    %19 = vector.load %arg2[%c0_5, %c0_6] : memref<1x32xf32, #tpu.memory_space<vmem>>, vector<1x32xf32>
    %20 = vector.broadcast %19 : vector<1x32xf32> to vector<16x32xf32>
    %21 = arith.mulf %18, %20 : vector<16x32xf32>
    %c0_7 = arith.constant 0 : index
    %c0_8 = arith.constant 0 : index
    %22 = vector.load %arg3[%c0_7, %c0_8] : memref<1x32xf32, #tpu.memory_space<vmem>>, vector<1x32xf32>
    %23 = vector.broadcast %22 : vector<1x32xf32> to vector<16x32xf32>
    %24 = arith.addf %21, %23 : vector<16x32xf32>
    %25 = arith.truncf %24 : vector<16x32xf32> to vector<16x32xbf16>
    %c0_9 = arith.constant 0 : index
    %c0_10 = arith.constant 0 : index
    %26 = vector.load %arg4[%c0_9, %c0_10] : memref<16x32xbf16, #tpu.memory_space<vmem>>, vector<16x32xbf16>
    tpu.vector_store %arg4[%c0_9, %c0_10], %25 {strides = array<i32>} : memref<16x32xbf16, #tpu.memory_space<vmem>>, vector<16x32xbf16>,
    return
  }
  func.func @transform_0(%arg0: i32) -> (i32, i32) {
    %c0_i32 = arith.constant 0 : i32
    %c0_i32_0 = arith.constant 0 : i32
    return %arg0, %c0_i32 : i32, i32
  }
  func.func @transform_1(%arg0: i32) -> (i32, i32) {
    %c0_i32 = arith.constant 0 : i32
    %c0_i32_0 = arith.constant 0 : i32
    %c0_i32_1 = arith.constant 0 : i32
    return %c0_i32, %c0_i32_0 : i32, i32
  }
  func.func @transform_2(%arg0: i32) -> (i32, i32) {
    %c0_i32 = arith.constant 0 : i32
    %c0_i32_0 = arith.constant 0 : i32
    %c0_i32_1 = arith.constant 0 : i32
    return %c0_i32, %c0_i32_0 : i32, i32
  }
  func.func @transform_3(%arg0: i32) -> (i32, i32) {
    %c0_i32 = arith.constant 0 : i32
    %c0_i32_0 = arith.constant 0 : i32
    return %arg0, %c0_i32 : i32, i32
  }
}

module attributes {stable_mosaic.version = 11 : i64} {
  func.func @_mm_kernel(%arg0: i32, %arg1: i32, %arg2: i32, %arg3: memref<16x128xbf16, #tpu.memory_space<vmem>>, %arg4: memref<128x32xbf16, #tpu.memory_space<vmem>>, %arg5: memref<16x32xf32, #tpu.memory_space<vmem>>, %arg6: memref<16x32xf32, #tpu.memory_space<vmem>>, %arg7: memref<16x32xf32, #tpu.memory_space<vmem>>) attributes {dimension_semantics = [#tpu.dimension_semantics<parallel>, #tpu.dimension_semantics<parallel>, #tpu.dimension_semantics<arbitrary>], iteration_bounds = array<i64: 1, 1, 1>, scalar_prefetch = 0 : i64, scratch_operands = 1 : i64, tpu.core_type = #tpu.core_type<tc>, window_params = [{transform_indices = @transform_0, window_bounds = array<i64: 16, 128>}, {transform_indices = @transform_1, window_bounds = array<i64: 128, 32>}, {transform_indices = @transform_2, window_bounds = array<i64: 16, 32>}, {transform_indices = @transform_3, window_bounds = array<i64: 16, 32>}]} {
    %c0_i32 = arith.constant 0 : i32
    %0 = arith.cmpi eq, %arg2, %c0_i32 : i32
    %1 = arith.extui %0 : i1 to i32
    %c0_i32_0 = arith.constant 0 : i32
    %2 = arith.cmpi ne, %1, %c0_i32_0 : i32
    scf.if %2 {
      %cst_10 = arith.constant 0.000000e+00 : f32
      %12 = vector.broadcast %cst_10 : f32 to vector<16x32xf32>
      %c0_11 = arith.constant 0 : index
      %c0_12 = arith.constant 0 : index
      %13 = vector.load %arg7[%c0_11, %c0_12] : memref<16x32xf32, #tpu.memory_space<vmem>>, vector<16x32xf32>
      tpu.vector_store %arg7[%c0_11, %c0_12], %12 {strides = array<i32>} : memref<16x32xf32, #tpu.memory_space<vmem>>, vector<16x32xf32>,
    } else {
    }
    %c0 = arith.constant 0 : index
    %c0_1 = arith.constant 0 : index
    %3 = vector.load %arg7[%c0, %c0_1] : memref<16x32xf32, #tpu.memory_space<vmem>>, vector<16x32xf32>
    %c0_2 = arith.constant 0 : index
    %c0_3 = arith.constant 0 : index
    %4 = vector.load %arg3[%c0_2, %c0_3] : memref<16x128xbf16, #tpu.memory_space<vmem>>, vector<16x128xbf16>
    %c0_4 = arith.constant 0 : index
    %c0_5 = arith.constant 0 : index
    %5 = vector.load %arg4[%c0_4, %c0_5] : memref<128x32xbf16, #tpu.memory_space<vmem>>, vector<128x32xbf16>
    %cst = arith.constant dense<0.000000e+00> : vector<16x32xf32>
    %6 = tpu.matmul %4, %5, %cst {dimension_numbers = #tpu.dot_dimension_numbers<[1], [0], [0], [1], [0, 0, 1, 1], [], []>} : vector<16x128xbf16>, vector<128x32xbf16>, vector<16x32xf32> -> vector<16x32xf32>
    %7 = arith.addf %3, %6 : vector<16x32xf32>
    %c0_6 = arith.constant 0 : index
    %c0_7 = arith.constant 0 : index
    %8 = vector.load %arg7[%c0_6, %c0_7] : memref<16x32xf32, #tpu.memory_space<vmem>>, vector<16x32xf32>
    tpu.vector_store %arg7[%c0_6, %c0_7], %7 {strides = array<i32>} : memref<16x32xf32, #tpu.memory_space<vmem>>, vector<16x32xf32>,
    %c0_i32_8 = arith.constant 0 : i32
    %9 = arith.cmpi eq, %arg2, %c0_i32_8 : i32
    %10 = arith.extui %9 : i1 to i32
    %c0_i32_9 = arith.constant 0 : i32
    %11 = arith.cmpi ne, %10, %c0_i32_9 : i32
    scf.if %11 {
      %c0_10 = arith.constant 0 : index
      %c0_11 = arith.constant 0 : index
      %12 = vector.load %arg7[%c0_10, %c0_11] : memref<16x32xf32, #tpu.memory_space<vmem>>, vector<16x32xf32>
      %c0_12 = arith.constant 0 : index
      %c0_13 = arith.constant 0 : index
      %13 = vector.load %arg5[%c0_12, %c0_13] : memref<16x32xf32, #tpu.memory_space<vmem>>, vector<16x32xf32>
      %14 = arith.addf %12, %13 : vector<16x32xf32>
      %c0_14 = arith.constant 0 : index
      %c0_15 = arith.constant 0 : index
      %15 = vector.load %arg6[%c0_14, %c0_15] : memref<16x32xf32, #tpu.memory_space<vmem>>, vector<16x32xf32>
      tpu.vector_store %arg6[%c0_14, %c0_15], %14 {strides = array<i32>} : memref<16x32xf32, #tpu.memory_space<vmem>>, vector<16x32xf32>,
    } else {
    }
    return
  }
  func.func @transform_0(%arg0: i32, %arg1: i32, %arg2: i32) -> (i32, i32) {
    %c0_i32 = arith.constant 0 : i32
    return %arg0, %arg2 : i32, i32
  }
  func.func @transform_1(%arg0: i32, %arg1: i32, %arg2: i32) -> (i32, i32) {
    %c0_i32 = arith.constant 0 : i32
    return %arg2, %arg1 : i32, i32
  }
  func.func @transform_2(%arg0: i32, %arg1: i32, %arg2: i32) -> (i32, i32) {
    %c0_i32 = arith.constant 0 : i32
    return %arg0, %arg1 : i32, i32
  }
  func.func @transform_3(%arg0: i32, %arg1: i32, %arg2: i32) -> (i32, i32) {
    %c0_i32 = arith.constant 0 : i32
    return %arg0, %arg1 : i32, i32
  }
}

module attributes {stable_mosaic.version = 11 : i64} {
  func.func @_mm_kernel(%arg0: i32, %arg1: i32, %arg2: i32, %arg3: memref<16x32xbf16, #tpu.memory_space<vmem>>, %arg4: memref<32x128xbf16, #tpu.memory_space<vmem>>, %arg5: memref<16x128xbf16, #tpu.memory_space<vmem>>, %arg6: memref<16x128xf32, #tpu.memory_space<vmem>>) attributes {dimension_semantics = [#tpu.dimension_semantics<parallel>, #tpu.dimension_semantics<parallel>, #tpu.dimension_semantics<arbitrary>], iteration_bounds = array<i64: 1, 1, 1>, scalar_prefetch = 0 : i64, scratch_operands = 1 : i64, tpu.core_type = #tpu.core_type<tc>, window_params = [{transform_indices = @transform_0, window_bounds = array<i64: 16, 32>}, {transform_indices = @transform_1, window_bounds = array<i64: 32, 128>}, {transform_indices = @transform_2, window_bounds = array<i64: 16, 128>}]} {
    %c0_i32 = arith.constant 0 : i32
    %0 = arith.cmpi eq, %arg2, %c0_i32 : i32
    %1 = arith.extui %0 : i1 to i32
    %c0_i32_0 = arith.constant 0 : i32
    %2 = arith.cmpi ne, %1, %c0_i32_0 : i32
    scf.if %2 {
      %cst_10 = arith.constant 0.000000e+00 : f32
      %12 = vector.broadcast %cst_10 : f32 to vector<16x128xf32>
      %c0_11 = arith.constant 0 : index
      %c0_12 = arith.constant 0 : index
      %13 = vector.load %arg6[%c0_11, %c0_12] : memref<16x128xf32, #tpu.memory_space<vmem>>, vector<16x128xf32>
      tpu.vector_store %arg6[%c0_11, %c0_12], %12 {strides = array<i32>} : memref<16x128xf32, #tpu.memory_space<vmem>>, vector<16x128xf32>,
    } else {
    }
    %c0 = arith.constant 0 : index
    %c0_1 = arith.constant 0 : index
    %3 = vector.load %arg6[%c0, %c0_1] : memref<16x128xf32, #tpu.memory_space<vmem>>, vector<16x128xf32>
    %c0_2 = arith.constant 0 : index
    %c0_3 = arith.constant 0 : index
    %4 = vector.load %arg3[%c0_2, %c0_3] : memref<16x32xbf16, #tpu.memory_space<vmem>>, vector<16x32xbf16>
    %c0_4 = arith.constant 0 : index
    %c0_5 = arith.constant 0 : index
    %5 = vector.load %arg4[%c0_4, %c0_5] : memref<32x128xbf16, #tpu.memory_space<vmem>>, vector<32x128xbf16>
    %cst = arith.constant dense<0.000000e+00> : vector<16x128xf32>
    %6 = tpu.matmul %4, %5, %cst {dimension_numbers = #tpu.dot_dimension_numbers<[1], [0], [0], [1], [0, 0, 1, 1], [], []>} : vector<16x32xbf16>, vector<32x128xbf16>, vector<16x128xf32> -> vector<16x128xf32>
    %7 = arith.addf %3, %6 : vector<16x128xf32>
    %c0_6 = arith.constant 0 : index
    %c0_7 = arith.constant 0 : index
    %8 = vector.load %arg6[%c0_6, %c0_7] : memref<16x128xf32, #tpu.memory_space<vmem>>, vector<16x128xf32>
    tpu.vector_store %arg6[%c0_6, %c0_7], %7 {strides = array<i32>} : memref<16x128xf32, #tpu.memory_space<vmem>>, vector<16x128xf32>,
    %c0_i32_8 = arith.constant 0 : i32
    %9 = arith.cmpi eq, %arg2, %c0_i32_8 : i32
    %10 = arith.extui %9 : i1 to i32
    %c0_i32_9 = arith.constant 0 : i32
    %11 = arith.cmpi ne, %10, %c0_i32_9 : i32
    scf.if %11 {
      %c0_10 = arith.constant 0 : index
      %c0_11 = arith.constant 0 : index
      %12 = vector.load %arg6[%c0_10, %c0_11] : memref<16x128xf32, #tpu.memory_space<vmem>>, vector<16x128xf32>
      %cst_12 = arith.constant 5.000000e-01 : f32
      %13 = vector.broadcast %cst_12 : f32 to vector<16x128xf32>
      %14 = arith.mulf %13, %12 : vector<16x128xf32>
      %cst_13 = arith.constant 0.707106769 : f32
      %15 = vector.broadcast %cst_13 : f32 to vector<16x128xf32>
      %16 = arith.mulf %12, %15 : vector<16x128xf32>
      %cst_14 = arith.constant 0.000000e+00 : f32
      %17 = vector.broadcast %cst_14 : f32 to vector<16x128xf32>
      %18 = arith.cmpf oge, %16, %17 : vector<16x128xf32>
      %cst_15 = arith.constant 1.000000e+00 : f32
      %cst_16 = arith.constant -1.000000e+00 : f32
      %19 = vector.broadcast %cst_15 : f32 to vector<16x128xf32>
      %20 = vector.broadcast %cst_16 : f32 to vector<16x128xf32>
      %21 = arith.select %18, %19, %20 : vector<16x128xi1>, vector<16x128xf32>
      %22 = math.absf %16 : vector<16x128xf32>
      %cst_17 = arith.constant 0.327591091 : f32
      %23 = vector.broadcast %cst_17 : f32 to vector<16x128xf32>
      %24 = arith.mulf %23, %22 : vector<16x128xf32>
      %cst_18 = arith.constant 1.000000e+00 : f32
      %25 = vector.broadcast %cst_18 : f32 to vector<16x128xf32>
      %26 = arith.addf %25, %24 : vector<16x128xf32>
      %cst_19 = arith.constant 1.000000e+00 : f32
      %27 = vector.broadcast %cst_19 : f32 to vector<16x128xf32>
      %28 = arith.divf %27, %26 : vector<16x128xf32>
      %cst_20 = arith.constant 1.06140542 : f32
      %29 = vector.broadcast %cst_20 : f32 to vector<16x128xf32>
      %30 = arith.mulf %29, %28 : vector<16x128xf32>
      %cst_21 = arith.constant -1.45315206 : f32
      %31 = vector.broadcast %cst_21 : f32 to vector<16x128xf32>
      %32 = arith.addf %30, %31 : vector<16x128xf32>
      %33 = arith.mulf %32, %28 : vector<16x128xf32>
      %cst_22 = arith.constant 1.42141378 : f32
      %34 = vector.broadcast %cst_22 : f32 to vector<16x128xf32>
      %35 = arith.addf %33, %34 : vector<16x128xf32>
      %36 = arith.mulf %35, %28 : vector<16x128xf32>
      %cst_23 = arith.constant -0.284496725 : f32
      %37 = vector.broadcast %cst_23 : f32 to vector<16x128xf32>
      %38 = arith.addf %36, %37 : vector<16x128xf32>
      %39 = arith.mulf %38, %28 : vector<16x128xf32>
      %cst_24 = arith.constant 0.254829586 : f32
      %40 = vector.broadcast %cst_24 : f32 to vector<16x128xf32>
      %41 = arith.addf %39, %40 : vector<16x128xf32>
      %42 = arith.mulf %41, %28 : vector<16x128xf32>
      %cst_25 = arith.constant 0.000000e+00 : f32
      %43 = vector.broadcast %cst_25 : f32 to vector<16x128xf32>
      %44 = arith.subf %43, %22 : vector<16x128xf32>
      %45 = arith.mulf %44, %22 : vector<16x128xf32>
      %46 = math.exp %45 : vector<16x128xf32>
      %47 = arith.mulf %42, %46 : vector<16x128xf32>
      %cst_26 = arith.constant 1.000000e+00 : f32
      %48 = vector.broadcast %cst_26 : f32 to vector<16x128xf32>
      %49 = arith.subf %48, %47 : vector<16x128xf32>
      %50 = arith.mulf %21, %49 : vector<16x128xf32>
      %cst_27 = arith.constant 1.000000e+00 : f32
      %51 = vector.broadcast %cst_27 : f32 to vector<16x128xf32>
      %52 = arith.addf %51, %50 : vector<16x128xf32>
      %53 = arith.mulf %14, %52 : vector<16x128xf32>
      %54 = arith.truncf %53 : vector<16x128xf32> to vector<16x128xbf16>
      %c0_28 = arith.constant 0 : index
      %c0_29 = arith.constant 0 : index
      %55 = vector.load %arg5[%c0_28, %c0_29] : memref<16x128xbf16, #tpu.memory_space<vmem>>, vector<16x128xbf16>
      tpu.vector_store %arg5[%c0_28, %c0_29], %54 {strides = array<i32>} : memref<16x128xbf16, #tpu.memory_space<vmem>>, vector<16x128xbf16>,
    } else {
    }
    return
  }
  func.func @transform_0(%arg0: i32, %arg1: i32, %arg2: i32) -> (i32, i32) {
    %c0_i32 = arith.constant 0 : i32
    return %arg0, %arg2 : i32, i32
  }
  func.func @transform_1(%arg0: i32, %arg1: i32, %arg2: i32) -> (i32, i32) {
    %c0_i32 = arith.constant 0 : i32
    return %arg2, %arg1 : i32, i32
  }
  func.func @transform_2(%arg0: i32, %arg1: i32, %arg2: i32) -> (i32, i32) {
    %c0_i32 = arith.constant 0 : i32
    return %arg0, %arg1 : i32, i32
  }
}

</mosaic_0001>

<bundles_post_ra>
// kernel: block_forward.7
= control target key start
LH: loop header
LB: loop body
LE: loop exit
PB: predicated region body
PF: predicated region fallthrough
CT: control target
= control target key end

     0   :  { %vm16_vm0 = vcmask 261120   ;;  %v95_v4 = vmov 32.0   ;;  %s140_s0 = inlined_call_operand.vmem [shape: f32[16,32], index: 0, kind: input, shape index: {}]   ;;  %s141_s1 = inlined_call_operand.vmem [shape: f32[1,32], index: 1, kind: input, shape index: {}]   ;;  %s142_s2 = inlined_call_operand.vmem [shape: f32[1,32], index: 2, kind: input, shape index: {}]   ;;  %s143_s3 = inlined_call_operand.vmem [shape: f32[16,32], index: 3, kind: output, shape index: {}]  }
   0x1   :  { %v14_v0 = vld [vmem:[%s140_s0] sm:$0xff]  ;;  %v15_v2 = vld [vmem:[%s140_s0 + $0x8] sm:$0xff]  ;;  %89 = vrcp.f32 %v95_v4 }
   0x2   :  { %v17_v1 = vsel %vm16_vm0, %v14_v0, 0.0  ;;  %v20_v3 = vsel %vm16_vm0, %v15_v2, 0.0  ;;  %v87_v35 = vld [vmem:[%s141_s1] ss:$0 sm:$0xff] }
   0x3   :  { %18 = vadd.xlane.f32.xlu0 %v17_v1  ;;  %v88_v38 = vld [vmem:[%s142_s2] ss:$0 sm:$0xff] }
   0x7   :  { %v90_v5 = vpop.eup %89 }
   0x8   :  { %v24_v6 = vmul.f32 32.0, %v90_v5  ;;  %vm28_vm1 = vweird.f32 %v90_v5 }
   0xa   :  { %v25_v7 = vsub.f32 1.0, %v24_v6 }
   0xb   :  { %21 = vadd.xlane.f32.xlu0 %v20_v3 }
   0xc   :  { %v26_v8 = vmul.f32 %v90_v5, %v25_v7 }
   0xe   :  { %v27_v9 = vadd.f32 %v90_v5, %v26_v8 }
  0x10   :  { %v29_v10 = vsel %vm28_vm1, %v90_v5, %v27_v9 }
  0x76   :  { %v19_v11 = vpop.xlane.xlu0 %18 }
  0x77   :  { %v30_v12 = vmul.f32 %v29_v10, %v19_v11 }
  0x79   :  { %v32_v13 = vsub.f32 %v14_v0, %v30_v12 }
  0x7b   :  { %v34_v14 = vmul.f32 %v32_v13, %v32_v13 }
  0x7d   :  { %v36_v15 = vsel %vm16_vm0, %v34_v14, 0.0 }
  0x7e   :  { %37 = vadd.xlane.f32.xlu1 %v36_v15  ;;  %v22_v16 = vpop.xlane.xlu0 %21 }
  0x7f   :  { %v31_v17 = vmul.f32 %v29_v10, %v22_v16 }
  0x81   :  { %v33_v18 = vsub.f32 %v15_v2, %v31_v17 }
  0x83   :  { %v35_v19 = vmul.f32 %v33_v18, %v33_v18 }
  0x85   :  { %v39_v20 = vsel %vm16_vm0, %v35_v19, 0.0 }
  0x86   :  { %40 = vadd.xlane.f32.xlu1 %v39_v20 }
  0xf1   :  { %v38_v21 = vpop.xlane.xlu1 %37 }
  0xf2   :  { %v42_v22 = vmul.f32 %v38_v21, %v29_v10 }
  0xf4   :  { %v44_v23 = vadd.f32 1e-05, %v42_v22 }
  0xf6   :  { %91 = vrsqrt.f32 %v44_v23  ;;  %vm52_vm3 = vweird.f32 %v44_v23 }
  0xf9   :  { %v41_v24 = vpop.xlane.xlu1 %40 }
  0xfa   :  { %v43_v25 = vmul.f32 %v41_v24, %v29_v10 }
  0xfc   :  { %v92_v26 = vpop.eup %91  ;;  %v45_v27 = vadd.f32 1e-05, %v43_v25 }
  0xfd   :  { %v47_v28 = vmul.f32 %v92_v26, %v44_v23  ;;  %vm53_vm2 = vweird.f32 %v92_v26 }
  0xfe   :  { %93 = vrsqrt.f32 %v45_v27  ;;  %vm54_vm4 = vmor %vm52_vm3, %vm53_vm2  ;;  %vm62_vm6 = vweird.f32 %v45_v27 }
  0xff   :  { %v48_v29 = vmul.f32 %v92_v26, %v47_v28 }
 0x101   :  { %v49_v30 = vmul.f32 0.5, %v48_v29 }
 0x103   :  { %v50_v31 = vsub.f32 1.5, %v49_v30 }
 0x104   :  { %v94_v32 = vpop.eup %93 }
 0x105   :  { %v51_v33 = vmul.f32 %v92_v26, %v50_v31  ;;  %v57_v34 = vmul.f32 %v94_v32, %v45_v27  ;;  %vm63_vm5 = vweird.f32 %v94_v32 }
 0x106   :  { %vm64_vm7 = vmor %vm62_vm6, %vm63_vm5 }
 0x107   :  { %v55_v36 = vsel %vm54_vm4, %v92_v26, %v51_v33  ;;  %v58_v37 = vmul.f32 %v94_v32, %v57_v34 }
 0x108   :  { %v66_v39 = vmul.f32 %v55_v36, %v32_v13 }
 0x109   :  { %v59_v40 = vmul.f32 0.5, %v58_v37 }
 0x10a   :  { %v72_v41 = vmul.f32 %v87_v35, %v66_v39 }
 0x10b   :  { %v60_v42 = vsub.f32 1.5, %v59_v40 }
 0x10c   :  { %v78_v43 = vadd.f32 %v88_v38, %v72_v41 }
 0x10d   :  { %v61_v44 = vmul.f32 %v94_v32, %v60_v42 }
 0x10e   :  { %80 = vst.msk [vmem:[%s143_s3] sm:$0xff] %vm16_vm0, %v78_v43 }
 0x10f   :  { %v65_v45 = vsel %vm64_vm7, %v94_v32, %v61_v44 }
 0x110   :  { %v67_v46 = vmul.f32 %v65_v45, %v33_v18 }
 0x112   :  { %v73_v47 = vmul.f32 %v87_v35, %v67_v46 }
 0x114   :  { %v79_v48 = vadd.f32 %v88_v38, %v73_v47 }
 0x116   :  { %81 = vst.msk [vmem:[%s143_s3 + $0x8] sm:$0xff] %vm16_vm0, %v79_v48 }

// kernel: block_forward.8
= control target key start
LH: loop header
LB: loop body
LE: loop exit
PB: predicated region body
PF: predicated region fallthrough
CT: control target
= control target key end

     0   :  { %s829_s24 = smov 0   ;;  %s831_s25 = smov 0   ;;  %s916_s0 = inlined_call_operand.vmem [shape: f32[2,8,32], index: 0, kind: input, shape index: {}]   ;;  %s917_s1 = inlined_call_operand.vmem [shape: f32[2,1,1,32], index: 1, kind: input, shape index: {}]   ;;  %s918_s2 = inlined_call_operand.vmem [shape: f32[1,32], index: 2, kind: input, shape index: {}]   ;;  %s919_s3 = inlined_call_operand.vmem [shape: f32[1,32], index: 3, kind: input, shape index: {}]   ;;  %s920_s4 = inlined_call_operand.vmem [shape: bf16[32,128], index: 4, kind: input, shape index: {}]   ;;  %s921_s5 = inlined_call_operand.vmem [shape: bf16[32,128], index: 5, kind: input, shape index: {}]   ;;  %s922_s6 = inlined_call_operand.vmem [shape: f32[1,32], index: 6, kind: input, shape index: {}]   ;;  %s923_s7 = inlined_call_operand.vmem [shape: bf16[2,8,128], index: 7, kind: output, shape index: {}]  }
   0x1   :  { %s833_s26 = smov 0  }
   0x2 LB: > { %s29_s27 = sadd.s32 1, %s780_s25  ;;  %p682_p0 = scmp.ge.s32.totalorder %s784_s26, 1  ;;  %s784_s26 = sphi %s833_s26, %s17_s26   ;;  %s780_s25 = sphi %s831_s25, %s925_s25   ;;  %s776_s24 = sphi %s829_s24, %s924_s24  }
   0x3   : > { %p31_p1 = scmp.ge.s32.totalorder %s29_s27, 2  ;;  %p268_p2 = scmp.lt.s32.totalorder %s784_s26, 3 }
   0x5   : > { %s927_s27 = smov (%p31_p1, %s29_s27), 0  ;;  %p269_p3 = pnand %p682_p0, %p268_p2 }
   0x6   : > { %p310_p4 = scmp.lt.s32.totalorder (!%p269_p3), %s776_s24, 1  ;;  %s787_s9 = smov (!%p269_p3), 96  }
   0x7   : > { %272 = sbr.rel (%p269_p3) target bundleno = 925 (0x39d), region = 48  ;;  %s788_s12 = smov (!%p269_p3), 32  }
   0xc   : > { %s929_s24 = smov (!%p310_p4, %s776_s24), 1  ;;  %vm373_vm0 = vcmask 253952   ;;  %vm335_vm1 = vcmask 261120   ;;  %v786_v4 = vmov 32.0   ;;  %v707_v21 = vld [vmem:[%s920_s4 + $0x8] sm:$0xff]  ;;  %v706_v24 = vld [vmem:[%s920_s4] sm:$0xff]  ;;  %v404_v48 = vlaneseq }
   0xd   : > { %s322_s30 = scalar_lea.vmem %s917_s1, %s929_s24  ;;  %s683_s8 = sshll.u32 %s929_s24, 3  ;;  %740 = vrcp.f32 %v786_v4  ;;  %v709_v22 = vld [vmem:[%s921_s5 + $0x8] sm:$0xff]  ;;  %472 = vmatpush.bf16.msra.mxu1 %v707_v21  ;;  %v708_v26 = vld [vmem:[%s921_s5] sm:$0xff] }
   0xe   : > { %v332_v0 = vld [vmem:[%s322_s30] sm:$0x1]  ;;  %s316_s11 = scalar_lea.vmem %s916_s0, %s683_s8  ;;  %444 = vmatpush.bf16.msra.mxu0 %v709_v22  ;;  %v405_v54 = vshrl.u32 %v404_v48, 7  ;;  %s684_s13 = sshll.u32 %s929_s24, 2 }
   0xf   : > { %v374_v1 = vsel %vm373_vm0, %v332_v0, 0.0  ;;  %v331_v2 = vld [vmem:[%s316_s11] sm:$0xff]  ;;  %s329_s16 = scalar_lea.vmem %s923_s7, %s684_s13 }
  0x10   : > { %375 = vadd.xlane.f32.xlu0 %v374_v1  ;;  %v336_v3 = vsel %vm335_vm1, %v331_v2, 0.0  ;;  %v333_v41 = vld [vmem:[%s918_s2] sm:$0x1]  ;;  %vm406_vm9 = vcmp.eq.s32.totalorder %v405_v54, 0 }
  0x11   : > { %473 = vmatpush.bf16.msra.mxu1 %v706_v24  ;;  %v334_v46 = vld [vmem:[%s919_s3] sm:$0x1] }
  0x12   : > { %445 = vmatpush.bf16.msra.mxu0 %v708_v26  ;;  %v737_v49 = vld [vmem:[%s918_s2] ss:$0 sm:$0xff] }
  0x13   : > { %v741_v5 = vpop.eup %740  ;;  %v738_v53 = vld [vmem:[%s919_s3] ss:$0 sm:$0xff] }
  0x14   : > { %v340_v6 = vmul.f32 32.0, %v741_v5  ;;  %vm344_vm2 = vweird.f32 %v741_v5 }
  0x16   : > { %v341_v7 = vsub.f32 1.0, %v340_v6 }
  0x18   : > { %337 = vadd.xlane.f32.xlu0 %v336_v3  ;;  %v342_v8 = vmul.f32 %v741_v5, %v341_v7 }
  0x1a   : > { %v343_v9 = vadd.f32 %v741_v5, %v342_v8 }
  0x1c   : > { %v345_v10 = vsel %vm344_vm2, %v741_v5, %v343_v9 }
  0x83   : > { %v376_v11 = vpop.xlane.xlu0 %375 }
  0x84   : > { %v377_v12 = vmul.f32 %v376_v11, %v345_v10 }
  0x86   : > { %v378_v13 = vsub.f32 %v332_v0, %v377_v12 }
  0x88   : > { %v379_v14 = vmul.f32 %v378_v13, %v378_v13 }
  0x8a   : > { %v380_v15 = vsel %vm373_vm0, %v379_v14, 0.0 }
  0x8b   : > { %381 = vadd.xlane.f32.xlu1 %v380_v15  ;;  %v338_v16 = vpop.xlane.xlu0 %337 }
  0x8c   : > { %v346_v17 = vmul.f32 %v345_v10, %v338_v16 }
  0x8e   : > { %v347_v18 = vsub.f32 %v331_v2, %v346_v17 }
  0x90   : > { %v348_v19 = vmul.f32 %v347_v18, %v347_v18 }
  0x92   : > { %v349_v20 = vsel %vm335_vm1, %v348_v19, 0.0 }
  0x93   : > { %350 = vadd.xlane.f32.xlu1 %v349_v20 }
  0xfe   : > { %v382_v23 = vpop.xlane.xlu1 %381 }
  0xff   : > { %v383_v25 = vmul.f32 %v382_v23, %v345_v10 }
 0x101   : > { %v384_v27 = vadd.f32 1e-05, %v383_v25 }
 0x103   : > { %742 = vrsqrt.f32 %v384_v27  ;;  %vm391_vm4 = vweird.f32 %v384_v27 }
 0x106   : > { %v351_v28 = vpop.xlane.xlu1 %350 }
 0x107   : > { %v352_v29 = vmul.f32 %v351_v28, %v345_v10 }
 0x109   : > { %v743_v30 = vpop.eup %742  ;;  %v353_v31 = vadd.f32 1e-05, %v352_v29 }
 0x10a   : > { %v386_v32 = vmul.f32 %v743_v30, %v384_v27  ;;  %vm392_vm3 = vweird.f32 %v743_v30 }
 0x10b   : > { %744 = vrsqrt.f32 %v353_v31  ;;  %vm393_vm5 = vmor %vm391_vm4, %vm392_vm3  ;;  %vm360_vm7 = vweird.f32 %v353_v31 }
 0x10c   : > { %v387_v33 = vmul.f32 %v743_v30, %v386_v32  ;;  %v739_v32 = vld [vmem:[%s922_s6] ss:$0 sm:$0xff] }
 0x10e   : > { %v388_v34 = vmul.f32 0.5, %v387_v33 }
 0x110   : > { %v389_v35 = vsub.f32 1.5, %v388_v34 }
 0x111   : > { %v745_v36 = vpop.eup %744 }
 0x112   : > { %v390_v37 = vmul.f32 %v743_v30, %v389_v35  ;;  %v355_v38 = vmul.f32 %v745_v36, %v353_v31  ;;  %vm361_vm6 = vweird.f32 %v745_v36 }
 0x113   : > { %vm362_vm8 = vmor %vm360_vm7, %vm361_vm6 }
 0x114   : > { %v394_v39 = vsel %vm393_vm5, %v743_v30, %v390_v37  ;;  %v356_v40 = vmul.f32 %v745_v36, %v355_v38 }
 0x115   : > { %v395_v42 = vmul.f32 %v394_v39, %v378_v13 }
 0x116   : > { %v357_v43 = vmul.f32 0.5, %v356_v40 }
 0x117   : > { %v396_v44 = vmul.f32 %v395_v42, %v333_v41 }
 0x118   : > { %v358_v45 = vsub.f32 1.5, %v357_v43 }
 0x119   : > { %v397_v50 = vadd.f32 %v396_v44, %v334_v46 }
 0x11a   : > { %v359_v47 = vmul.f32 %v745_v36, %v358_v45 }
 0x11b   : > { %v402_v56 = vmul.f32 0.0, %v397_v50 }
 0x11c   : > { %v363_v51 = vsel %vm362_vm8, %v745_v36, %v359_v47 }
 0x11d   : > { %v364_v52 = vmul.f32 %v363_v51, %v347_v18  ;;  %v410_v60 = vperm.slane %v402_v56, 0 }
 0x11f   : > { %v368_v55 = vmul.f32 %v737_v49, %v364_v52 }
 0x121   : > { %v372_v57 = vadd.f32 %v738_v53, %v368_v55 }
 0x123   : > { %v403_v58 = vrot.slane %v372_v57, 7  ;;  %v413_v59 = vpack.c.bf16 %v372_v57, %v372_v57 }
 0x125   : > { %702 = vmatmul.msk.bf16.vlgmr.msra.gmra.mxu1 %vm335_vm1, %v413_v59  ;;  %v412_v61 = vsel %vm406_vm9, %v410_v60, %v403_v58 }
 0x126   : > { %v418_v62 = vpack.c.bf16 %v412_v61, %v412_v61 }
 0x128   : > { %693 = vmatmul.msk.bf16.vlgmr.msra.gmra.mxu0 %vm335_vm1, %v418_v62 }
 0x1a2   : > { %v475_v63 = vpop.f32.mrf.mxu1 }
 0x1a5   : > { %v447_v0 = vpop.f32.mrf.mxu0 }
 0x1a6   : > { %v887_v1 = vadd.f32 %v475_v63, %v447_v0 }
 0x1a8   : > { %v480_v2 = vmul.f32 %v887_v1, %v887_v1  ;;  %v703_v51 = vmul.f32 -1.442695, %v887_v1 }
 0x1aa   : > { %v477_v3 = vpop.f32.mrf.mxu1  ;;  %520 = vrot.lane.b32.xlu2 %v480_v2, %s787_s9  ;;  %v481_v4 = vsel %vm335_vm1, %v480_v2, 0.0 }
 0x1ab   : > { %482 = vadd.xlane.f32.xlu0 %v481_v4 }
 0x1ad   : > { %v449_v5 = vpop.f32.mrf.mxu0 }
 0x204   : > { %v521_v6 = vpop.permute.xlu2 %520 }
 0x205   : > { %v523_v7 = vsel %vm335_vm1, %v521_v6, 0.0 }
 0x206   : > { %524 = vadd.xlane.f32.xlu2 %v523_v7 }
 0x21e   : > { %v483_v37 = vpop.xlane.xlu0 %482 }
 0x21f   : > { %vm491_vm0 = vcmp.eq.f32.partialorder %v483_v37, inf  ;;  %v494_v46 = vand.u32 2147483648, %v483_v37  ;;  %vm493_vm2 = vcmp.eq.f32.partialorder %v483_v37, 0.0 }
 0x279   : > { %v525_v8 = vpop.xlane.xlu2 %524 }
 0x27a   : > { %746 = vrsqrt.f32 %v525_v8  ;;  %vm533_vm10 = vcmp.eq.f32.partialorder %v525_v8, inf  ;;  %v536_v16 = vand.u32 2147483648, %v525_v8  ;;  %vm535_vm11 = vcmp.eq.f32.partialorder %v525_v8, 0.0 }
 0x280   : > { %v747_v9 = vpop.eup %746 }
 0x281   : > { %v527_v10 = vmul.f32 %v747_v9, %v525_v8 }
 0x283   : > { %v528_v11 = vmul.f32 %v747_v9, %v527_v10 }
 0x285   : > { %v529_v12 = vmul.f32 0.5, %v528_v11 }
 0x287   : > { %v530_v13 = vsub.f32 1.5, %v529_v12 }
 0x289   : > { %v531_v14 = vmul.f32 %v747_v9, %v530_v13 }
 0x28b   : > { %v532_v15 = vmul.f32 %v531_v14, %v525_v8 }
 0x28d   : > { %v534_v17 = vsel %vm533_vm10, %v525_v8, %v532_v15  ;;  %vm586_vm10 = vcmask 523264  }
 0x28e   : > { %v537_v18 = vsel %vm535_vm11, %v536_v16, %v534_v17  ;;  %vm588_vm11 = vcmask 785408  }
 0x28f   : > { %v538_v19 = vmul.f32 0.17677669, %v537_v18 }
 0x291   : > { %v539_v20 = vadd.f32 1e-08, %v538_v19 }
 0x293   : > { %748 = vrcp.f32 %v539_v20  ;;  %v551_v24 = vand.u32 2147483648, %v539_v20  ;;  %v549_v26 = vand.u32 2147483647, %v539_v20  ;;  %vm545_vm13 = vweird.f32 %v539_v20 }
 0x295   : > { %v552_v28 = vor.u32 1.1754944e-38, %v551_v24  ;;  %vm550_vm15 = vcmp.eq.f32.partialorder %v549_v26, 8.507059e+37 }
 0x299   : > { %v749_v21 = vpop.eup %748 }
 0x29a   : > { %v541_v22 = vmul.f32 %v749_v21, %v539_v20  ;;  %vm546_vm12 = vweird.f32 %v749_v21 }
 0x29b   : > { %vm547_vm14 = vmor %vm545_vm13, %vm546_vm12 }
 0x29c   : > { %v542_v23 = vsub.f32 1.0, %v541_v22 }
 0x29e   : > { %v543_v25 = vmul.f32 %v749_v21, %v542_v23 }
 0x2a0   : > { %v544_v27 = vadd.f32 %v749_v21, %v543_v25 }
 0x2a2   : > { %v548_v29 = vsel %vm547_vm14, %v749_v21, %v544_v27 }
 0x2a3   : > { %v553_v30 = vsel %vm550_vm15, %v552_v28, %v548_v29 }
 0x2a4   : > { %v554_v31 = vmul.f32 %v553_v30, %v887_v1 }
 0x2a6   : > { %556 = vrot.lane.b32.xlu1 %v554_v31, %s787_s9 }
 0x318   : > { %v557_v33 = vpop.permute.xlu1 %556 }
 0x319   : > { %v559_v34 = vmul.f32 %v739_v32, %v557_v33 }
 0x31b   : > { %v560_v35 = vmul.f32 1.442695, %v559_v34 }
 0x31d   : > { %750 = vpow2.f32 %v560_v35 }
 0x31e   : > { %752 = vrsqrt.f32 %v483_v37 }
 0x323   : > { %v751_v36 = vpop.eup %750 }
 0x324   : > { %582 = vrot.lane.b32.xlu0 %v751_v36, %s788_s12  ;;  %v753_v38 = vpop.eup %752 }
 0x325   : > { %v485_v39 = vmul.f32 %v753_v38, %v483_v37 }
 0x327   : > { %v486_v40 = vmul.f32 %v753_v38, %v485_v39 }
 0x329   : > { %v487_v41 = vmul.f32 0.5, %v486_v40 }
 0x32b   : > { %v488_v42 = vsub.f32 1.5, %v487_v41 }
 0x32d   : > { %v489_v43 = vmul.f32 %v753_v38, %v488_v42 }
 0x32f   : > { %v490_v44 = vmul.f32 %v489_v43, %v483_v37 }
 0x331   : > { %v492_v45 = vsel %vm491_vm0, %v483_v37, %v490_v44 }
 0x332   : > { %v495_v47 = vsel %vm493_vm2, %v494_v46, %v492_v45 }
 0x333   : > { %v496_v48 = vmul.f32 0.17677669, %v495_v47 }
 0x335   : > { %v497_v49 = vadd.f32 1e-08, %v496_v48 }
 0x337   : > { %754 = vrcp.f32 %v497_v49  ;;  %v509_v58 = vand.u32 2147483648, %v497_v49  ;;  %vm503_vm4 = vweird.f32 %v497_v49  ;;  %v507_v59 = vand.u32 2147483647, %v497_v49 }
 0x338   : > { %756 = vpow2.f32 %v703_v51 }
 0x339   : > { %v510_v61 = vor.u32 1.1754944e-38, %v509_v58  ;;  %vm508_vm6 = vcmp.eq.f32.partialorder %v507_v59, 8.507059e+37 }
 0x33d   : > { %v755_v50 = vpop.eup %754 }
 0x33e   : > { %v499_v52 = vmul.f32 %v755_v50, %v497_v49  ;;  %v757_v54 = vpop.eup %756  ;;  %vm504_vm3 = vweird.f32 %v755_v50 }
 0x33f   : > { %v565_v56 = vadd.f32 1.0, %v757_v54  ;;  %vm505_vm5 = vmor %vm503_vm4, %vm504_vm3 }
 0x340   : > { %v500_v53 = vsub.f32 1.0, %v499_v52 }
 0x341   : > { %758 = vrcp.f32 %v565_v56  ;;  %v577_v8 = vand.u32 2147483648, %v565_v56  ;;  %vm571_vm8 = vweird.f32 %v565_v56  ;;  %v575_v9 = vand.u32 2147483647, %v565_v56 }
 0x342   : > { %v501_v55 = vmul.f32 %v755_v50, %v500_v53 }
 0x343   : > { %v578_v12 = vor.u32 1.1754944e-38, %v577_v8  ;;  %vm576_vm12 = vcmp.eq.f32.partialorder %v575_v9, 8.507059e+37 }
 0x344   : > { %v502_v57 = vadd.f32 %v755_v50, %v501_v55 }
 0x346   : > { %v506_v60 = vsel %vm505_vm5, %v755_v50, %v502_v57 }
 0x347   : > { %v511_v62 = vsel %vm508_vm6, %v510_v61, %v506_v60  ;;  %v759_v63 = vpop.eup %758 }
 0x348   : > { %v512_v0 = vmul.f32 %v511_v62, %v887_v1  ;;  %v567_v2 = vmul.f32 %v759_v63, %v565_v56  ;;  %vm572_vm7 = vweird.f32 %v759_v63 }
 0x349   : > { %vm573_vm9 = vmor %vm571_vm8, %vm572_vm7 }
 0x34a   : > { %v516_v3 = vmul.f32 %v739_v32, %v512_v0  ;;  %v568_v4 = vsub.f32 1.0, %v567_v2 }
 0x34c   : > { %v517_v5 = vmul.f32 1.442695, %v516_v3  ;;  %v569_v6 = vmul.f32 %v759_v63, %v568_v4 }
 0x34e   : > { %760 = vpow2.f32 %v517_v5  ;;  %v570_v7 = vadd.f32 %v759_v63, %v569_v6 }
 0x350   : > { %v574_v10 = vsel %vm573_vm9, %v759_v63, %v570_v7 }
 0x351   : > { %v579_v15 = vsel %vm576_vm12, %v578_v12, %v574_v10 }
 0x354   : > { %v761_v11 = vpop.eup %760 }
 0x396   : > { %v583_v13 = vpop.permute.xlu0 %582 }
 0x397   : > { %v585_v14 = vsel %vm335_vm1, %v761_v11, %v583_v13 }
 0x398   : > { %v587_v16 = vsel %vm586_vm10, %v585_v14, %v887_v1 }
 0x399   : > { %v589_v17 = vsel %vm588_vm11, %v587_v16, %v579_v15 }
 0x39a   : > { %v590_v18 = vpack.c.bf16 %v589_v17, %v589_v17 }
 0x39c   : > { %591 = vst [vmem:[%s329_s16] sm:$0xf] %v590_v18 }
 0x39d PF: > { %s17_s26 = sadd.s32 1, %s784_s26   ;;  %s924_s24 = smov %s780_s25 }
 0x39e   : > { %p14_p5 = scmp.ge.s32.totalorder %s17_s26, 4   ;;  %s925_s25 = smov %s927_s27 }
 0x3a0   :  { %16 = sbr.rel (!%p14_p5) target bundleno = 2 (0x2), region = 81 }

// kernel: block_forward.10
= control target key start
LH: loop header
LB: loop body
LE: loop exit
PB: predicated region body
PF: predicated region fallthrough
CT: control target
= control target key end

     0   :  { %vm19_vm0 = vcmask 261120   ;;  %v101_v1 = vmov 0.0   ;;  %s150_s1 = inlined_call_operand.vmem [shape: bf16[32,32], index: 1, kind: input, shape index: {}]   ;;  %s151_s0 = inlined_call_operand.vmem [shape: bf16[16,32], index: 0, kind: input, shape index: {}]   ;;  %s152_s2 = inlined_call_operand.vmem [shape: f32[16,32], index: 2, kind: input, shape index: {}]   ;;  %s153_s3 = inlined_call_operand.vmem [shape: f32[16,32], index: 3, kind: output, shape index: {}]  }
   0x1   :  { %v99_v0 = vld [vmem:[%s150_s1 + $0x8] sm:$0xff]  ;;  %20 = vst.msk [vmem:[#allocation2] sm:$0xff] %vm19_vm0, %v101_v1  ;;  %v98_v2 = vld [vmem:[%s150_s1] sm:$0xff] }
   0x2   :  { %21 = vst.msk [vmem:[#allocation2 + $0x8] sm:$0xff] %vm19_vm0, %v101_v1  ;;  %57 = vmatpush.bf16.msra.mxu0 %v99_v0  ;;  %v97_v3 = vld [vmem:[%s151_s0] sm:$0xff]  ;;  %v75_v13 = vld [vmem:[%s152_s2 + $0x8] sm:$0xff] }
   0x3   :  { %v74_v8 = vld [vmem:[%s152_s2] sm:$0xff] }
   0x6   :  { %58 = vmatpush.bf16.msra.mxu0 %v98_v2 }
   0x8   :  { %v22_v4 = vld [vmem:[#allocation2] sm:$0xff] }
   0x9   :  { %96 = vmatmul.msk.bf16.vlgmr.msra.gmra.mxu0 %vm19_vm0, %v97_v3  ;;  %v23_v7 = vld [vmem:[#allocation2 + $0x8] sm:$0xff] }
  0x86   :  { %v60_v5 = vpop.f32.mrf.mxu0 }
  0x87   :  { %v65_v6 = vadd.f32 %v60_v5, %v22_v4 }
  0x89   :  { %67 = vst.msk [vmem:[#allocation2] sm:$0xff] %vm19_vm0, %v65_v6 }
  0x8e   :  { %v62_v9 = vpop.f32.mrf.mxu0 }
  0x8f   :  { %v66_v10 = vadd.f32 %v62_v9, %v23_v7 }
  0x90   :  { %v72_v11 = vld [vmem:[#allocation2] sm:$0xff] }
  0x91   :  { %v76_v12 = vadd.f32 %v74_v8, %v72_v11  ;;  %68 = vst.msk [vmem:[#allocation2 + $0x8] sm:$0xff] %vm19_vm0, %v66_v10 }
  0x93   :  { %78 = vst.msk [vmem:[%s153_s3] sm:$0xff] %vm19_vm0, %v76_v12 }
  0x98   :  { %v73_v14 = vld [vmem:[#allocation2 + $0x8] sm:$0xff] }
  0x99   :  { %v77_v15 = vadd.f32 %v75_v13, %v73_v14 }
  0x9b   :  { %79 = vst.msk [vmem:[%s153_s3 + $0x8] sm:$0xff] %vm19_vm0, %v77_v15 }

// kernel: block_forward.11
= control target key start
LH: loop header
LB: loop body
LE: loop exit
PB: predicated region body
PF: predicated region fallthrough
CT: control target
= control target key end

     0   :  { %vm16_vm0 = vcmask 261120   ;;  %v98_v4 = vmov 32.0   ;;  %vm82_vm6 = vcmask 257024   ;;  %s141_s0 = inlined_call_operand.vmem [shape: f32[16,32], index: 0, kind: input, shape index: {}]   ;;  %s142_s1 = inlined_call_operand.vmem [shape: f32[1,32], index: 1, kind: input, shape index: {}]   ;;  %s143_s2 = inlined_call_operand.vmem [shape: f32[1,32], index: 2, kind: input, shape index: {}]   ;;  %s144_s3 = inlined_call_operand.vmem [shape: bf16[16,32], index: 3, kind: output, shape index: {}]  }
   0x1   :  { %v14_v0 = vld [vmem:[%s141_s0] sm:$0xff]  ;;  %v15_v2 = vld [vmem:[%s141_s0 + $0x8] sm:$0xff]  ;;  %92 = vrcp.f32 %v98_v4 }
   0x2   :  { %v17_v1 = vsel %vm16_vm0, %v14_v0, 0.0  ;;  %v20_v3 = vsel %vm16_vm0, %v15_v2, 0.0  ;;  %v90_v35 = vld [vmem:[%s142_s1] ss:$0 sm:$0xff] }
   0x3   :  { %18 = vadd.xlane.f32.xlu0 %v17_v1  ;;  %v91_v38 = vld [vmem:[%s143_s2] ss:$0 sm:$0xff] }
   0x7   :  { %v93_v5 = vpop.eup %92 }
   0x8   :  { %v24_v6 = vmul.f32 32.0, %v93_v5  ;;  %vm28_vm1 = vweird.f32 %v93_v5 }
   0xa   :  { %v25_v7 = vsub.f32 1.0, %v24_v6 }
   0xb   :  { %21 = vadd.xlane.f32.xlu0 %v20_v3 }
   0xc   :  { %v26_v8 = vmul.f32 %v93_v5, %v25_v7 }
   0xe   :  { %v27_v9 = vadd.f32 %v93_v5, %v26_v8 }
  0x10   :  { %v29_v10 = vsel %vm28_vm1, %v93_v5, %v27_v9 }
  0x76   :  { %v19_v11 = vpop.xlane.xlu0 %18 }
  0x77   :  { %v30_v12 = vmul.f32 %v29_v10, %v19_v11 }
  0x79   :  { %v32_v13 = vsub.f32 %v14_v0, %v30_v12 }
  0x7b   :  { %v34_v14 = vmul.f32 %v32_v13, %v32_v13 }
  0x7d   :  { %v36_v15 = vsel %vm16_vm0, %v34_v14, 0.0 }
  0x7e   :  { %37 = vadd.xlane.f32.xlu1 %v36_v15  ;;  %v22_v16 = vpop.xlane.xlu0 %21 }
  0x7f   :  { %v31_v17 = vmul.f32 %v29_v10, %v22_v16 }
  0x81   :  { %v33_v18 = vsub.f32 %v15_v2, %v31_v17 }
  0x83   :  { %v35_v19 = vmul.f32 %v33_v18, %v33_v18 }
  0x85   :  { %v39_v20 = vsel %vm16_vm0, %v35_v19, 0.0 }
  0x86   :  { %40 = vadd.xlane.f32.xlu1 %v39_v20 }
  0xf1   :  { %v38_v21 = vpop.xlane.xlu1 %37 }
  0xf2   :  { %v42_v22 = vmul.f32 %v38_v21, %v29_v10 }
  0xf4   :  { %v44_v23 = vadd.f32 1e-05, %v42_v22 }
  0xf6   :  { %94 = vrsqrt.f32 %v44_v23  ;;  %vm52_vm3 = vweird.f32 %v44_v23 }
  0xf9   :  { %v41_v24 = vpop.xlane.xlu1 %40 }
  0xfa   :  { %v43_v25 = vmul.f32 %v41_v24, %v29_v10 }
  0xfc   :  { %v95_v26 = vpop.eup %94  ;;  %v45_v27 = vadd.f32 1e-05, %v43_v25 }
  0xfd   :  { %v47_v28 = vmul.f32 %v95_v26, %v44_v23  ;;  %vm53_vm2 = vweird.f32 %v95_v26 }
  0xfe   :  { %96 = vrsqrt.f32 %v45_v27  ;;  %vm54_vm4 = vmor %vm52_vm3, %vm53_vm2  ;;  %vm62_vm7 = vweird.f32 %v45_v27 }
  0xff   :  { %v48_v29 = vmul.f32 %v95_v26, %v47_v28 }
 0x101   :  { %v49_v30 = vmul.f32 0.5, %v48_v29 }
 0x103   :  { %v50_v31 = vsub.f32 1.5, %v49_v30 }
 0x104   :  { %v97_v32 = vpop.eup %96 }
 0x105   :  { %v51_v33 = vmul.f32 %v95_v26, %v50_v31  ;;  %v57_v34 = vmul.f32 %v97_v32, %v45_v27  ;;  %vm63_vm5 = vweird.f32 %v97_v32 }
 0x106   :  { %vm64_vm8 = vmor %vm62_vm7, %vm63_vm5 }
 0x107   :  { %v55_v36 = vsel %vm54_vm4, %v95_v26, %v51_v33  ;;  %v58_v37 = vmul.f32 %v97_v32, %v57_v34 }
 0x108   :  { %v66_v39 = vmul.f32 %v55_v36, %v32_v13 }
 0x109   :  { %v59_v40 = vmul.f32 0.5, %v58_v37 }
 0x10a   :  { %v72_v41 = vmul.f32 %v90_v35, %v66_v39 }
 0x10b   :  { %v60_v42 = vsub.f32 1.5, %v59_v40 }
 0x10c   :  { %v78_v43 = vadd.f32 %v91_v38, %v72_v41 }
 0x10d   :  { %v61_v44 = vmul.f32 %v97_v32, %v60_v42 }
 0x10e   :  { %v80_v45 = vpack.c.bf16 %v78_v43, %v78_v43 }
 0x10f   :  { %v65_v46 = vsel %vm64_vm8, %v97_v32, %v61_v44 }
 0x110   :  { %83 = vst.msk [vmem:[%s144_s3] sm:$0xf] %vm82_vm6, %v80_v45  ;;  %v67_v47 = vmul.f32 %v65_v46, %v33_v18 }
 0x112   :  { %v73_v48 = vmul.f32 %v90_v35, %v67_v47 }
 0x114   :  { %v79_v49 = vadd.f32 %v91_v38, %v73_v48 }
 0x116   :  { %v81_v50 = vpack.c.bf16 %v79_v49, %v79_v49 }
 0x118   :  { %84 = vst.msk [vmem:[%s144_s3 + $0x4] sm:$0xf] %vm82_vm6, %v81_v50 }

// kernel: block_forward.13
= control target key start
LH: loop header
LB: loop body
LE: loop exit
PB: predicated region body
PF: predicated region fallthrough
CT: control target
= control target key end

     0   :  { %vm19_vm0 = vcmask 261120   ;;  %v219_v2 = vmov 0.0   ;;  %s285_s0 = inlined_call_operand.vmem [shape: bf16[16,128], index: 0, kind: input, shape index: {}]   ;;  %s286_s1 = inlined_call_operand.vmem [shape: bf16[128,32], index: 1, kind: input, shape index: {}]   ;;  %s287_s2 = inlined_call_operand.vmem [shape: f32[16,32], index: 2, kind: input, shape index: {}]   ;;  %s288_s3 = inlined_call_operand.hbm [shape: f32[16,32], index: 3, kind: output, shape index: {}]  }
   0x1   :  { %v188_v0 = vld [vmem:[%s286_s1 + $0x38] sm:$0xff]  ;;  %v187_v1 = vld [vmem:[%s286_s1 + $0x30] sm:$0xff]  ;;  %20 = vst.msk [vmem:[#allocation2] sm:$0xff] %vm19_vm0, %v219_v2 }
   0x2   :  { %96 = vmatpush.bf16.msra.mxu0 %v188_v0  ;;  %21 = vst.msk [vmem:[#allocation2 + $0x8] sm:$0xff] %vm19_vm0, %v219_v2 }
   0x3   :  { %8 = vsyncpa [#allocation4], 0  ;;  %v186_v3 = vld [vmem:[%s286_s1 + $0x28] sm:$0xff]  ;;  %v185_v4 = vld [vmem:[%s286_s1 + $0x20] sm:$0xff]  ;;  %s132_s7 = sshll.u32 %s288_s3, 4  ;;  %s221_s10 = smov 128   ;;  %s133_s7 = int_to_ptr.hbm [resolvable:$true] %s132_s7 }
   0x4   :  { %v184_v5 = vld [vmem:[%s286_s1 + $0x18] sm:$0xff]  ;;  %v183_v6 = vld [vmem:[%s286_s1 + $0x10] sm:$0xff]  ;;  %v182_v7 = vld [vmem:[%s286_s1 + $0x8] sm:$0xff]  ;;  %s222_s11 = smov 8  }
   0x5   :  { %v181_v8 = vld [vmem:[%s286_s1] sm:$0xff]  ;;  %v121_v19 = vld [vmem:[%s287_s2 + $0x8] sm:$0xff] }
   0x6   :  { %97 = vmatpush.bf16.msra.mxu0 %v187_v1  ;;  %v180_v9 = vld [vmem:[%s285_s0] sm:$0xff]  ;;  %s220_s0 = smov [#allocation3]  }
   0x7   :  { %v120_v15 = vld [vmem:[%s287_s2] sm:$0xff]  ;;  %s130_s1 = sshll.u32 %s220_s0, 4  ;;  %s131_s1 = int_to_ptr.vmem [resolvable:$true] %s130_s1 }
   0x8   :  { %v22_v10 = vld [vmem:[#allocation2] sm:$0xff] }
   0x9   :  { %v23_v13 = vld [vmem:[#allocation2 + $0x8] sm:$0xff] }
   0xa   :  { %98 = vmatpush.bf16.msra.mxu0 %v186_v3 }
   0xe   :  { %99 = vmatpush.bf16.msra.mxu0 %v185_v4 }
  0x12   :  { %100 = vmatpush.bf16.msra.mxu0 %v184_v5 }
  0x16   :  { %101 = vmatpush.bf16.msra.mxu0 %v183_v6 }
  0x1a   :  { %102 = vmatpush.bf16.msra.mxu0 %v182_v7 }
  0x1e   :  { %103 = vmatpush.bf16.msra.mxu0 %v181_v8 }
  0x21   :  { %104 = vmatmul.bf16.vlgmr.msra.gmra.mxu0 %v180_v9 }
  0x9e   :  { %v105_v11 = vpop.f32.mrf.mxu0 }
  0x9f   :  { %v110_v12 = vadd.f32 %v105_v11, %v22_v10 }
  0xa1   :  { %113 = vst.msk [vmem:[#allocation2] sm:$0xff] %vm19_vm0, %v110_v12 }
  0xa6   :  { %v107_v14 = vpop.f32.mrf.mxu0 }
  0xa7   :  { %v111_v16 = vadd.f32 %v107_v14, %v23_v13 }
  0xa8   :  { %v118_v17 = vld [vmem:[#allocation2] sm:$0xff] }
  0xa9   :  { %114 = vst.msk [vmem:[#allocation2 + $0x8] sm:$0xff] %vm19_vm0, %v111_v16  ;;  %v122_v18 = vadd.f32 %v120_v15, %v118_v17 }
  0xab   :  { %124 = vst.msk [vmem:[#allocation3] sm:$0xff] %vm19_vm0, %v122_v18 }
  0xb0   :  { %v119_v20 = vld [vmem:[#allocation2 + $0x8] sm:$0xff] }
  0xb1   :  { %v123_v21 = vadd.f32 %v121_v19, %v119_v20 }
  0xb3   :  { %125 = vst.msk [vmem:[#allocation3 + $0x8] sm:$0xff] %vm19_vm0, %v123_v21 }
  0xb4   :  { %138 = dma.vmem_to_hbm [thread:$0]  %s131_s1, 256, %s133_s7, [#allocation4], %s221_s10, %s221_s10, %s222_s11  }
  0xb5   :  { %217 = dma.done.wait [#allocation4], 256  }
  0xb6   :  { %218 = vsyncadd [#allocation4], 4294967040 }
  0xb7   :  { %143 = vsyncpa [#allocation4], 1 }

// kernel: block_forward.9
= control target key start
LH: loop header
LB: loop body
LE: loop exit
PB: predicated region body
PF: predicated region fallthrough
CT: control target
= control target key end

     0   :  { %s1987_s21 = smov 0   ;;  %s1989_s22 = smov 0   ;;  %s2720_s0 = inlined_call_operand.vmem [shape: bf16[2,8,128], index: 0, kind: input, shape index: {}]   ;;  %s2721_s1 = inlined_call_operand.vmem [shape: f32[4,8,8], index: 1, kind: input, shape index: {}]   ;;  %s2722_s2 = inlined_call_operand.vmem [shape: f32[4,8,8], index: 2, kind: input, shape index: {}]   ;;  %s2723_s3 = inlined_call_operand.vmem [shape: f32[4,8,1], index: 3, kind: input, shape index: {}]   ;;  %s2724_s4 = inlined_call_operand.vmem [shape: f32[4,1,8], index: 4, kind: input, shape index: {}]   ;;  %s2725_s5 = inlined_call_operand.vmem [shape: f32[4,8,8,8], index: 5, kind: input, shape index: {}]   ;;  %s2726_s6 = inlined_call_operand.vmem [shape: bf16[2,8,32], index: 6, kind: output, shape index: {}]  }
   0x1   :  { %s1991_s23 = smov 0  }
   0x2 LB: > { %s28_s24 = sadd.s32 1, %s1928_s22  ;;  %p1783_p0 = scmp.ge.s32.totalorder %s1932_s23, 1  ;;  %s1932_s23 = sphi %s1991_s23, %s16_s23   ;;  %s1928_s22 = sphi %s1989_s22, %s2730_s22   ;;  %s1924_s21 = sphi %s1987_s21, %s2729_s21  }
   0x3   : > { %p30_p1 = scmp.ge.s32.totalorder %s28_s24, 2  ;;  %p230_p2 = scmp.lt.s32.totalorder %s1932_s23, 3 }
   0x5   : > { %s2732_s24 = smov (%p30_p1, %s28_s24), 0  ;;  %p231_p3 = pnand %p1783_p0, %p230_p2 }
   0x6   : > { %p264_p4 = scmp.lt.s32.totalorder (!%p231_p3), %s1924_s21, 1  ;;  %s1935_s29 = smov (!%p231_p3), 32  }
   0x7   : > { %234 = sbr.rel (%p231_p3) target bundleno = 1784 (0x6f8), region = 44  ;;  %s1937_s12 = smov (!%p231_p3), 96  }
   0x8   : > { %s1938_s13 = smov (!%p231_p3), 8   ;;  %s1939_s16 = smov (!%p231_p3), 40  }
   0x9   : > { %s1941_s15 = smov (!%p231_p3), 64   ;;  %s1942_s20 = smov (!%p231_p3), 120  }
   0xa   : > { %s1943_s25 = smov (!%p231_p3), 56   ;;  %s1944_s28 = smov (!%p231_p3), 88  }
   0xb   : > { %s1945_s11 = smov (!%p231_p3), 16   ;;  %s1946_s18 = smov (!%p231_p3), 24  }
   0xc   : > { %v295_v0 = vld [vmem:[%s2722_s2] sm:$0xff]  ;;  %v1934_v2 = vmov 0   ;;  %vm288_vm0 = vcmask 57344   ;;  %s2734_s21 = smov (!%p264_p4, %s1924_s21), 1  ;;  %v1936_v3 = vmov 0.0   ;;  %v1793_v6 = vld [vmem:[%s2721_s1 + $0x8] sm:$0xff] }
   0xd   : > { %v296_v1 = vld [vmem:[%s2723_s3] sm:$0xff]  ;;  %1882 = vset.pattern.permute.xlu2 %v1934_v2  ;;  %311 = vrot.lane.b32.xlu0 %v295_v0, %s1935_s29  ;;  %290 = vst.msk [vmem:[#allocation3 + $0x1] sm:$0x1] %vm288_vm0, %v1936_v3  ;;  %s1784_s30 = sshll.u32 %s2734_s21, 2  ;;  %v1794_v7 = vld [vmem:[%s2722_s2 + $0x8] sm:$0xff]  ;;  %v1800_v11 = vld [vmem:[%s2725_s5 + $0x58] sm:$0xff] }
   0xe   : > { %579 = vperm.xlu2 %1882, %v296_v1   ;;  %289 = vst.msk [vmem:[#allocation3] sm:$0x1] %vm288_vm0, %v1936_v3  ;;  %s270_s9 = scalar_lea.vmem %s2720_s0, %s1784_s30  ;;  %v1798_v9 = vld [vmem:[%s2725_s5 + $0x48] sm:$0xff]  ;;  %v1797_v10 = vld [vmem:[%s2725_s5 + $0x40] sm:$0xff]  ;;  %v1799_v12 = vld [vmem:[%s2725_s5 + $0x50] sm:$0xff]  ;;  %vm283_vm1 = vcmask 64512  }
   0xf   : > { %291 = vst.msk [vmem:[#allocation3 + $0x2] sm:$0x1] %vm288_vm0, %v1936_v3  ;;  %v2025_v4 = vld [vmem:[%s270_s9] sm:$0xf]  ;;  %v1802_v13 = vld [vmem:[%s2725_s5 + $0x68] sm:$0xff]  ;;  %v1804_v15 = vld [vmem:[%s2725_s5 + $0x78] sm:$0xff] }
  0x10   : > { %292 = vst.msk [vmem:[#allocation3 + $0x3] sm:$0x1] %vm288_vm0, %v1936_v3  ;;  %v2028_v5 = vunpack.c.l.bf16 %v2025_v4  ;;  %v1801_v14 = vld [vmem:[%s2725_s5 + $0x60] sm:$0xff]  ;;  %v1803_v16 = vld [vmem:[%s2725_s5 + $0x70] sm:$0xff]  ;;  %v326_v17 = vrot.slane %v2025_v4, 3  ;;  %vm327_vm2 = vcmask 1040384  }
  0x11   : > { %284 = vst.msk [vmem:[#allocation2] sm:$0xff] %vm283_vm1, %v1936_v3  ;;  %v1940_v19 = vmov 286326784   ;;  %vm332_vm3 = vcmask 1041409   ;;  %v299_v34 = vld [vmem:[%s2725_s5 + $0x8] sm:$0xff]  ;;  %vm336_vm4 = vcmask 1042434   ;;  %v300_v43 = vld [vmem:[%s2725_s5 + $0x10] sm:$0xff] }
  0x12   : > { %425 = vrot.lane.b32.xlu1 %v2028_v5, %s1937_s12  ;;  %285 = vst.msk [vmem:[#allocation2 + $0x8] sm:$0xff] %vm283_vm1, %v1936_v3  ;;  %v330_v18 = vsel %vm327_vm2, %v2025_v4, %v326_v17  ;;  %v361_v20 = vunpack.c.l.s4 %v1940_v19  ;;  %v333_v24 = vsel %vm332_vm3, %v2025_v4, %v326_v17  ;;  %v337_v39 = vsel %vm336_vm4, %v2025_v4, %v326_v17  ;;  %v294_v44 = vld [vmem:[%s2721_s1] sm:$0xff]  ;;  %v301_v59 = vld [vmem:[%s2725_s5 + $0x18] sm:$0xff]  ;;  %s1947_s26 = smov 48   ;;  %s1948_s27 = smov 112  }
  0x13   : > { %286 = vst.msk [vmem:[#allocation2 + $0x10] sm:$0xff] %vm283_vm1, %v1936_v3  ;;  %v345_v21 = vunpack.i.h.s16 %v330_v18  ;;  %v335_v25 = vrot.slane %v333_v24, 1  ;;  %v339_v46 = vrot.slane %v337_v39, 2  ;;  %v2102_v48 = vmul.f32 %v2028_v5, %v294_v44  ;;  %s1949_s10 = smov 104  }
  0x14   : > { %v1898_v8 = vld [vmem:[#allocation3 + $0x1] ss:$0 sm:$0xff]  ;;  %287 = vst.msk [vmem:[#allocation2 + $0x18] sm:$0xff] %vm283_vm1, %v1936_v3  ;;  %v2069_v22 = vunpack.c.0.s8 %v361_v20  ;;  %vm340_vm5 = vcmask 1043459   ;;  %v1786_v0 = vpack.i.b16 %v330_v18, %v330_v18  ;;  %vm622_vm6 = vcmask 326912  }
  0x15   : > { %v353_v23 = vpack.i.b16 %v345_v21, %v345_v21  ;;  %v1787_v27 = vpack.i.b16 %v335_v25, %v335_v25  ;;  %v347_v29 = vunpack.i.h.s16 %v335_v25  ;;  %v1899_v47 = vld [vmem:[#allocation3] ss:$0 sm:$0xff]  ;;  %v1788_v50 = vpack.i.b16 %v339_v46, %v339_v46 }
  0x16   : > { %680 = vrot.lane.b32.xlu2 %v1793_v6, %s1938_s13  ;;  %v320_v53 = vmul.f32 %v1899_v47, %v2102_v48  ;;  %v349_v58 = vunpack.i.h.s16 %v339_v46  ;;  %v341_v1 = vsel %vm340_vm5, %v2025_v4, %v326_v17  ;;  %vm513_vm7 = vcmask 1043456  }
  0x17   : > { %v367_v26 = vperm.slane %v353_v23, %v2069_v22  ;;  %v371_v30 = vperm.slane %v1787_v27, %v2069_v22  ;;  %v355_v37 = vpack.i.b16 %v347_v29, %v347_v29  ;;  %v379_v55 = vperm.slane %v1788_v50, %v2069_v22  ;;  %v303_v23 = vld [vmem:[%s2725_s5 + $0x28] sm:$0xff]  ;;  %v298_v27 = vld [vmem:[%s2725_s5] sm:$0xff] }
  0x18   : > { %v322_v54 = vsel %vm283_vm1, %v320_v53, 0.0  ;;  %v357_v63 = vpack.i.b16 %v349_v58, %v349_v58  ;;  %vm497_vm8 = vcmask 1044484   ;;  %vm499_vm9 = vcmask 1045509  }
  0x19   : > { %v401_v28 = vunpack.c.l.bf16 %v367_v26  ;;  %v402_v36 = vunpack.c.l.bf16 %v371_v30  ;;  %v375_v41 = vperm.slane %v355_v37, %v2069_v22  ;;  %v404_v60 = vunpack.c.l.bf16 %v379_v55 }
  0x1a   : > { %685 = vrot.lane.b32.xlu1 %v1794_v7, %s1939_s16  ;;  %v383_v7 = vperm.slane %v357_v63, %v2069_v22  ;;  %vm501_vm10 = vcmask 1046534   ;;  %vm503_vm11 = vcmask 1047559   ;;  %vm964_vm12 = vcmask 392512  }
  0x1b   : > { %v2078_v33 = vperm.slane %v401_v28, 0  ;;  %v2089_v40 = vperm.slane %v402_v36, 0  ;;  %v403_v52 = vunpack.c.l.bf16 %v375_v41  ;;  %v2119_v3 = vperm.slane %v404_v60, 0 }
  0x1d   : > { %v417_v38 = vmul.f32 %v2078_v33, %v299_v34  ;;  %v418_v51 = vmul.f32 %v2089_v40, %v300_v43  ;;  %v2110_v57 = vperm.slane %v403_v52, 0 }
  0x1e   : > { %693 = vrot.lane.b32.xlu2 %v1898_v8, %s1938_s13  ;;  %v302_v8 = vld [vmem:[%s2725_s5 + $0x20] sm:$0xff] }
  0x1f   : > { %v419_v62 = vmul.f32 %v2110_v57, %v301_v59 }
  0x22   : > { %714 = vrot.lane.b32.xlu1 %v1798_v9, %s1938_s13  ;;  %v343_v9 = vrot.slane %v341_v1, 3 }
  0x24   : > { %v351_v17 = vunpack.i.h.s16 %v343_v9 }
  0x26   : > { %712 = vrot.lane.b32.xlu2 %v1797_v10, %s1938_s13  ;;  %v363_v10 = vperm.slane %v1786_v0, %v2069_v22  ;;  %v359_v28 = vpack.i.b16 %v351_v17, %v351_v17 }
  0x28   : > { %v391_v34 = vperm.slane %v359_v28, %v2069_v22 }
  0x2a   : > { %718 = vrot.lane.b32.xlu1 %v1800_v11, %s1938_s13  ;;  %v1789_v11 = vpack.i.b16 %v343_v9, %v343_v9 }
  0x2c   : > { %v387_v18 = vperm.slane %v1789_v11, %v2069_v22 }
  0x2e   : > { %716 = vrot.lane.b32.xlu2 %v1799_v12, %s1938_s13  ;;  %v406_v25 = vunpack.c.l.bf16 %v387_v18 }
  0x30   : > { %v2148_v30 = vperm.slane %v406_v25, 0 }
  0x32   : > { %722 = vrot.lane.b32.xlu1 %v1802_v13, %s1938_s13  ;;  %v420_v13 = vmul.f32 %v2119_v3, %v302_v8 }
  0x36   : > { %720 = vrot.lane.b32.xlu2 %v1801_v14, %s1938_s13  ;;  %v405_v14 = vunpack.c.l.bf16 %v383_v7 }
  0x37   : > { %323 = vadd.xlane.f32.xlu0 %v322_v54 }
  0x38   : > { %v2132_v20 = vperm.slane %v405_v14, 0 }
  0x3a   : > { %726 = vrot.lane.b32.xlu1 %v1804_v15, %s1938_s13  ;;  %v506_v15 = vunpack.c.l.b16 %v2025_v4  ;;  %v421_v4 = vmul.f32 %v2132_v20, %v303_v23 }
  0x3c   : > { %v2134_v21 = vpack.c.b16 %v506_v15, %v506_v15 }
  0x3e   : > { %724 = vrot.lane.b32.xlu2 %v1803_v16, %s1938_s13  ;;  %v400_v16 = vunpack.c.l.bf16 %v363_v10 }
  0x40   : > { %v2139_v24 = vperm.slane %v400_v16, 0 }
  0x42   : > { %v416_v29 = vmul.f32 %v2139_v24, %v298_v27 }
  0x4b   : > { %508 = vrot.lane.b32.xlu0 %v2134_v21, %s1941_s15 }
  0x68   : > { %v2159_v43 = vpop.permute.xlu2 %579 }
  0x70   : > { %v681_v50 = vpop.permute.xlu2 %680 }
  0x71   : > { %v2175_v55 = vmul.f32 %v681_v50, %v2028_v5 }
  0x78   : > { %v694_v58 = vpop.permute.xlu2 %693 }
  0x79   : > { %v696_v60 = vmul.f32 %v694_v58, %v2175_v55 }
  0x7f   : > { %v312_v31 = vpop.permute.xlu0 %311 }
  0x80   : > { %v2076_v32 = vmul.f32 %v312_v31, %v2028_v5 }
  0x82   : > { %v583_v35 = vpack.c.bf16 %v2076_v32, %v2076_v32  ;;  %v623_v52 = vsel %vm622_vm6, %v2076_v32, 0.0  ;;  %v713_v32 = vpop.permute.xlu2 %712 }
  0x83   : > { %v624_v54 = vrot.slane %v623_v52, 4  ;;  %v736_v9 = vmul.f32 %v713_v32, %v2139_v24 }
  0x84   : > { %585 = vrot.lane.b32.xlu1 %v583_v35, %s1937_s12  ;;  %v2092_v42 = vpop.permute.xlu1 %425  ;;  %v304_v35 = vld [vmem:[%s2725_s5 + $0x30] sm:$0xff] }
  0x85   : > { %v429_v45 = vmul.f32 %v2092_v42, %v417_v38  ;;  %v430_v56 = vmul.f32 %v2092_v42, %v418_v51  ;;  %v431_v6 = vmul.f32 %v2092_v42, %v419_v62  ;;  %v432_v19 = vmul.f32 %v2092_v42, %v420_v13 }
  0x86   : > { %v433_v31 = vmul.f32 %v2092_v42, %v421_v4  ;;  %v428_v36 = vmul.f32 %v2092_v42, %v416_v29  ;;  %v407_v38 = vunpack.c.l.bf16 %v391_v34  ;;  %v422_v39 = vmul.f32 %v2148_v30, %v304_v35 }
  0x87   : > { %v439_v49 = vsel %vm283_vm1, %v429_v45, 0.0  ;;  %v442_v61 = vsel %vm283_vm1, %v430_v56, 0.0  ;;  %v445_v12 = vsel %vm283_vm1, %v431_v6, 0.0  ;;  %v448_v26 = vsel %vm283_vm1, %v432_v19, 0.0  ;;  %v305_v45 = vld [vmem:[%s2725_s5 + $0x38] sm:$0xff] }
  0x88   : > { %440 = vadd.xlane.f32.xlu2 %v439_v49  ;;  %v451_v37 = vsel %vm283_vm1, %v433_v31, 0.0  ;;  %v436_v41 = vsel %vm283_vm1, %v428_v36, 0.0  ;;  %v2161_v44 = vperm.slane %v407_v38, 0  ;;  %v434_v22 = vmul.f32 %v2092_v42, %v422_v39  ;;  %v2207_v36 = vld [vmem:[#allocation2] sm:$0xff] }
  0x89   : > { %v625_v56 = vadd.f32 %v624_v54, %v623_v52  ;;  %v744_v14 = vmul.f32 %v736_v9, %v2092_v42 }
  0x8a   : > { %v454_v46 = vsel %vm283_vm1, %v434_v22, 0.0  ;;  %v423_v47 = vmul.f32 %v2161_v44, %v305_v45  ;;  %v717_v11 = vpop.permute.xlu2 %716  ;;  %v315_v45 = vpack.c.bf16 %v2102_v48, %v2102_v48 }
  0x8b   : > { %v738_v15 = vmul.f32 %v717_v11, %v2089_v40 }
  0x8c   : > { %v435_v49 = vmul.f32 %v2092_v42, %v423_v47  ;;  %v2170_v51 = vpop.permute.xlu1 %685 }
  0x8d   : > { %v746_v18 = vmul.f32 %v738_v15, %v2092_v42 }
  0x8e   : > { %v457_v53 = vsel %vm283_vm1, %v435_v49, 0.0 }
  0x90   : > { %443 = vadd.xlane.f32.xlu2 %v442_v61  ;;  %v626_v61 = vrot.slane %v625_v56, 2 }
  0x92   : > { %v627_v62 = vadd.f32 %v626_v61, %v625_v56  ;;  %v721_v17 = vpop.permute.xlu2 %720 }
  0x93   : > { %v740_v19 = vmul.f32 %v721_v17, %v2119_v3 }
  0x94   : > { %v715_v59 = vpop.permute.xlu1 %714  ;;  %v628_v6 = vrot.slane %v627_v62, 1 }
  0x95   : > { %v737_v63 = vmul.f32 %v715_v59, %v2078_v33  ;;  %v748_v23 = vmul.f32 %v740_v19, %v2092_v42 }
  0x96   : > { %v629_v8 = vadd.f32 %v628_v6, %v627_v62 }
  0x97   : > { %v745_v1 = vmul.f32 %v737_v63, %v2092_v42 }
  0x98   : > { %446 = vadd.xlane.f32.xlu2 %v445_v12 }
  0x9a   : > { %v725_v25 = vpop.permute.xlu2 %724 }
  0x9c   : > { %v719_v0 = vpop.permute.xlu1 %718 }
  0x9d   : > { %v739_v7 = vmul.f32 %v719_v0, %v2110_v57 }
  0x9f   : > { %v747_v10 = vmul.f32 %v739_v7, %v2092_v42 }
  0xa0   : > { %449 = vadd.xlane.f32.xlu2 %v448_v26  ;;  %v742_v26 = vmul.f32 %v725_v25, %v2148_v30 }
  0xa2   : > { %v750_v27 = vmul.f32 %v742_v26, %v2092_v42 }
  0xa4   : > { %v723_v12 = vpop.permute.xlu1 %722 }
  0xa5   : > { %v741_v13 = vmul.f32 %v723_v12, %v2132_v20 }
  0xa7   : > { %v749_v16 = vmul.f32 %v741_v13, %v2092_v42 }
  0xa8   : > { %452 = vadd.xlane.f32.xlu2 %v451_v37  ;;  %v316_v37 = vpack.c.bf16 %v2207_v36, %v2207_v36 }
  0xaa   : > { %v2205_v34 = vpop.xlane.xlu0 %323 }
  0xac   : > { %v2199_v4 = vpop.permute.xlu1 %726 }
  0xae   : > { %437 = vadd.xlane.f32.xlu1 %v436_v41  ;;  %v534_v41 = vsel %vm513_vm7, %v316_v37, 0 }
  0xaf   : > { %543 = vmatpush.bf16.msra.mxu1 %v534_v41 }
  0xb0   : > { %455 = vadd.xlane.f32.xlu2 %v454_v46  ;;  %v484_v46 = vlaneseq }
  0xb2   : > { %1791 = vmatmul.msk.bf16.vlgmr.msra.gmra.mxu1 %vm283_vm1, %v315_v45  ;;  %v2216_v49 = vand.u32 127, %v484_v46  ;;  %v307_v45 = vld [vmem:[#allocation3] sm:$0x1] }
  0xb8   : > { %458 = vadd.xlane.f32.xlu2 %v457_v53 }
  0xbd   : > { %v509_v38 = vpop.permute.xlu0 %508 }
  0xbe   : > { %v515_v39 = vsel %vm513_vm7, %v509_v38, 0 }
  0xbf   : > { %524 = vmatpush.bf16.msra.mxu0 %v515_v39  ;;  %614 = vmatpush.bf16.msra.mxu2 %v515_v39 }
  0xc7   : > { %698 = vrot.lane.b32.xlu1 %v696_v60, %s1942_s20 }
  0xcf   : > { %762 = vrot.lane.b32.xlu1 %v745_v1, %s1942_s20 }
  0xd0   : > { %631 = vrot.lane.b32.xlu2 %v629_v8, %s1937_s12 }
  0xd7   : > { %766 = vrot.lane.b32.xlu1 %v747_v10, %s1942_s20 }
  0xd8   : > { %760 = vrot.lane.b32.xlu2 %v744_v14, %s1942_s20 }
  0xdf   : > { %770 = vrot.lane.b32.xlu1 %v749_v16, %s1942_s20 }
  0xe0   : > { %764 = vrot.lane.b32.xlu2 %v746_v18, %s1942_s20 }
  0xe8   : > { %768 = vrot.lane.b32.xlu2 %v748_v23, %s1942_s20 }
  0xf0   : > { %772 = vrot.lane.b32.xlu2 %v750_v27, %s1942_s20 }
  0xf6   : > { %v586_v28 = vpop.permute.xlu1 %585 }
  0xf7   : > { %588 = vxpose.xlu0.c.b16.start.end [1/1] (short) (narrow) %v586_v28, 16 }
  0xf8   : > { %848 = vrot.lane.b32.xlu2 %v2134_v21, %s1943_s25 }
  0xfb   : > { %v441_v29 = vpop.xlane.xlu2 %440 }
  0xfc   : > { %v461_v47 = vpack.c.bf16 %v441_v29, %v441_v29  ;;  %v558_v58 = vperm.slane %v441_v29, %v2216_v49 }
  0xfe   : > { %v477_v52 = vunpack.c.l.b16 %v461_v47  ;;  %v297_v47 = vld [vmem:[%s2724_s4] sm:$0x1] }
 0x100   : > { %v487_v61 = vperm.slane %v477_v52, %v2216_v49 }
 0x103   : > { %v444_v31 = vpop.xlane.xlu2 %443 }
 0x104   : > { %v462_v53 = vpack.c.bf16 %v444_v31, %v444_v31  ;;  %v559_v62 = vperm.slane %v444_v31, %v2216_v49 }
 0x106   : > { %v478_v48 = vunpack.c.l.b16 %v462_v53 }
 0x108   : > { %v488_v13 = vperm.slane %v478_v48, %v2216_v49 }
 0x10b   : > { %v447_v35 = vpop.xlane.xlu2 %446 }
 0x10c   : > { %v463_v54 = vpack.c.bf16 %v447_v35, %v447_v35  ;;  %v560_v63 = vperm.slane %v447_v35, %v2216_v49 }
 0x10e   : > { %v479_v6 = vunpack.c.l.b16 %v463_v54 }
 0x110   : > { %v489_v25 = vperm.slane %v479_v6, %v2216_v49 }
 0x113   : > { %v450_v22 = vpop.xlane.xlu2 %449 }
 0x114   : > { %v464_v32 = vpack.c.bf16 %v450_v22, %v450_v22  ;;  %v561_v7 = vperm.slane %v450_v22, %v2216_v49 }
 0x116   : > { %v480_v17 = vunpack.c.l.b16 %v464_v32 }
 0x118   : > { %v490_v31 = vperm.slane %v480_v17, %v2216_v49 }
 0x11b   : > { %v453_v50 = vpop.xlane.xlu2 %452 }
 0x11c   : > { %v562_v9 = vperm.slane %v453_v50, %v2216_v49  ;;  %v465_v14 = vpack.c.bf16 %v453_v50, %v453_v50 }
 0x11e   : > { %v481_v28 = vunpack.c.l.b16 %v465_v14 }
 0x120   : > { %v491_v39 = vperm.slane %v481_v28, %v2216_v49 }
 0x121   : > { %v438_v56 = vpop.xlane.xlu1 %437 }
 0x122   : > { %v460_v59 = vpack.c.bf16 %v438_v56, %v438_v56  ;;  %v557_v60 = vperm.slane %v438_v56, %v2216_v49  ;;  %v621_v56 = vmul.f32 %v307_v45, %v297_v47  ;;  %v678_v45 = vld [vmem:[#allocation3 + $0x1] sm:$0x1] }
 0x123   : > { %v456_v11 = vpop.xlane.xlu2 %455 }
 0x124   : > { %v476_v0 = vunpack.c.l.b16 %v460_v59  ;;  %v565_v1 = vsel %vm332_vm3, %v558_v58, %v557_v60  ;;  %v563_v15 = vperm.slane %v456_v11, %v2216_v49  ;;  %v466_v19 = vpack.c.bf16 %v456_v11, %v456_v11 }
 0x125   : > { %v566_v8 = vsel %vm336_vm4, %v559_v62, %v565_v1  ;;  %v688_v11 = vmul.f32 %v2170_v51, %v2028_v5 }
 0x126   : > { %v486_v10 = vperm.slane %v476_v0, %v2216_v49  ;;  %v567_v12 = vsel %vm340_vm5, %v560_v63, %v566_v8  ;;  %v482_v35 = vunpack.c.l.b16 %v466_v19 }
 0x127   : > { %v568_v16 = vsel %vm497_vm8, %v561_v7, %v567_v12 }
 0x128   : > { %v494_v18 = vsel %vm332_vm3, %v487_v61, %v486_v10  ;;  %v569_v23 = vsel %vm499_vm9, %v562_v9, %v568_v16  ;;  %v492_v46 = vperm.slane %v482_v35, %v2216_v49 }
 0x129   : > { %v495_v26 = vsel %vm336_vm4, %v488_v13, %v494_v18  ;;  %v570_v27 = vsel %vm501_vm10, %v563_v15, %v569_v23  ;;  %v965_v13 = vsel %vm964_vm12, %v688_v11, 0.0  ;;  %v925_v23 = vpack.c.bf16 %v688_v11, %v688_v11 }
 0x12a   : > { %v496_v29 = vsel %vm340_vm5, %v489_v25, %v495_v26  ;;  %v966_v14 = vrot.slane %v965_v13, 4 }
 0x12b   : > { %v459_v37 = vpop.xlane.xlu2 %458  ;;  %v498_v38 = vsel %vm497_vm8, %v490_v31, %v496_v29 }
 0x12c   : > { %v467_v41 = vpack.c.bf16 %v459_v37, %v459_v37  ;;  %v564_v22 = vperm.slane %v459_v37, %v2216_v49  ;;  %v500_v52 = vsel %vm499_vm9, %v491_v39, %v498_v38  ;;  %v967_v17 = vadd.f32 %v966_v14, %v965_v13  ;;  %v2320_v14 = vld [vmem:[#allocation2 + $0x8] sm:$0xff] }
 0x12d   : > { %v502_v58 = vsel %vm501_vm10, %v492_v46, %v500_v52  ;;  %v1796_v46 = vld [vmem:[%s2724_s4 + $0x1] sm:$0x1] }
 0x12e   : > { %v483_v50 = vunpack.c.l.b16 %v467_v41  ;;  %v2248_v53 = vsel %vm503_vm11, %v564_v22, %v570_v27  ;;  %v968_v18 = vrot.slane %v967_v17, 2  ;;  %v963_v47 = vmul.f32 %v1796_v46, %v678_v45 }
 0x12f   : > { %v545_v27 = vpop.f32.mrf.mxu1 }
 0x130   : > { %v493_v54 = vperm.slane %v483_v50, %v2216_v49  ;;  %v969_v25 = vadd.f32 %v968_v18, %v967_v17  ;;  %v1812_v18 = vld [vmem:[%s2725_s5 + $0x80] sm:$0xff] }
 0x132   : > { %v504_v59 = vsel %vm503_vm11, %v493_v54, %v502_v58  ;;  %v970_v26 = vrot.slane %v969_v25, 1  ;;  %v743_v54 = vmul.f32 %v2199_v4, %v2161_v44  ;;  %v1900_v4 = vld [vmem:[#allocation3 + $0x2] ss:$0 sm:$0xff] }
 0x133   : > { %v632_v60 = vpop.permute.xlu2 %631  ;;  %v505_v61 = vpack.c.b16 %v504_v59, %v504_v59 }
 0x134   : > { %v634_v48 = vadd.f32 %v632_v60, %v621_v56  ;;  %v971_v51 = vadd.f32 %v970_v26, %v969_v25  ;;  %v582_v56 = vmul.f32 %v2159_v43, %v2207_v36  ;;  %v751_v58 = vmul.f32 %v743_v54, %v2092_v42 }
 0x135   : > { %1790 = vmatmul.msk.bf16.vlgmr.msra.gmra.mxu0 %vm283_vm1, %v505_v61  ;;  %v573_v36 = vsel %vm283_vm1, %v2248_v53, 0.0  ;;  %v1814_v53 = vld [vmem:[%s2725_s5 + $0x90] sm:$0xff] }
 0x136   : > { %637 = vst.msk [vmem:[#allocation3] sm:$0x1] %vm288_vm0, %v634_v48  ;;  %v1808_v48 = vld [vmem:[%s2721_s1 + $0x10] sm:$0xff] }
 0x137   : > { %v547_v28 = vpop.f32.mrf.mxu1 }
 0x139   : > { %v2255_v62 = vpop.permute.xlu1 %698 }
 0x13b   : > { %v761_v63 = vpop.permute.xlu2 %760 }
 0x13c   : > { %v784_v32 = vsel %vm283_vm1, %v761_v63, 0.0 }
 0x13d   : > { %785 = vadd.xlane.f32.xlu2 %v784_v32 }
 0x141   : > { %v763_v0 = vpop.permute.xlu1 %762 }
 0x142   : > { %v787_v43 = vsel %vm283_vm1, %v763_v0, 0.0  ;;  %v1833_v0 = vld [vmem:[%s2725_s5 + $0xf0] sm:$0xff] }
 0x143   : > { %v765_v1 = vpop.permute.xlu2 %764 }
 0x144   : > { %v790_v6 = vsel %vm283_vm1, %v765_v1, 0.0 }
 0x145   : > { %791 = vadd.xlane.f32.xlu2 %v790_v6  ;;  %v689_v6 = vpack.c.bf16 %v2175_v55, %v2175_v55 }
 0x149   : > { %v767_v7 = vpop.permute.xlu1 %766 }
 0x14a   : > { %v793_v63 = vsel %vm283_vm1, %v767_v7, 0.0 }
 0x14b   : > { %v769_v8 = vpop.permute.xlu2 %768 }
 0x14c   : > { %v796_v19 = vsel %vm283_vm1, %v769_v8, 0.0  ;;  %v701_v8 = vsel %vm283_vm1, %v2255_v62, 0.0 }
 0x151   : > { %v771_v9 = vpop.permute.xlu1 %770 }
 0x152   : > { %v799_v10 = vsel %vm283_vm1, %v771_v9, 0.0 }
 0x153   : > { %800 = vadd.xlane.f32.xlu2 %v799_v10  ;;  %v773_v12 = vpop.permute.xlu2 %772  ;;  %v1809_v10 = vld [vmem:[%s2722_s2 + $0x10] sm:$0xff] }
 0x154   : > { %v802_v32 = vsel %vm283_vm1, %v773_v12, 0.0 }
 0x15b   : > { %v849_v15 = vpop.permute.xlu2 %848 }
 0x15c   : > { %v854_v16 = vsel %vm513_vm7, %v849_v15, 0 }
 0x15d   : > { %863 = vmatpush.bf16.msra.mxu3 %v854_v16  ;;  %956 = vmatpush.bf16.msrb.mxu1 %v854_v16  ;;  %v690_v16 = vpack.c.bf16 %v2320_v14, %v2320_v14 }
 0x168   : > { %797 = vadd.xlane.f32.xlu0 %v796_v19  ;;  %v876_v19 = vsel %vm513_vm7, %v690_v16, 0 }
 0x169   : > { %885 = vmatpush.bf16.msrb.mxu0 %v876_v19 }
 0x16b   : > { %927 = vrot.lane.b32.xlu2 %v925_v23, %s1944_s28 }
 0x173   : > { %973 = vrot.lane.b32.xlu2 %v971_v51, %s1944_s28 }
 0x17b   : > { %1021 = vrot.lane.b32.xlu2 %v1808_v48, %s1945_s11 }
 0x183   : > { %1034 = vrot.lane.b32.xlu2 %v1900_v4, %s1945_s11 }
 0x1a3   : > { %v596_v29 = vpop.trf.xlu0 }
 0x1a4   : > { %1792 = vmatmul.msk.bf16.vlgmr.msra.gmra.mxu2 %vm283_vm1, %v596_v29 }
 0x1b0   : > { %v2265_v31 = vpop.xlane.xlu2 %785 }
 0x1b1   : > { %v808_v62 = vpack.c.bf16 %v2265_v31, %v2265_v31  ;;  %v899_v25 = vperm.slane %v2265_v31, %v2216_v49 }
 0x1b2   : > { %v526_v35 = vpop.f32.mrf.mxu0 }
 0x1b3   : > { %v546_v37 = vadd.f32 %v545_v27, %v526_v35  ;;  %v824_v23 = vunpack.c.l.b16 %v808_v62 }
 0x1b8   : > { %v2267_v39 = vpop.xlane.xlu2 %791 }
 0x1b9   : > { %v810_v15 = vpack.c.bf16 %v2267_v39, %v2267_v39  ;;  %v901_v28 = vperm.slane %v2267_v39, %v2216_v49  ;;  %v1813_v39 = vld [vmem:[%s2725_s5 + $0x88] sm:$0xff] }
 0x1ba   : > { %v528_v38 = vpop.f32.mrf.mxu0 }
 0x1bb   : > { %v826_v27 = vunpack.c.l.b16 %v810_v15  ;;  %v832_v38 = vperm.slane %v824_v23, %v2216_v49 }
 0x1bd   : > { %v834_v31 = vperm.slane %v826_v27, %v2216_v49 }
 0x1c6   : > { %v2269_v41 = vpop.xlane.xlu2 %800 }
 0x1c7   : > { %v813_v54 = vpack.c.bf16 %v2269_v41, %v2269_v41  ;;  %v904_v4 = vperm.slane %v2269_v41, %v2216_v49 }
 0x1c9   : > { %v829_v48 = vunpack.c.l.b16 %v813_v54 }
 0x1ce   : > { %v928_v22 = vpop.permute.xlu2 %927 }
 0x1cf   : > { %930 = vxpose.xlu1.c.b16.start.end [1/1] (short) (narrow) %v928_v22, 16 }
 0x1d6   : > { %v974_v50 = vpop.permute.xlu2 %973 }
 0x1d7   : > { %v976_v52 = vadd.f32 %v974_v50, %v963_v47 }
 0x1d9   : > { %978 = vst.msk [vmem:[#allocation3 + $0x1] sm:$0x1] %vm288_vm0, %v976_v52 }
 0x1db   : > { %v798_v50 = vpop.xlane.xlu0 %797 }
 0x1dc   : > { %v812_v52 = vpack.c.bf16 %v798_v50, %v798_v50 }
 0x1de   : > { %v1022_v9 = vpop.permute.xlu2 %1021 }
 0x1df   : > { %v2313_v11 = vmul.f32 %v1022_v9, %v2028_v5 }
 0x1e6   : > { %v1035_v12 = vpop.permute.xlu2 %1034 }
 0x1e7   : > { %v1037_v13 = vmul.f32 %v1035_v12, %v2313_v11 }
 0x222   : > { %1887 = vset.pattern.permute.xlu1 %v1934_v2 }
 0x227   : > { %v616_v59 = vpop.f32.mrf.mxu2 }
 0x228   : > { %v620_v60 = vadd.f32 %v616_v59, %v582_v56 }
 0x229   : > { %774 = vrot.lane.b32.xlu1 %v751_v58, %s1942_s20 }
 0x22a   : > { %635 = vst.msk [vmem:[#allocation2] sm:$0xff] %vm283_vm1, %v620_v60  ;;  %v828_v60 = vunpack.c.l.b16 %v812_v52 }
 0x22f   : > { %v618_v61 = vpop.f32.mrf.mxu2 }
 0x230   : > { %v903_v61 = vperm.slane %v798_v50, %v2216_v49 }
 0x253   : > { %788 = vadd.xlane.f32.xlu1 %v787_v43 }
 0x25b   : > { %574 = vadd.xlane.f32.xlu1 %v573_v36 }
 0x263   : > { %794 = vadd.xlane.f32.xlu1 %v793_v63 }
 0x26b   : > { %803 = vadd.xlane.f32.xlu1 %v802_v32 }
 0x27b   : > { %v938_v1 = vpop.trf.xlu1 }
 0x27c   : > { %1807 = vmatmul.msk.bf16.vlgmr.msrb.gmra.mxu1 %vm283_vm1, %v938_v1 }
 0x284   : > { %870 = vrot.lane.b32.xlu1 %v689_v6, %s1942_s20  ;;  %v836_v6 = vperm.slane %v828_v60, %v2216_v49 }
 0x28c   : > { %653 = vrot.lane.b32.xlu1 %v546_v37, %s1937_s12 }
 0x294   : > { %1057 = vrot.lane.b32.xlu1 %v1814_v53, %s1945_s11  ;;  %v837_v53 = vperm.slane %v829_v48, %v2216_v49 }
 0x29b   : > { %v775_v7 = vpop.permute.xlu1 %774 }
 0x29c   : > { %1406 = vrot.lane.b32.xlu1 %v1833_v0, %s1946_s18  ;;  %v805_v55 = vsel %vm283_vm1, %v775_v7, 0.0 }
 0x29d   : > { %806 = vadd.xlane.f32.xlu0 %v805_v55 }
 0x2a5   : > { %702 = vadd.xlane.f32.xlu0 %v701_v8 }
 0x2b9   : > { %1026 = vrot.lane.b32.xlu0 %v1809_v10, %s1947_s26 }
 0x2c1   : > { %1039 = vrot.lane.b32.xlu0 %v1037_v13, %s1948_s27 }
 0x2c6   : > { %v789_v17 = vpop.xlane.xlu1 %788 }
 0x2c7   : > { %v809_v26 = vpack.c.bf16 %v789_v17, %v789_v17  ;;  %v900_v51 = vperm.slane %v789_v17, %v2216_v49 }
 0x2c9   : > { %v825_v29 = vunpack.c.l.b16 %v809_v26  ;;  %v907_v35 = vsel %vm332_vm3, %v900_v51, %v899_v25  ;;  %1053 = vrot.lane.b32.xlu0 %v1812_v18, %s1945_s11 }
 0x2ca   : > { %v908_v37 = vsel %vm336_vm4, %v901_v28, %v907_v35 }
 0x2cb   : > { %v833_v22 = vperm.slane %v825_v29, %v2216_v49 }
 0x2cd   : > { %v840_v45 = vsel %vm332_vm3, %v833_v22, %v832_v38 }
 0x2ce   : > { %v575_v46 = vpop.xlane.xlu1 %574  ;;  %v841_v47 = vsel %vm336_vm4, %v834_v31, %v840_v45 }
 0x2cf   : > { %v576_v41 = vadd.f32 %v575_v46, %v2205_v34 }
 0x2d1   : > { %1055 = vrot.lane.b32.xlu0 %v1813_v39, %s1945_s11  ;;  %1902 = vrcp.f32 %v576_v41  ;;  %v649_v17 = vand.u32 2147483648, %v576_v41  ;;  %vm643_vm14 = vweird.f32 %v576_v41  ;;  %v647_v18 = vand.u32 2147483647, %v576_v41 }
 0x2d3   : > { %v650_v23 = vor.u32 1.1754944e-38, %v649_v17  ;;  %vm648_vm2 = vcmp.eq.f32.partialorder %v647_v18, 8.507059e+37 }
 0x2d6   : > { %v795_v56 = vpop.xlane.xlu1 %794 }
 0x2d7   : > { %v811_v58 = vpack.c.bf16 %v795_v56, %v795_v56  ;;  %v902_v59 = vperm.slane %v795_v56, %v2216_v49  ;;  %v1903_v8 = vpop.eup %1902 }
 0x2d8   : > { %v639_v9 = vmul.f32 %v1903_v8, %v576_v41  ;;  %vm644_vm13 = vweird.f32 %v1903_v8 }
 0x2d9   : > { %v827_v43 = vunpack.c.l.b16 %v811_v58  ;;  %v909_v36 = vsel %vm340_vm5, %v902_v59, %v908_v37  ;;  %vm645_vm15 = vmor %vm643_vm14, %vm644_vm13  ;;  %v1815_v59 = vld [vmem:[%s2725_s5 + $0x98] sm:$0xff] }
 0x2da   : > { %v910_v63 = vsel %vm497_vm8, %v903_v61, %v909_v36  ;;  %v640_v12 = vsub.f32 1.0, %v639_v9  ;;  %v1816_v61 = vld [vmem:[%s2725_s5 + $0xa0] sm:$0xff] }
 0x2db   : > { %v835_v32 = vperm.slane %v827_v43, %v2216_v49  ;;  %v911_v1 = vsel %vm499_vm9, %v904_v4, %v910_v63  ;;  %v1817_v43 = vld [vmem:[%s2725_s5 + $0xa8] sm:$0xff]  ;;  %v1819_v63 = vld [vmem:[%s2725_s5 + $0xb8] sm:$0xff] }
 0x2dc   : > { %v641_v13 = vmul.f32 %v1903_v8, %v640_v12 }
 0x2dd   : > { %v842_v0 = vsel %vm340_vm5, %v835_v32, %v841_v47 }
 0x2de   : > { %v843_v7 = vsel %vm497_vm8, %v836_v6, %v842_v0  ;;  %v804_v10 = vpop.xlane.xlu1 %803  ;;  %v642_v15 = vadd.f32 %v1903_v8, %v641_v13 }
 0x2df   : > { %v844_v55 = vsel %vm499_vm9, %v837_v53, %v843_v7  ;;  %v814_v28 = vpack.c.bf16 %v804_v10, %v804_v10  ;;  %v905_v35 = vperm.slane %v804_v10, %v2216_v49  ;;  %v1818_v53 = vld [vmem:[%s2725_s5 + $0xb0] sm:$0xff] }
 0x2e0   : > { %v646_v19 = vsel %vm645_vm15, %v1903_v8, %v642_v15 }
 0x2e1   : > { %v651_v26 = vsel %vm648_vm2, %v650_v23, %v646_v19  ;;  %v830_v29 = vunpack.c.l.b16 %v814_v28  ;;  %v912_v45 = vsel %vm501_vm10, %v905_v35, %v911_v1  ;;  %vm1698_vm2 = vcmask 130048  }
 0x2e3   : > { %v838_v31 = vperm.slane %v830_v29, %v2216_v49 }
 0x2e5   : > { %v845_v52 = vsel %vm501_vm10, %v838_v31, %v844_v55  ;;  %v1827_v31 = vld [vmem:[%s2725_s5 + $0xc0] sm:$0xff] }
 0x2f6   : > { %v871_v62 = vpop.permute.xlu1 %870 }
 0x2f7   : > { %1806 = vmatmul.msk.bf16.vlgmr.msrb.gmra.mxu0 %vm283_vm1, %v871_v62 }
 0x2f9   : > { %v2364_v16 = vpop.f32.mrf.mxu1 }
 0x2fe   : > { %v654_v34 = vpop.permute.xlu1 %653 }
 0x2ff   : > { %v656_v25 = vmul.f32 %v654_v34, %v2028_v5 }
 0x301   : > { %v2367_v51 = vmul.f32 %v656_v25, %v651_v26  ;;  %v960_v27 = vpop.f32.mrf.mxu1 }
 0x306   : > { %v1058_v7 = vpop.permute.xlu1 %1057 }
 0x307   : > { %v1079_v55 = vmul.f32 %v1058_v7, %v2089_v40 }
 0x309   : > { %v1087_v8 = vmul.f32 %v1079_v55, %v2092_v42 }
 0x310   : > { %v807_v37 = vpop.xlane.xlu0 %806 }
 0x311   : > { %v815_v38 = vpack.c.bf16 %v807_v37, %v807_v37  ;;  %v906_v22 = vperm.slane %v807_v37, %v2216_v49 }
 0x313   : > { %v831_v46 = vunpack.c.l.b16 %v815_v38  ;;  %v913_v39 = vsel %vm503_vm11, %v906_v22, %v912_v45  ;;  %v1828_v45 = vld [vmem:[%s2725_s5 + $0xc8] sm:$0xff] }
 0x314   : > { %v915_v47 = vsel %vm283_vm1, %v913_v39, 0.0 }
 0x315   : > { %v839_v50 = vperm.slane %v831_v46, %v2216_v49  ;;  %916 = vadd.xlane.f32.xlu0 %v915_v47  ;;  %v1829_v47 = vld [vmem:[%s2725_s5 + $0xd0] sm:$0xff] }
 0x317   : > { %v846_v54 = vsel %vm503_vm11, %v839_v50, %v845_v52  ;;  %v1830_v52 = vld [vmem:[%s2725_s5 + $0xd8] sm:$0xff] }
 0x318   : > { %v847_v56 = vpack.c.b16 %v846_v54, %v846_v54  ;;  %v2379_v58 = vpop.xlane.xlu0 %702 }
 0x31a   : > { %1805 = vmatmul.msk.bf16.vlgmr.msra.gmra.mxu3 %vm283_vm1, %v847_v56  ;;  %v1831_v56 = vld [vmem:[%s2725_s5 + $0xe0] sm:$0xff] }
 0x329   : > { %1059 = vrot.lane.b32.xlu0 %v1815_v59, %s1945_s11  ;;  %v1832_v59 = vld [vmem:[%s2725_s5 + $0xe8] sm:$0xff] }
 0x32b   : > { %v2385_v60 = vpop.permute.xlu0 %1026 }
 0x331   : > { %1061 = vrot.lane.b32.xlu0 %v1816_v61, %s1945_s11  ;;  %v1834_v61 = vld [vmem:[%s2725_s5 + $0xf8] sm:$0xff] }
 0x333   : > { %v1040_v48 = vpop.permute.xlu0 %1039 }
 0x334   : > { %v1042_v4 = vsel %vm283_vm1, %v1040_v48, 0.0 }
 0x335   : > { %1043 = vadd.xlane.f32.xlu2 %v1042_v4 }
 0x339   : > { %1063 = vrot.lane.b32.xlu0 %v1817_v43, %s1945_s11 }
 0x33b   : > { %v1054_v36 = vpop.permute.xlu0 %1053 }
 0x33c   : > { %v1077_v32 = vmul.f32 %v1054_v36, %v2139_v24 }
 0x33e   : > { %v1085_v1 = vmul.f32 %v1077_v32, %v2092_v42 }
 0x341   : > { %1067 = vrot.lane.b32.xlu0 %v1819_v63, %s1945_s11 }
 0x343   : > { %v1056_v6 = vpop.permute.xlu0 %1055 }
 0x344   : > { %v1078_v0 = vmul.f32 %v1056_v6, %v2078_v33 }
 0x346   : > { %v1086_v41 = vmul.f32 %v1078_v0, %v2092_v42 }
 0x349   : > { %1101 = vrot.lane.b32.xlu0 %v1085_v1, %s1948_s27 }
 0x34d   : > { %1065 = vrot.lane.b32.xlu2 %v1818_v53, %s1945_s11 }
 0x351   : > { %1103 = vrot.lane.b32.xlu0 %v1086_v41, %s1948_s27 }
 0x355   : > { %1105 = vrot.lane.b32.xlu2 %v1087_v8, %s1948_s27 }
 0x374   : > { %v887_v9 = vpop.f32.mrf.mxu0 }
 0x37c   : > { %v889_v10 = vpop.f32.mrf.mxu0 }
 0x388   : > { %v2413_v12 = vpop.xlane.xlu0 %916 }
 0x39b   : > { %v1060_v13 = vpop.permute.xlu0 %1059 }
 0x39c   : > { %v1080_v62 = vmul.f32 %v1060_v13, %v2110_v57 }
 0x39d   : > { %v865_v15 = vpop.f32.mrf.mxu3 }
 0x39e   : > { %v1088_v17 = vmul.f32 %v1080_v62, %v2092_v42  ;;  %v2417_v18 = vadd.f32 %v887_v9, %v865_v15 }
 0x3a0   : > { %1107 = vrot.lane.b32.xlu0 %v1088_v17, %s1948_s27 }
 0x3a3   : > { %v1062_v19 = vpop.permute.xlu0 %1061 }
 0x3a4   : > { %v1081_v23 = vmul.f32 %v1062_v19, %v2119_v3 }
 0x3a5   : > { %v867_v34 = vpop.f32.mrf.mxu3 }
 0x3a6   : > { %v1089_v25 = vmul.f32 %v1081_v23, %v2092_v42 }
 0x3a8   : > { %v2422_v26 = vpop.xlane.xlu2 %1043  ;;  %1109 = vrot.lane.b32.xlu2 %v1089_v25, %s1948_s27 }
 0x3ab   : > { %v1064_v27 = vpop.permute.xlu0 %1063 }
 0x3ac   : > { %v1082_v28 = vmul.f32 %v1064_v27, %v2132_v20 }
 0x3ae   : > { %v1090_v29 = vmul.f32 %v1082_v28, %v2092_v42 }
 0x3b0   : > { %v1066_v35 = vpop.permute.xlu2 %1065  ;;  %1111 = vrot.lane.b32.xlu0 %v1090_v29, %s1948_s27  ;;  %v1407_v29 = vpop.permute.xlu1 %1406 }
 0x3b1   : > { %v1083_v37 = vmul.f32 %v1066_v35, %v2148_v30  ;;  %v1424_v35 = vmul.f32 %v1407_v29, %v2148_v30 }
 0x3b3   : > { %v1091_v38 = vmul.f32 %v1083_v37, %v2092_v42  ;;  %v1068_v22 = vpop.permute.xlu0 %1067 }
 0x3b4   : > { %v1084_v48 = vmul.f32 %v1068_v22, %v2161_v44 }
 0x3b5   : > { %1113 = vrot.lane.b32.xlu2 %v1091_v38, %s1948_s27  ;;  %v1432_v38 = vmul.f32 %v1424_v35, %v2092_v42 }
 0x3b6   : > { %v1092_v4 = vmul.f32 %v1084_v48, %v2092_v42  ;;  %v1824_v48 = vld [vmem:[%s2722_s2 + $0x18] sm:$0xff] }
 0x3b8   : > { %1394 = vrot.lane.b32.xlu0 %v1827_v31, %s1946_s18  ;;  %v1106_v50 = vpop.permute.xlu2 %1105 }
 0x3b9   : > { %v1131_v54 = vsel %vm283_vm1, %v1106_v50, 0.0 }
 0x3bb   : > { %v1102_v46 = vpop.permute.xlu0 %1101 }
 0x3bc   : > { %v1125_v39 = vsel %vm283_vm1, %v1102_v46, 0.0 }
 0x3bd   : > { %1126 = vadd.xlane.f32.xlu1 %v1125_v39  ;;  %1396 = vrot.lane.b32.xlu2 %v1828_v45, %s1946_s18 }
 0x3c0   : > { %1398 = vrot.lane.b32.xlu0 %v1829_v47, %s1946_s18 }
 0x3c3   : > { %v1104_v32 = vpop.permute.xlu0 %1103 }
 0x3c4   : > { %v1128_v31 = vsel %vm283_vm1, %v1104_v32, 0.0 }
 0x3c5   : > { %1400 = vrot.lane.b32.xlu2 %v1830_v52, %s1946_s18  ;;  %1132 = vadd.xlane.f32.xlu1 %v1131_v54  ;;  %v1030_v54 = vpack.c.bf16 %v2313_v11, %v2313_v11 }
 0x3c8   : > { %1402 = vrot.lane.b32.xlu0 %v1831_v56, %s1946_s18 }
 0x3cd   : > { %1404 = vrot.lane.b32.xlu2 %v1832_v59, %s1946_s18 }
 0x3d0   : > { %1408 = vrot.lane.b32.xlu0 %v1834_v61, %s1946_s18 }
 0x3d5   : > { %1115 = vrot.lane.b32.xlu2 %v1092_v4, %s1948_s27 }
 0x402   : > { %v1110_v43 = vpop.permute.xlu2 %1109 }
 0x403   : > { %v1137_v36 = vsel %vm283_vm1, %v1110_v43, 0.0  ;;  %v1901_v43 = vld [vmem:[#allocation3 + $0x3] ss:$0 sm:$0xff] }
 0x404   : > { %1138 = vadd.xlane.f32.xlu1 %v1137_v36 }
 0x40f   : > { %v1114_v63 = vpop.permute.xlu2 %1113 }
 0x410   : > { %v1143_v17 = vsel %vm283_vm1, %v1114_v63, 0.0 }
 0x412   : > { %v1108_v53 = vpop.permute.xlu0 %1107 }
 0x413   : > { %v1134_v30 = vsel %vm283_vm1, %v1108_v53, 0.0 }
 0x417   : > { %v1397_v1 = vpop.permute.xlu2 %1396 }
 0x418   : > { %v1419_v6 = vmul.f32 %v1397_v1, %v2078_v33 }
 0x41a   : > { %v1427_v0 = vmul.f32 %v1419_v6, %v2092_v42 }
 0x41c   : > { %1444 = vrot.lane.b32.xlu2 %v1427_v0, %s1949_s10  ;;  %v2527_v0 = vmul.f32 %v2385_v60, %v2028_v5 }
 0x41f   : > { %v1401_v7 = vpop.permute.xlu2 %1400 }
 0x420   : > { %v1421_v55 = vmul.f32 %v1401_v7, %v2110_v57  ;;  %v1266_v7 = vpack.c.bf16 %v2527_v0, %v2527_v0 }
 0x422   : > { %v1429_v41 = vmul.f32 %v1421_v55, %v2092_v42  ;;  %v1112_v8 = vpop.permute.xlu0 %1111 }
 0x423   : > { %v1140_v9 = vsel %vm283_vm1, %v1112_v8, 0.0 }
 0x424   : > { %1141 = vadd.xlane.f32.xlu1 %v1140_v9  ;;  %1448 = vrot.lane.b32.xlu2 %v1429_v41, %s1949_s10  ;;  %v2537_v41 = vadd.f32 %v2413_v12, %v2379_v58 }
 0x426   : > { %1904 = vrcp.f32 %v2537_v41  ;;  %vm984_vm6 = vweird.f32 %v2537_v41  ;;  %v988_v29 = vand.u32 2147483647, %v2537_v41 }
 0x427   : > { %v1405_v10 = vpop.permute.xlu2 %1404 }
 0x428   : > { %v1423_v33 = vmul.f32 %v1405_v10, %v2132_v20  ;;  %vm989_vm14 = vcmp.eq.f32.partialorder %v988_v29, 8.507059e+37 }
 0x42a   : > { %v1431_v13 = vmul.f32 %v1423_v33, %v2092_v42  ;;  %v1395_v62 = vpop.permute.xlu0 %1394 }
 0x42b   : > { %v1418_v15 = vmul.f32 %v1395_v62, %v2139_v24 }
 0x42c   : > { %1144 = vadd.xlane.f32.xlu1 %v1143_v17  ;;  %1452 = vrot.lane.b32.xlu2 %v1431_v13, %s1949_s10  ;;  %v2540_v60 = vpop.eup %1904 }
 0x42d   : > { %v1426_v57 = vmul.f32 %v1418_v15, %v2092_v42  ;;  %v980_v10 = vmul.f32 %v2540_v60, %v2537_v41  ;;  %vm985_vm12 = vweird.f32 %v2540_v60 }
 0x42e   : > { %vm2583_vm13 = vmor %vm984_vm6, %vm985_vm12  ;;  %vm1700_vm6 = vcmask 195584   ;;  %vm1703_vm12 = vcmask 257024  }
 0x42f   : > { %1442 = vrot.lane.b32.xlu0 %v1426_v57, %s1949_s10  ;;  %v1116_v19 = vpop.permute.xlu2 %1115  ;;  %v981_v58 = vsub.f32 1.0, %v980_v10 }
 0x430   : > { %v1146_v20 = vsel %vm283_vm1, %v1116_v19, 0.0 }
 0x432   : > { %v1399_v23 = vpop.permute.xlu0 %1398 }
 0x433   : > { %v1420_v34 = vmul.f32 %v1399_v23, %v2089_v40 }
 0x434   : > { %1147 = vadd.xlane.f32.xlu1 %v1146_v20 }
 0x435   : > { %v1428_v25 = vmul.f32 %v1420_v34, %v2092_v42 }
 0x437   : > { %1446 = vrot.lane.b32.xlu0 %v1428_v25, %s1949_s10  ;;  %v2550_v25 = vld [vmem:[#allocation2 + $0x10] sm:$0xff] }
 0x438   : > { %v1031_v35 = vpack.c.bf16 %v2550_v25, %v2550_v25 }
 0x43a   : > { %v1403_v24 = vpop.permute.xlu0 %1402 }
 0x43b   : > { %v1422_v27 = vmul.f32 %v1403_v24, %v2119_v3  ;;  %v1823_v3 = vld [vmem:[%s2721_s1 + $0x18] sm:$0xff] }
 0x43d   : > { %v1430_v28 = vmul.f32 %v1422_v27, %v2092_v42 }
 0x43f   : > { %1450 = vrot.lane.b32.xlu0 %v1430_v28, %s1949_s10  ;;  %v982_v28 = vmul.f32 %v2540_v60, %v981_v58 }
 0x442   : > { %v1409_v37 = vpop.permute.xlu0 %1408 }
 0x443   : > { %v1425_v40 = vmul.f32 %v1409_v37, %v2161_v44 }
 0x445   : > { %v1433_v22 = vmul.f32 %v1425_v40, %v2092_v42 }
 0x447   : > { %1456 = vrot.lane.b32.xlu2 %v1433_v22, %s1949_s10  ;;  %1454 = vrot.lane.b32.xlu0 %v1432_v38, %s1949_s10 }
 0x44f   : > { %1362 = vrot.lane.b32.xlu0 %v1823_v3, %s1946_s18  ;;  %v990_v3 = vand.u32 2147483648, %v2537_v41 }
 0x451   : > { %v991_v10 = vor.u32 1.1754944e-38, %v990_v3 }
 0x470   : > { %1129 = vadd.xlane.f32.xlu2 %v1128_v31 }
 0x476   : > { %v1445_v44 = vpop.permute.xlu2 %1444 }
 0x477   : > { %v1469_v45 = vsel %vm283_vm1, %v1445_v44, 0.0 }
 0x479   : > { %1135 = vadd.xlane.f32.xlu0 %v1134_v30 }
 0x47e   : > { %v1449_v42 = vpop.permute.xlu2 %1448 }
 0x47f   : > { %v1475_v46 = vsel %vm283_vm1, %v1449_v42, 0.0  ;;  %v1217_v42 = vsel %vm513_vm7, %v1031_v35, 0 }
 0x480   : > { %1226 = vmatpush.bf16.msrb.mxu3 %v1217_v42 }
 0x481   : > { %1470 = vadd.xlane.f32.xlu0 %v1469_v45 }
 0x486   : > { %v1453_v39 = vpop.permute.xlu2 %1452 }
 0x487   : > { %v1481_v47 = vsel %vm283_vm1, %v1453_v39, 0.0 }
 0x488   : > { %1189 = vrot.lane.b32.xlu2 %v2134_v21, %s1947_s26 }
 0x489   : > { %1476 = vadd.xlane.f32.xlu0 %v1475_v46 }
 0x490   : > { %994 = vrot.lane.b32.xlu2 %v2417_v18, %s1949_s10 }
 0x491   : > { %1482 = vadd.xlane.f32.xlu0 %v1481_v47 }
 0x4a1   : > { %v1443_v50 = vpop.permute.xlu0 %1442  ;;  %v1457_v11 = vpop.permute.xlu2 %1456 }
 0x4a2   : > { %v1466_v52 = vsel %vm283_vm1, %v1443_v50, 0.0  ;;  %v1487_v36 = vsel %vm283_vm1, %v1457_v11, 0.0 }
 0x4a3   : > { %1467 = vadd.xlane.f32.xlu1 %v1466_v52 }
 0x4a5   : > { %1211 = vrot.lane.b32.xlu0 %v1030_v54, %s1948_s27 }
 0x4a9   : > { %v1447_v56 = vpop.permute.xlu0 %1446 }
 0x4aa   : > { %v1472_v59 = vsel %vm283_vm1, %v1447_v56, 0.0  ;;  %v983_v56 = vadd.f32 %v2540_v60, %v982_v28 }
 0x4ab   : > { %1473 = vadd.xlane.f32.xlu1 %v1472_v59 }
 0x4ad   : > { %1530 = vrot.lane.b32.xlu0 %v2134_v21, %s1939_s16  ;;  %v1127_v21 = vpop.xlane.xlu1 %1126  ;;  %s1950_s16 = smov 80  }
 0x4ae   : > { %v1149_v33 = vpack.c.bf16 %v1127_v21, %v1127_v21  ;;  %v1240_v62 = vperm.slane %v1127_v21, %v2216_v49 }
 0x4b0   : > { %v1165_v19 = vunpack.c.l.b16 %v1149_v33 }
 0x4b1   : > { %v1451_v18 = vpop.permute.xlu0 %1450 }
 0x4b2   : > { %v1478_v61 = vsel %vm283_vm1, %v1451_v18, 0.0  ;;  %v1173_v37 = vperm.slane %v1165_v19, %v2216_v49 }
 0x4b3   : > { %1479 = vadd.xlane.f32.xlu1 %v1478_v61 }
 0x4b5   : > { %1367 = vrot.lane.b32.xlu0 %v1824_v48, %s1943_s25  ;;  %v1133_v32 = vpop.xlane.xlu1 %1132  ;;  %s1951_s25 = smov 72  }
 0x4b6   : > { %v1242_v57 = vperm.slane %v1133_v32, %v2216_v49  ;;  %v1151_v20 = vpack.c.bf16 %v1133_v32, %v1133_v32 }
 0x4b8   : > { %v1167_v31 = vunpack.c.l.b16 %v1151_v20 }
 0x4b9   : > { %v1455_v4 = vpop.permute.xlu0 %1454 }
 0x4ba   : > { %v1484_v63 = vsel %vm283_vm1, %v1455_v4, 0.0  ;;  %v1175_v11 = vperm.slane %v1167_v31, %v2216_v49 }
 0x4bb   : > { %1488 = vadd.xlane.f32.xlu1 %v1487_v36  ;;  %1485 = vadd.xlane.f32.xlu2 %v1484_v63 }
 0x4bd   : > { %1375 = vrot.lane.b32.xlu0 %v1901_v43, %s1946_s18  ;;  %v2520_v6 = vpop.xlane.xlu1 %1138 }
 0x4be   : > { %v1153_v24 = vpack.c.bf16 %v2520_v6, %v2520_v6  ;;  %v1244_v52 = vperm.slane %v2520_v6, %v2216_v49 }
 0x4c0   : > { %v1169_v50 = vunpack.c.l.b16 %v1153_v24 }
 0x4c1   : > { %v1363_v1 = vpop.permute.xlu0 %1362 }
 0x4c2   : > { %v2523_v53 = vmul.f32 %v1363_v1, %v2028_v5  ;;  %v1177_v6 = vperm.slane %v1169_v50, %v2216_v49 }
 0x4c4   : > { %v1371_v55 = vpack.c.bf16 %v2523_v53, %v2523_v53 }
 0x4c5   : > { %v1142_v8 = vpop.xlane.xlu1 %1141 }
 0x4c6   : > { %v1154_v40 = vpack.c.bf16 %v1142_v8, %v1142_v8  ;;  %v1245_v54 = vperm.slane %v1142_v8, %v2216_v49 }
 0x4c8   : > { %v1170_v59 = vunpack.c.l.b16 %v1154_v40 }
 0x4cd   : > { %v1145_v9 = vpop.xlane.xlu1 %1144 }
 0x4ce   : > { %v1155_v30 = vpack.c.bf16 %v1145_v9, %v1145_v9  ;;  %v1246_v43 = vperm.slane %v1145_v9, %v2216_v49  ;;  %v1178_v9 = vperm.slane %v1170_v59, %v2216_v49 }
 0x4d0   : > { %v1171_v4 = vunpack.c.l.b16 %v1155_v30 }
 0x4d3   : > { %1268 = vrot.lane.b32.xlu2 %v1266_v7, %s1950_s16 }
 0x4d4   : > { %1552 = vrot.lane.b32.xlu1 %v1371_v55, %s1949_s10  ;;  %v987_v55 = vsel %vm2583_vm13, %v2540_v60, %v983_v56 }
 0x4d5   : > { %v2554_v27 = vpop.xlane.xlu1 %1147 }
 0x4d6   : > { %v1156_v46 = vpack.c.bf16 %v2554_v27, %v2554_v27 }
 0x4d8   : > { %v1172_v63 = vunpack.c.l.b16 %v1156_v46 }
 0x4e3   : > { %v1130_v13 = vpop.xlane.xlu2 %1129 }
 0x4e4   : > { %v1150_v15 = vpack.c.bf16 %v1130_v13, %v1130_v13  ;;  %v1241_v17 = vperm.slane %v1130_v13, %v2216_v49  ;;  %v1179_v13 = vperm.slane %v1171_v4, %v2216_v49 }
 0x4e6   : > { %v1248_v12 = vsel %vm332_vm3, %v1241_v17, %v1240_v62  ;;  %v1166_v23 = vunpack.c.l.b16 %v1150_v15  ;;  %v1180_v17 = vperm.slane %v1172_v63, %v2216_v49 }
 0x4e7   : > { %v1249_v34 = vsel %vm336_vm4, %v1242_v57, %v1248_v12  ;;  %v992_v57 = vsel %vm989_vm14, %v991_v10, %v987_v55 }
 0x4e8   : > { %v1174_v38 = vperm.slane %v1166_v23, %v2216_v49 }
 0x4ea   : > { %v1181_v18 = vsel %vm332_vm3, %v1174_v38, %v1173_v37  ;;  %v2611_v37 = vld [vmem:[#allocation2 + $0x18] sm:$0xff] }
 0x4eb   : > { %v1190_v22 = vpop.permute.xlu2 %1189  ;;  %v1182_v7 = vsel %vm336_vm4, %v1175_v11, %v1181_v18  ;;  %v1372_v40 = vpack.c.bf16 %v2611_v37, %v2611_v37 }
 0x4ec   : > { %v1136_v44 = vpop.xlane.xlu0 %1135  ;;  %v1195_v45 = vsel %vm513_vm7, %v1190_v22, 0 }
 0x4ed   : > { %v1152_v39 = vpack.c.bf16 %v1136_v44, %v1136_v44  ;;  %v1243_v47 = vperm.slane %v1136_v44, %v2216_v49  ;;  %1204 = vmatpush.bf16.msrb.mxu2 %v1195_v45  ;;  %1297 = vmatpush.bf16.msra.mxu0 %v1195_v45  ;;  %v1558_v22 = vsel %vm513_vm7, %v1372_v40, 0 }
 0x4ef   : > { %v1168_v61 = vunpack.c.l.b16 %v1152_v39  ;;  %v1250_v48 = vsel %vm340_vm5, %v1243_v47, %v1249_v34 }
 0x4f0   : > { %v1251_v36 = vsel %vm497_vm8, %v1244_v52, %v1250_v48 }
 0x4f1   : > { %v1176_v21 = vperm.slane %v1168_v61, %v2216_v49  ;;  %v1252_v1 = vsel %vm499_vm9, %v1245_v54, %v1251_v36  ;;  %1567 = vmatpush.bf16.msra.mxu2 %v1558_v22 }
 0x4f2   : > { %v2594_v8 = vsel %vm501_vm10, %v1246_v43, %v1252_v1 }
 0x4f3   : > { %v1183_v41 = vsel %vm340_vm5, %v1176_v21, %v1182_v7  ;;  %v995_v33 = vpop.permute.xlu2 %994 }
 0x4f4   : > { %v1184_v62 = vsel %vm497_vm8, %v1177_v6, %v1183_v41  ;;  %v997_v15 = vmul.f32 %v995_v33, %v2028_v5  ;;  %v1471_v20 = vpop.xlane.xlu0 %1470 }
 0x4f5   : > { %v1185_v60 = vsel %vm499_vm9, %v1178_v9, %v1184_v62  ;;  %v1582_v3 = vperm.slane %v1471_v20, %v2216_v49  ;;  %v1491_v47 = vpack.c.bf16 %v1471_v20, %v1471_v20 }
 0x4f6   : > { %v2603_v58 = vmul.f32 %v997_v15, %v992_v57  ;;  %v1186_v12 = vsel %vm501_vm10, %v1179_v13, %v1185_v60 }
 0x4f7   : > { %v1187_v19 = vsel %vm503_vm11, %v1180_v17, %v1186_v12  ;;  %v1507_v59 = vunpack.c.l.b16 %v1491_v47 }
 0x4f8   : > { %v1188_v23 = vpack.c.b16 %v1187_v19, %v1187_v19  ;;  %v1888_v34 = vpack.i.bf16 %v2603_v58, %v2367_v51  ;;  %v1810_v51 = vld [vmem:[%s2723_s3 + $0x10] sm:$0xff] }
 0x4f9   : > { %v1515_v32 = vperm.slane %v1507_v59, %v2216_v49 }
 0x4fa   : > { %1820 = vmatmul.msk.bf16.vlgmr.msrb.gmra.mxu2 %vm283_vm1, %v1188_v23 }
 0x4fc   : > { %v1477_v24 = vpop.xlane.xlu0 %1476 }
 0x4fd   : > { %v1584_v45 = vperm.slane %v1477_v24, %v2216_v49  ;;  %v1493_v61 = vpack.c.bf16 %v1477_v24, %v1477_v24 }
 0x4ff   : > { %v1509_v55 = vunpack.c.l.b16 %v1493_v61 }
 0x501   : > { %v1517_v15 = vperm.slane %v1509_v55, %v2216_v49 }
 0x504   : > { %v1483_v28 = vpop.xlane.xlu0 %1482 }
 0x505   : > { %v1586_v36 = vperm.slane %v1483_v28, %v2216_v49  ;;  %v1495_v9 = vpack.c.bf16 %v1483_v28, %v1483_v28 }
 0x507   : > { %v1511_v17 = vunpack.c.l.b16 %v1495_v9 }
 0x509   : > { %v1519_v40 = vperm.slane %v1511_v17, %v2216_v49 }
 0x516   : > { %v1468_v29 = vpop.xlane.xlu1 %1467 }
 0x517   : > { %v1212_v35 = vpop.permute.xlu0 %1211  ;;  %v1581_v38 = vperm.slane %v1468_v29, %v2216_v49  ;;  %v1490_v42 = vpack.c.bf16 %v1468_v29, %v1468_v29 }
 0x518   : > { %1821 = vmatmul.msk.bf16.vlgmr.msrb.gmra.mxu3 %vm283_vm1, %v1212_v35 }
 0x519   : > { %v1589_v46 = vsel %vm332_vm3, %v1582_v3, %v1581_v38  ;;  %v1506_v56 = vunpack.c.l.b16 %v1490_v42 }
 0x51b   : > { %v1514_v63 = vperm.slane %v1506_v56, %v2216_v49 }
 0x51d   : > { %v1522_v33 = vsel %vm332_vm3, %v1515_v32, %v1514_v63  ;;  %vm1305_vm3 = vcmask 458112  }
 0x51e   : > { %v1474_v31 = vpop.xlane.xlu1 %1473 }
 0x51f   : > { %v1583_v30 = vperm.slane %v1474_v31, %v2216_v49  ;;  %v1531_v44 = vpop.permute.xlu0 %1530  ;;  %v1492_v50 = vpack.c.bf16 %v1474_v31, %v1474_v31 }
 0x520   : > { %v1536_v39 = vsel %vm513_vm7, %v1531_v44, 0 }
 0x521   : > { %v1590_v52 = vsel %vm336_vm4, %v1583_v30, %v1589_v46  ;;  %1545 = vmatpush.bf16.msra.mxu1 %v1536_v39  ;;  %1638 = vmatpush.bf16.msra.mxu3 %v1536_v39  ;;  %v1508_v18 = vunpack.c.l.b16 %v1492_v50 }
 0x522   : > { %v1591_v54 = vsel %vm340_vm5, %v1584_v45, %v1590_v52  ;;  %v1247_v45 = vperm.slane %v2554_v27, %v2216_v49 }
 0x523   : > { %v1516_v1 = vperm.slane %v1508_v18, %v2216_v49 }
 0x524   : > { %v1254_v42 = vsel %vm503_vm11, %v1247_v45, %v2594_v8  ;;  %v1306_v8 = vsel %vm1305_vm3, %v2527_v0, 0.0 }
 0x525   : > { %v1523_v13 = vsel %vm336_vm4, %v1516_v1, %v1522_v33  ;;  %v1256_v39 = vsel %vm283_vm1, %v1254_v42, 0.0  ;;  %vm1646_vm4 = vcmask 523712  }
 0x526   : > { %v1480_v48 = vpop.xlane.xlu1 %1479  ;;  %v1524_v20 = vsel %vm340_vm5, %v1517_v15, %v1523_v13  ;;  %v1825_v15 = vld [vmem:[%s2723_s3 + $0x18] sm:$0xff] }
 0x527   : > { %v1494_v11 = vpack.c.bf16 %v1480_v48, %v1480_v48  ;;  %v1585_v4 = vperm.slane %v1480_v48, %v2216_v49  ;;  %v1368_v43 = vpop.permute.xlu0 %1367  ;;  %v1307_v48 = vrot.slane %v1306_v8, 4 }
 0x528   : > { %v2628_v21 = vmul.f32 %v1368_v43, %v2028_v5 }
 0x529   : > { %v1510_v6 = vunpack.c.l.b16 %v1494_v11  ;;  %v1592_v7 = vsel %vm497_vm8, %v1585_v4, %v1591_v54 }
 0x52a   : > { %v1607_v41 = vpack.c.bf16 %v2628_v21, %v2628_v21  ;;  %v1593_v10 = vsel %vm499_vm9, %v1586_v36, %v1592_v7  ;;  %v1647_v0 = vsel %vm1646_vm4, %v2628_v21, 0.0 }
 0x52b   : > { %v1518_v62 = vperm.slane %v1510_v6, %v2216_v49  ;;  %v1648_v9 = vrot.slane %v1647_v0, 4 }
 0x52c   : > { %1609 = vrot.lane.b32.xlu1 %v1607_v41, %s1951_s25 }
 0x52d   : > { %v1525_v28 = vsel %vm497_vm8, %v1518_v62, %v1524_v20  ;;  %v1019_v20 = vld [vmem:[#allocation3 + $0x2] sm:$0x1] }
 0x52e   : > { %v1486_v57 = vpop.xlane.xlu2 %1485  ;;  %v1489_v60 = vpop.xlane.xlu1 %1488  ;;  %v1526_v3 = vsel %vm499_vm9, %v1519_v40, %v1525_v28  ;;  %v1795_v40 = vld [vmem:[%s2723_s3 + $0x8] sm:$0xff] }
 0x52f   : > { %v1496_v12 = vpack.c.bf16 %v1486_v57, %v1486_v57  ;;  %v1497_v19 = vpack.c.bf16 %v1489_v60, %v1489_v60  ;;  %v1376_v23 = vpop.permute.xlu0 %1375  ;;  %v1587_v46 = vperm.slane %v1486_v57, %v2216_v49  ;;  %v1588_v47 = vperm.slane %v1489_v60, %v2216_v49 }
 0x530   : > { %v1378_v24 = vmul.f32 %v1376_v23, %v2523_v53 }
 0x531   : > { %v1512_v29 = vunpack.c.l.b16 %v1496_v12  ;;  %v1513_v35 = vunpack.c.l.b16 %v1497_v19  ;;  %v1594_v50 = vsel %vm501_vm10, %v1587_v46, %v1593_v10  ;;  %v1649_v10 = vadd.f32 %v1648_v9, %v1647_v0 }
 0x532   : > { %1380 = vrot.lane.b32.xlu2 %v1378_v24, %s1949_s10  ;;  %v1595_v52 = vsel %vm503_vm11, %v1588_v47, %v1594_v50  ;;  %v1811_v24 = vld [vmem:[%s2724_s4 + $0x2] sm:$0x1]  ;;  %v1360_v47 = vld [vmem:[#allocation3 + $0x3] sm:$0x1]  ;;  %s277_s10 = scalar_lea.vmem %s2726_s6, %s1784_s30 }
 0x533   : > { %v1520_v38 = vperm.slane %v1512_v29, %v2216_v49  ;;  %v1521_v22 = vperm.slane %v1513_v35, %v2216_v49  ;;  %v1597_v54 = vsel %vm283_vm1, %v1595_v52, 0.0  ;;  %v1308_v49 = vadd.f32 %v1307_v48, %v1306_v8  ;;  %v1826_v50 = vld [vmem:[%s2724_s4 + $0x3] sm:$0x1] }
 0x534   : > { %v1650_v13 = vrot.slane %v1649_v10, 2  ;;  %v1304_v28 = vmul.f32 %v1811_v24, %v1019_v20 }
 0x535   : > { %v1527_v31 = vsel %vm501_vm10, %v1520_v38, %v1526_v3  ;;  %v1309_v11 = vrot.slane %v1308_v49, 2 }
 0x536   : > { %v1528_v30 = vsel %vm503_vm11, %v1521_v22, %v1527_v31  ;;  %v1269_v59 = vpop.permute.xlu2 %1268  ;;  %v1651_v17 = vadd.f32 %v1650_v13, %v1649_v10 }
 0x537   : > { %v1529_v44 = vpack.c.b16 %v1528_v30, %v1528_v30  ;;  %v1310_v43 = vadd.f32 %v1309_v11, %v1308_v49 }
 0x538   : > { %v1652_v57 = vrot.slane %v1651_v17, 1 }
 0x539   : > { %1835 = vmatmul.msk.bf16.vlgmr.msra.gmra.mxu1 %vm283_vm1, %v1529_v44  ;;  %v1311_v32 = vrot.slane %v1310_v43, 1 }
 0x53a   : > { %v1653_v60 = vadd.f32 %v1652_v57, %v1651_v17 }
 0x53b   : > { %v1312_v6 = vadd.f32 %v1311_v32, %v1310_v43 }
 0x546   : > { %v1553_v53 = vpop.permute.xlu1 %1552 }
 0x547   : > { %1836 = vmatmul.msk.bf16.vlgmr.msra.gmra.mxu2 %vm283_vm1, %v1553_v53 }
 0x556   : > { %1257 = vadd.xlane.f32.xlu1 %v1256_v39 }
 0x55e   : > { %1598 = vadd.xlane.f32.xlu1 %v1597_v54  ;;  %v1645_v54 = vmul.f32 %v1826_v50, %v1360_v47 }
 0x57d   : > { %v1206_v56 = vpop.f32.mrf.mxu2 }
 0x585   : > { %v1208_v27 = vpop.f32.mrf.mxu2 }
 0x58c   : > { %v1381_v18 = vpop.permute.xlu2 %1380 }
 0x58d   : > { %v1383_v61 = vsel %vm283_vm1, %v1381_v18, 0.0 }
 0x58e   : > { %1384 = vadd.xlane.f32.xlu2 %v1383_v61 }
 0x59b   : > { %v1228_v4 = vpop.f32.mrf.mxu3 }
 0x59c   : > { %v1229_v36 = vadd.f32 %v1228_v4, %v1206_v56 }
 0x59e   : > { %v1610_v63 = vpop.permute.xlu1 %1609 }
 0x59f   : > { %1883 = vxpose.binary.xlu0.c.b16.start.end [1/2] (short) (narrow) %v1269_v59, %v1610_v63, 16 }
 0x5a3   : > { %v1230_v1 = vpop.f32.mrf.mxu3 }
 0x5a6   : > { %1314 = vrot.lane.b32.xlu2 %v1312_v6, %s1950_s16 }
 0x5b6   : > { %v1547_v7 = vpop.f32.mrf.mxu1 }
 0x5be   : > { %v1549_v55 = vpop.f32.mrf.mxu1 }
 0x5c9   : > { %v1258_v21 = vpop.xlane.xlu1 %1257 }
 0x5ca   : > { %v1569_v41 = vpop.f32.mrf.mxu2  ;;  %v1259_v18 = vadd.f32 %v1258_v21, %v2422_v26 }
 0x5cb   : > { %v1570_v33 = vadd.f32 %v1569_v41, %v1547_v7 }
 0x5cc   : > { %v1331_v32 = vand.u32 2147483648, %v1259_v18  ;;  %vm1325_vm10 = vweird.f32 %v1259_v18  ;;  %v1329_v1 = vand.u32 2147483647, %v1259_v18 }
 0x5cd   : > { %1676 = vrot.lane.b32.xlu1 %v1570_v33, %s1942_s20 }
 0x5ce   : > { %v1332_v7 = vor.u32 1.1754944e-38, %v1331_v32  ;;  %vm1330_vm15 = vcmp.eq.f32.partialorder %v1329_v1, 8.507059e+37 }
 0x5d1   : > { %v1599_v12 = vpop.xlane.xlu1 %1598 }
 0x5d2   : > { %v1571_v62 = vpop.f32.mrf.mxu2 }
 0x5d5   : > { %1603 = vperm.xlu1 %1887, %v1825_v15  }
 0x5dd   : > { %1655 = vrot.lane.b32.xlu1 %v1653_v60, %s1951_s25 }
 0x5e5   : > { %1889 = vrot.lane.b32.xlu1 %v1888_v34, %s1935_s29 }
 0x601   : > { %v1385_v19 = vpop.xlane.xlu2 %1384 }
 0x602   : > { %v1600_v23 = vadd.f32 %v1599_v12, %v1385_v19 }
 0x604   : > { %1906 = vrcp.f32 %v1600_v23  ;;  %v1672_v3 = vand.u32 2147483648, %v1600_v23  ;;  %vm1666_vm7 = vweird.f32 %v1600_v23  ;;  %v1670_v31 = vand.u32 2147483647, %v1600_v23 }
 0x605   : > { %1908 = vrcp.f32 %v1259_v18 }
 0x606   : > { %1886 = vset.pattern.permute.xlu0 %v1934_v2  ;;  %v1673_v44 = vor.u32 1.1754944e-38, %v1672_v3  ;;  %vm1671_vm9 = vcmp.eq.f32.partialorder %v1670_v31, 8.507059e+37 }
 0x609   : > { %v1315_v29 = vpop.permute.xlu2 %1314 }
 0x60a   : > { %v1317_v35 = vadd.f32 %v1315_v29, %v1304_v28  ;;  %v1907_v58 = vpop.eup %1906 }
 0x60b   : > { %v1662_v34 = vmul.f32 %v1907_v58, %v1600_v23  ;;  %vm1667_vm5 = vweird.f32 %v1907_v58  ;;  %v1909_v8 = vpop.eup %1908 }
 0x60c   : > { %1319 = vst.msk [vmem:[#allocation3 + $0x2] sm:$0x1] %vm288_vm0, %v1317_v35  ;;  %vm1668_vm8 = vmor %vm1666_vm7, %vm1667_vm5  ;;  %v1321_v61 = vmul.f32 %v1909_v8, %v1259_v18 }
 0x60d   : > { %921 = vperm.xlu0 %1886, %v1795_v40   ;;  %v1663_v2 = vsub.f32 1.0, %v1662_v34 }
 0x60e   : > { %v1322_v11 = vsub.f32 1.0, %v1321_v61 }
 0x60f   : > { %v1664_v38 = vmul.f32 %v1907_v58, %v1663_v2 }
 0x610   : > { %v1323_v43 = vmul.f32 %v1909_v8, %v1322_v11 }
 0x611   : > { %v1665_v22 = vadd.f32 %v1907_v58, %v1664_v38 }
 0x612   : > { %v1324_v63 = vadd.f32 %v1909_v8, %v1323_v43 }
 0x613   : > { %v1669_v30 = vsel %vm1668_vm8, %v1907_v58, %v1665_v22 }
 0x614   : > { %v1674_v42 = vsel %vm1671_vm9, %v1673_v44, %v1669_v30 }
 0x615   : > { %1262 = vperm.xlu0 %1886, %v1810_v51  }
 0x61d   : > { %1335 = vrot.lane.b32.xlu0 %v1229_v36, %s1948_s27 }
 0x63f   : > { %v1677_v53 = vpop.permute.xlu1 %1676 }
 0x640   : > { %v1679_v45 = vmul.f32 %v1677_v53, %v2028_v5 }
 0x642   : > { %v1680_v46 = vmul.f32 %v1679_v45, %v1674_v42 }
 0x647   : > { %v1604_v39 = vpop.permute.xlu1 %1603 }
 0x64b   : > { %v1884_v52 = vpop.trf.xlu0 }
 0x64c   : > { %1837 = vmatmul.msk.bf16.vlgmr.msra.gmra.mxu3 %vm283_vm1, %v1884_v52 }
 0x64f   : > { %v1656_v56 = vpop.permute.xlu1 %1655 }
 0x650   : > { %v1658_v59 = vadd.f32 %v1656_v56, %v1645_v54 }
 0x652   : > { %1660 = vst.msk [vmem:[#allocation3 + $0x3] sm:$0x1] %vm288_vm0, %v1658_v59  ;;  %vm1326_vm0 = vweird.f32 %v1909_v8 }
 0x653   : > { %v1885_v27 = vpop.trf.xlu0  ;;  %vm1327_vm11 = vmor %vm1325_vm10, %vm1326_vm0 }
 0x654   : > { %1822 = vmatmul.msk.bf16.vlgmr.msra.gmra.mxu0 %vm283_vm1, %v1885_v27  ;;  %v1328_v26 = vsel %vm1327_vm11, %v1909_v8, %v1324_v63 }
 0x657   : > { %v1890_v17 = vpop.permute.xlu1 %1889 }
 0x658   : > { %v1892_v57 = vunpack.i.h.bf16 %v1890_v17  ;;  %v1891_v60 = vunpack.i.l.bf16 %v1890_v17 }
 0x67f   : > { %v922_v48 = vpop.permute.xlu0 %921 }
 0x680   : > { %v924_v49 = vmul.f32 %v922_v48, %v2320_v14  ;;  %v1333_v14 = vsel %vm1330_vm15, %v1332_v7, %v1328_v26 }
 0x682   : > { %v962_v4 = vadd.f32 %v2364_v16, %v924_v49  ;;  %v1606_v16 = vmul.f32 %v1604_v39, %v2611_v37 }
 0x684   : > { %977 = vst.msk [vmem:[#allocation2 + $0x8] sm:$0xff] %vm283_vm1, %v962_v4 }
 0x687   : > { %v1263_v36 = vpop.permute.xlu0 %1262 }
 0x688   : > { %v1265_v10 = vmul.f32 %v1263_v36, %v2550_v25  ;;  %v1697_v25 = vsel %vm283_vm1, %v1891_v60, %v1892_v57 }
 0x68f   : > { %v1336_v6 = vpop.permute.xlu0 %1335 }
 0x690   : > { %v1338_v55 = vmul.f32 %v1336_v6, %v2028_v5 }
 0x692   : > { %v1339_v0 = vmul.f32 %v1338_v55, %v1333_v14 }
 0x694   : > { %v1893_v9 = vpack.i.bf16 %v1680_v46, %v1339_v0 }
 0x696   : > { %1894 = vrot.lane.b32.xlu2 %v1893_v9, %s1935_s29 }
 0x6cf   : > { %v1640_v41 = vpop.f32.mrf.mxu3 }
 0x6d0   : > { %v1644_v33 = vadd.f32 %v1640_v41, %v1606_v16 }
 0x6d1   : > { %v1299_v13 = vpop.f32.mrf.mxu0 }
 0x6d2   : > { %v1303_v62 = vadd.f32 %v1299_v13, %v1265_v10  ;;  %1659 = vst.msk [vmem:[#allocation2 + $0x18] sm:$0xff] %vm283_vm1, %v1644_v33 }
 0x6d4   : > { %1318 = vst.msk [vmem:[#allocation2 + $0x10] sm:$0xff] %vm283_vm1, %v1303_v62 }
 0x6d7   : > { %v1642_v15 = vpop.f32.mrf.mxu3 }
 0x6d9   : > { %v1301_v5 = vpop.f32.mrf.mxu0 }
 0x6f0   : > { %v1895_v21 = vpop.permute.xlu2 %1894 }
 0x6f1   : > { %v1897_v37 = vunpack.i.h.bf16 %v1895_v21  ;;  %v1896_v12 = vunpack.i.l.bf16 %v1895_v21 }
 0x6f3   : > { %v1699_v19 = vsel %vm1698_vm2, %v1697_v25, %v1896_v12 }
 0x6f4   : > { %v1701_v23 = vsel %vm1700_vm6, %v1699_v19, %v1897_v37 }
 0x6f5   : > { %v1702_v20 = vpack.c.bf16 %v1701_v23, %v1701_v23 }
 0x6f7   : > { %1704 = vst.msk [vmem:[%s277_s10] sm:$0xf] %vm1703_vm12, %v1702_v20 }
 0x6f8 PF: > { %s16_s23 = sadd.s32 1, %s1932_s23   ;;  %s2729_s21 = smov %s1928_s22 }
 0x6f9   : > { %p13_p5 = scmp.ge.s32.totalorder %s16_s23, 4   ;;  %s2730_s22 = smov %s2732_s24 }
 0x6fb   :  { %15 = sbr.rel (!%p13_p5) target bundleno = 2 (0x2), region = 99 }

// kernel: block_forward.12
= control target key start
LH: loop header
LB: loop body
LE: loop exit
PB: predicated region body
PF: predicated region fallthrough
CT: control target
= control target key end

     0   :  { %vm43_vm0 = vcmask 261120   ;;  %v188_v61 = vmov -1.0   ;;  %s232_s1 = inlined_call_operand.vmem [shape: bf16[32,128], index: 1, kind: input, shape index: {}]   ;;  %s233_s0 = inlined_call_operand.vmem [shape: bf16[16,32], index: 0, kind: input, shape index: {}]   ;;  %s234_s2 = inlined_call_operand.vmem [shape: bf16[16,128], index: 2, kind: output, shape index: {}]  }
   0x1   :  { %v173_v0 = vld [vmem:[%s232_s1 + $0x8] sm:$0xff]  ;;  %v172_v1 = vld [vmem:[%s232_s1] sm:$0xff] }
   0x2   :  { %53 = vmatpush.bf16.msra.mxu0 %v173_v0  ;;  %v171_v2 = vld [vmem:[%s233_s0] sm:$0xff] }
   0x6   :  { %54 = vmatpush.bf16.msra.mxu0 %v172_v1 }
   0x9   :  { %170 = vmatmul.msk.bf16.vlgmr.msra.gmra.mxu0 %vm43_vm0, %v171_v2 }
  0x86   :  { %v213_v3 = vpop.f32.mrf.mxu0 }
  0x87   :  { %v216_v4 = vmul.f32 0.70710677, %v213_v3 }
  0x89   :  { %v78_v5 = vand.u32 2147483647, %v216_v4  ;;  %vm74_vm9 = vcmp.ge.f32.partialorder %v216_v4, 0.0 }
  0x8a   :  { %v76_v62 = vsel %vm74_vm9, 1.0, %v188_v61 }
  0x8b   :  { %v80_v6 = vmul.f32 0.3275911, %v78_v5  ;;  %v132_v26 = vsub.f32 0.0, %v78_v5 }
  0x8d   :  { %v82_v7 = vadd.f32 1.0, %v80_v6  ;;  %v134_v33 = vmul.f32 %v132_v26, %v78_v5 }
  0x8e   :  { %v219_v8 = vpop.f32.mrf.mxu0 }
  0x8f   :  { %180 = vrcp.f32 %v82_v7  ;;  %v222_v9 = vmul.f32 0.70710677, %v219_v8  ;;  %v95_v16 = vand.u32 2147483648, %v82_v7  ;;  %v93_v18 = vand.u32 2147483647, %v82_v7 }
  0x90   :  { %vm89_vm2 = vweird.f32 %v82_v7  ;;  %v136_v39 = vmul.f32 1.442695, %v134_v33 }
  0x91   :  { %v79_v10 = vand.u32 2147483647, %v222_v9  ;;  %v96_v20 = vor.u32 1.1754944e-38, %v95_v16  ;;  %vm94_vm4 = vcmp.eq.f32.partialorder %v93_v18, 8.507059e+37  ;;  %vm75_vm10 = vcmp.ge.f32.partialorder %v222_v9, 0.0 }
  0x92   :  { %v77_v2 = vsel %vm75_vm10, 1.0, %v188_v61 }
  0x93   :  { %v81_v11 = vmul.f32 0.3275911, %v79_v10  ;;  %v133_v41 = vsub.f32 0.0, %v79_v10 }
  0x95   :  { %v181_v12 = vpop.eup %180  ;;  %v83_v14 = vadd.f32 1.0, %v81_v11  ;;  %v135_v46 = vmul.f32 %v133_v41, %v79_v10  ;;  %v71_v10 = vmul.f32 0.5, %v219_v8 }
  0x96   :  { %v85_v13 = vmul.f32 %v181_v12, %v82_v7  ;;  %vm90_vm1 = vweird.f32 %v181_v12  ;;  %v70_v7 = vmul.f32 0.5, %v213_v3 }
  0x97   :  { %182 = vrcp.f32 %v83_v14  ;;  %vm91_vm3 = vmor %vm89_vm2, %vm90_vm1  ;;  %v110_v29 = vand.u32 2147483648, %v83_v14  ;;  %v108_v31 = vand.u32 2147483647, %v83_v14  ;;  %vm104_vm6 = vweird.f32 %v83_v14 }
  0x98   :  { %v86_v15 = vsub.f32 1.0, %v85_v13  ;;  %184 = vpow2.f32 %v136_v39  ;;  %v138_v51 = vmul.f32 1.442695, %v135_v46 }
  0x99   :  { %v111_v36 = vor.u32 1.1754944e-38, %v110_v29  ;;  %vm109_vm8 = vcmp.eq.f32.partialorder %v108_v31, 8.507059e+37 }
  0x9a   :  { %v87_v17 = vmul.f32 %v181_v12, %v86_v15  ;;  %186 = vpow2.f32 %v138_v51 }
  0x9c   :  { %v88_v19 = vadd.f32 %v181_v12, %v87_v17 }
  0x9d   :  { %v183_v21 = vpop.eup %182 }
  0x9e   :  { %v92_v22 = vsel %vm91_vm3, %v181_v12, %v88_v19  ;;  %v100_v24 = vmul.f32 %v183_v21, %v83_v14  ;;  %vm105_vm5 = vweird.f32 %v183_v21  ;;  %v185_v53 = vpop.eup %184 }
  0x9f   :  { %v97_v23 = vsel %vm94_vm4, %v96_v20, %v92_v22  ;;  %vm106_vm7 = vmor %vm104_vm6, %vm105_vm5 }
  0xa0   :  { %v114_v25 = vmul.f32 1.0614054, %v97_v23  ;;  %v101_v27 = vsub.f32 1.0, %v100_v24  ;;  %v187_v60 = vpop.eup %186 }
  0xa2   :  { %v116_v28 = vadd.f32 -1.4531521, %v114_v25  ;;  %v102_v30 = vmul.f32 %v183_v21, %v101_v27 }
  0xa4   :  { %v118_v32 = vmul.f32 %v116_v28, %v97_v23  ;;  %v103_v34 = vadd.f32 %v183_v21, %v102_v30 }
  0xa6   :  { %v120_v35 = vadd.f32 1.4214138, %v118_v32  ;;  %v107_v37 = vsel %vm106_vm7, %v183_v21, %v103_v34 }
  0xa7   :  { %v112_v40 = vsel %vm109_vm8, %v111_v36, %v107_v37 }
  0xa8   :  { %v122_v38 = vmul.f32 %v120_v35, %v97_v23  ;;  %v115_v42 = vmul.f32 1.0614054, %v112_v40 }
  0xaa   :  { %v124_v43 = vadd.f32 -0.28449672, %v122_v38  ;;  %v117_v44 = vadd.f32 -1.4531521, %v115_v42 }
  0xac   :  { %v126_v45 = vmul.f32 %v124_v43, %v97_v23  ;;  %v119_v47 = vmul.f32 %v117_v44, %v112_v40 }
  0xae   :  { %v128_v48 = vadd.f32 0.2548296, %v126_v45  ;;  %v121_v49 = vadd.f32 1.4214138, %v119_v47 }
  0xb0   :  { %v130_v50 = vmul.f32 %v128_v48, %v97_v23  ;;  %v123_v52 = vmul.f32 %v121_v49, %v112_v40 }
  0xb2   :  { %v140_v54 = vmul.f32 %v185_v53, %v130_v50  ;;  %v125_v55 = vadd.f32 -0.28449672, %v123_v52 }
  0xb4   :  { %v127_v56 = vmul.f32 %v125_v55, %v112_v40  ;;  %v142_v57 = vsub.f32 1.0, %v140_v54 }
  0xb6   :  { %v129_v58 = vadd.f32 0.2548296, %v127_v56  ;;  %v144_v63 = vmul.f32 %v142_v57, %v76_v62 }
  0xb8   :  { %v131_v59 = vmul.f32 %v129_v58, %v112_v40  ;;  %v146_v5 = vadd.f32 1.0, %v144_v63 }
  0xba   :  { %v141_v0 = vmul.f32 %v187_v60, %v131_v59  ;;  %v148_v4 = vmul.f32 %v146_v5, %v70_v7 }
  0xbc   :  { %v143_v1 = vsub.f32 1.0, %v141_v0 }
  0xbe   :  { %v145_v6 = vmul.f32 %v143_v1, %v77_v2 }
  0xc0   :  { %v147_v11 = vadd.f32 1.0, %v145_v6 }
  0xc2   :  { %v149_v12 = vmul.f32 %v147_v11, %v71_v10 }
  0xc4   :  { %v177_v13 = vpack.c.bf16 %v149_v12, %v148_v4 }
  0xc6   :  { %178 = vst [vmem:[%s234_s2] sm:$0xff] %v177_v13  }

</bundles_post_ra>
